<compile_context>
chip_gen: v7x
topology: tpu7x:2x2x1
jax: 0.10.0
libtpu: 0.0.40
codegen_flags: <defaults>
</compile_context>

<pallas_src>
import functools
import math

import jax
import jax.numpy as jnp
from jax.experimental import pallas as pl
from jax.experimental.pallas import tpu as pltpu


# --------------------------------------------------------------------------
# Kernels
# --------------------------------------------------------------------------
def _gelu_exact(x):
    # PyTorch nn.GELU() default = exact erf formulation.
    return 0.5 * x * (1.0 + jax.lax.erf(x * (1.0 / math.sqrt(2.0))))


def make_patch_embed_kernel(cin, pp):
    """Fused InstanceNorm2d + patch projection + bias + pos_embed (per image)."""

    def kernel(p_ref, inw_ref, inb_ref, w_ref, b_ref, pos_ref, o_ref):
        pm = p_ref[...]                       # (N, cin*pp) f32, one image
        n_rows, k = pm.shape
        col = jax.lax.broadcasted_iota(jnp.int32, (n_rows, k), 1)
        scale = jnp.zeros_like(pm)
        shift = jnp.zeros_like(pm)
        cnt = float(n_rows * pp)              # = H*W pixels of one channel
        for c in range(cin):                  # Cin is tiny (3): static unroll
            m = (col >= c * pp) & (col < (c + 1) * pp)
            mu = jnp.sum(jnp.where(m, pm, 0.0)) / cnt
            var = jnp.sum(jnp.where(m, jnp.square(pm - mu), 0.0)) / cnt
            s = inw_ref[c] * jax.lax.rsqrt(var + 1e-5)   # InstanceNorm eps=1e-5
            scale = jnp.where(m, s, scale)
            shift = jnp.where(m, inb_ref[c] - mu * s, shift)
        xn = pm * scale + shift               # InstanceNorm'd patches (f32)
        o_ref[...] = (
            jnp.dot(xn.astype(jnp.bfloat16), w_ref[...],
                    preferred_element_type=jnp.float32)
            + b_ref[...] + pos_ref[...])

    return kernel


def gf_block_kernel(tok_ref, g1_ref, b1_ref, f2r_ref, f2i_ref, wr_ref, wi_ref,
                    gr_ref, gi_ref, g2_ref, b2_ref, w1_ref, fb1_ref, w2_ref,
                    fb2_ref, o_ref):
    """One full GFNet Block for one image:
       x + MLP(LN2(irfft2(rfft2(LN1(x)) * W)))   (FFTs as real DFT matmuls)."""
    tok = tok_ref[...]                                        # (N, C) f32

    # --- LayerNorm1 (eps=1e-6), f32 ---
    mu = jnp.mean(tok, axis=-1, keepdims=True)
    var = jnp.mean(jnp.square(tok - mu), axis=-1, keepdims=True)
    y = (tok - mu) * jax.lax.rsqrt(var + 1e-6) * g1_ref[...] + b1_ref[...]

    # --- GlobalFilter: rfft2 -> * complex weight -> irfft2 (ortho) ---
    # Forward 2-D rDFT as one real matmul pair on the flattened token axis.
    xr = jnp.dot(f2r_ref[...], y, preferred_element_type=jnp.float32)  # (Nf, C)
    xi = jnp.dot(f2i_ref[...], y, preferred_element_type=jnp.float32)
    wr = wr_ref[...]
    wi = wi_ref[...]
    yr = xr * wr - xi * wi
    yi = xr * wi + xi * wr
    f = (jnp.dot(gr_ref[...], yr, preferred_element_type=jnp.float32)
         + jnp.dot(gi_ref[...], yi, preferred_element_type=jnp.float32))  # (N, C)

    # --- LayerNorm2 (eps=1e-6), f32 ---
    mu2 = jnp.mean(f, axis=-1, keepdims=True)
    var2 = jnp.mean(jnp.square(f - mu2), axis=-1, keepdims=True)
    z = (f - mu2) * jax.lax.rsqrt(var2 + 1e-6) * g2_ref[...] + b2_ref[...]

    # --- MLP: bf16 MXU matmuls, f32 accumulate, f32 elementwise ---
    h = jnp.dot(z.astype(jnp.bfloat16), w1_ref[...],
                preferred_element_type=jnp.float32) + fb1_ref[...]
    h = _gelu_exact(h)
    out = jnp.dot(h.astype(jnp.bfloat16), w2_ref[...],
                  preferred_element_type=jnp.float32) + fb2_ref[...]

    o_ref[...] = tok + out


def final_norm_mean_kernel(x_ref, g_ref, b_ref, o_ref):
    """Final LayerNorm over C then mean over the N tokens of one image."""
    x = x_ref[...]                                            # (N, C)
    mu = jnp.mean(x, axis=-1, keepdims=True)
    var = jnp.mean(jnp.square(x - mu), axis=-1, keepdims=True)
    y = (x - mu) * jax.lax.rsqrt(var + 1e-6) * g_ref[...] + b_ref[...]
    o_ref[0] = jnp.mean(y, axis=0, keepdims=True)             # (1, C)


# --------------------------------------------------------------------------
# Setup-only: real DFT/IDFT matrices that reproduce rfft2 / irfft2 (ortho)
# --------------------------------------------------------------------------
def make_spectral_mats(a, b):
    # TODO(synk): the DFT/IDFT operators are materialized once here via jnp.fft
    # (there is no Pallas FFT primitive); the per-forward spectral mixing runs
    # entirely inside the Pallas block kernel as real matmuls.
    n = a * b
    wf = b // 2 + 1
    nf = a * wf
    eye_sp = jnp.eye(n, dtype=jnp.float32).reshape(n, a, b)
    f2 = jnp.fft.rfft2(eye_sp, axes=(1, 2), norm="ortho").reshape(n, nf).T
    eye_f = jnp.eye(nf, dtype=jnp.complex64).reshape(nf, a, wf)
    g_re = jnp.fft.irfft2(eye_f, s=(a, b), axes=(1, 2),
                          norm="ortho").reshape(nf, n).T
    g_im = jnp.fft.irfft2(1j * eye_f, s=(a, b), axes=(1, 2),
                          norm="ortho").reshape(nf, n).T
    return dict(f_re=jnp.real(f2).astype(jnp.float32),   # (Nf, N)
                f_im=jnp.imag(f2).astype(jnp.float32),   # (Nf, N)
                g_re=g_re.astype(jnp.float32),           # (N, Nf)
                g_im=g_im.astype(jnp.float32))           # (N, Nf)


# --------------------------------------------------------------------------
# Parameters
# --------------------------------------------------------------------------
def init_params(key, *, in_chans, patch, embed_dim, depth, mlp_hidden,
                num_patches, h, w):
    ks = jax.random.split(key, 2 + depth)
    params = {
        "in_weight": jnp.ones((in_chans,), jnp.float32),   # InstanceNorm2d affine
        "in_bias": jnp.zeros((in_chans,), jnp.float32),
        "proj_w": 0.02 * jax.random.normal(
            ks[0], (embed_dim, in_chans, patch, patch), jnp.float32),
        "proj_b": jnp.zeros((embed_dim,), jnp.float32),
        "pos_embed": 0.02 * jax.random.normal(
            ks[1], (1, num_patches, embed_dim), jnp.float32),
        "norm_g": jnp.ones((embed_dim,), jnp.float32),
        "norm_b": jnp.zeros((embed_dim,), jnp.float32),
    }
    blocks = []
    for i in range(depth):
        bk = jax.random.split(ks[2 + i], 3)
        blocks.append(dict(
            norm1_g=jnp.ones((embed_dim,), jnp.float32),
            norm1_b=jnp.zeros((embed_dim,), jnp.float32),
            complex_weight=0.02 * jax.random.normal(
                bk[0], (h, w, embed_dim, 2), jnp.float32),
            norm2_g=jnp.ones((embed_dim,), jnp.float32),
            norm2_b=jnp.zeros((embed_dim,), jnp.float32),
            fc1_w=0.02 * jax.random.normal(bk[1], (embed_dim, mlp_hidden),
                                           jnp.float32),
            fc1_b=jnp.zeros((mlp_hidden,), jnp.float32),
            fc2_w=0.02 * jax.random.normal(bk[2], (mlp_hidden, embed_dim),
                                           jnp.float32),
            fc2_b=jnp.zeros((embed_dim,), jnp.float32),
        ))
    params["blocks"] = blocks
    return params


# --------------------------------------------------------------------------
# Forward (eval path)
# --------------------------------------------------------------------------
def gfnet_forward_eval(params, spectral, x, *, patch, a, b):
    B, cin, H, W = x.shape
    n = a * b                                    # tokens per image
    C = params["proj_b"].shape[0]
    hid = params["blocks"][0]["fc1_b"].shape[0]
    pp = patch * patch
    k = cin * pp
    nf = a * (b // 2 + 1)

    compiler = pltpu.CompilerParams(
        dimension_semantics=("parallel",),       # both TCs on v7x
        vmem_limit_bytes=48 * 1024 * 1024)       # fits v7x 64 MiB physical VMEM

    # im2col of the RAW image (single XLA transpose pass); InstanceNorm is done
    # inside the fused patch-embed kernel, so no normalized image hits HBM.
    patches = (x.astype(jnp.float32)
               .reshape(B, cin, a, patch, b, patch)
               .transpose(0, 2, 4, 1, 3, 5)
               .reshape(B * n, k))

    wp = params["proj_w"].reshape(C, k).T.astype(jnp.bfloat16)     # (k, C)
    bp = params["proj_b"].reshape(1, C)
    pos = params["pos_embed"][0]                                    # (N, C)

    tok = pl.pallas_call(
        make_patch_embed_kernel(cin, pp),
        out_shape=jax.ShapeDtypeStruct((B * n, C), jnp.float32),
        grid=(B,),
        in_specs=[
            pl.BlockSpec((n, k), lambda i: (i, 0)),                 # streamed
            pl.BlockSpec(memory_space=pltpu.MemorySpace.SMEM),      # in_weight
            pl.BlockSpec(memory_space=pltpu.MemorySpace.SMEM),      # in_bias
            pl.BlockSpec((k, C), lambda i: (0, 0)),                 # resident
            pl.BlockSpec((1, C), lambda i: (0, 0)),
            pl.BlockSpec((n, C), lambda i: (0, 0)),                 # pos, no tile
        ],
        out_specs=pl.BlockSpec((n, C), lambda i: (i, 0)),
        compiler_params=compiler,
    )(patches, params["in_weight"], params["in_bias"], wp, bp, pos)

    # One fused Pallas kernel per block, gridded over images.
    for blk in params["blocks"]:
        wr = blk["complex_weight"][..., 0].reshape(nf, C)
        wi = blk["complex_weight"][..., 1].reshape(nf, C)
        args = (
            tok,
            blk["norm1_g"].reshape(1, C), blk["norm1_b"].reshape(1, C),
            spectral["f_re"], spectral["f_im"], wr, wi,
            spectral["g_re"], spectral["g_im"],
            blk["norm2_g"].reshape(1, C), blk["norm2_b"].reshape(1, C),
            blk["fc1_w"].astype(jnp.bfloat16), blk["fc1_b"].reshape(1, hid),
            blk["fc2_w"].astype(jnp.bfloat16), blk["fc2_b"].reshape(1, C),
        )
        in_specs = [
            pl.BlockSpec((n, C), lambda i: (i, 0)),    # tokens: streamed
            pl.BlockSpec((1, C), lambda i: (0, 0)),
            pl.BlockSpec((1, C), lambda i: (0, 0)),
            pl.BlockSpec((nf, n), lambda i: (0, 0)),   # DFT matrices: resident
            pl.BlockSpec((nf, n), lambda i: (0, 0)),
            pl.BlockSpec((nf, C), lambda i: (0, 0)),   # complex weight re/im
            pl.BlockSpec((nf, C), lambda i: (0, 0)),
            pl.BlockSpec((n, nf), lambda i: (0, 0)),   # IDFT matrices
            pl.BlockSpec((n, nf), lambda i: (0, 0)),
            pl.BlockSpec((1, C), lambda i: (0, 0)),
            pl.BlockSpec((1, C), lambda i: (0, 0)),
            pl.BlockSpec((C, hid), lambda i: (0, 0)),  # fc1 (bf16, resident)
            pl.BlockSpec((1, hid), lambda i: (0, 0)),
            pl.BlockSpec((hid, C), lambda i: (0, 0)),  # fc2 (bf16, resident)
            pl.BlockSpec((1, C), lambda i: (0, 0)),
        ]
        tok = pl.pallas_call(
            gf_block_kernel,
            out_shape=jax.ShapeDtypeStruct((B * n, C), jnp.float32),
            grid=(B,),
            in_specs=in_specs,
            out_specs=pl.BlockSpec((n, C), lambda i: (i, 0)),
            input_output_aliases={0: 0},               # reuse token buffer
            compiler_params=compiler,
        )(*args)

    # Final LayerNorm + mean over tokens -> (B, C)
    out = pl.pallas_call(
        final_norm_mean_kernel,
        out_shape=jax.ShapeDtypeStruct((B, 1, C), jnp.float32),
        grid=(B,),
        in_specs=[
            pl.BlockSpec((n, C), lambda i: (i, 0)),
            pl.BlockSpec((1, C), lambda i: (0, 0)),
            pl.BlockSpec((1, C), lambda i: (0, 0)),
        ],
        out_specs=pl.BlockSpec((1, 1, C), lambda i: (i, 0, 0)),
        compiler_params=compiler,
    )(tok, params["norm_g"].reshape(1, C), params["norm_b"].reshape(1, C))
    return out.reshape(B, C)


# --------------------------------------------------------------------------
# Demo
# --------------------------------------------------------------------------
if __name__ == "__main__":
    # Small shapes consistent with the module: img 32x32, patch 4 -> token grid
    # a x b = 8 x 8 (N=64); embed_dim=128 (lane-dense), mlp_ratio=4, depth=2;
    # GlobalFilter weight (h=a=8, w=b//2+1=5, C, 2).
    B, cin, H, W = 2, 3, 32, 32
    patch = 4
    embed_dim = 128
    depth = 2
    mlp_ratio = 4.0
    a, b = H // patch, W // patch
    n_tok = a * b
    h, w = a, b // 2 + 1

    key = jax.random.PRNGKey(0)
    kx, kp = jax.random.split(key)
    x = jax.random.normal(kx, (B, cin, H, W), jnp.float32)
    params = init_params(kp, in_chans=cin, patch=patch, embed_dim=embed_dim,
                         depth=depth, mlp_hidden=int(embed_dim * mlp_ratio),
                         num_patches=n_tok, h=h, w=w)
    spectral = make_spectral_mats(a, b)

    fwd = jax.jit(functools.partial(gfnet_forward_eval, patch=patch, a=a, b=b))
    out = jax.block_until_ready(fwd(params, spectral, x))

    assert out.shape == (B, embed_dim), out.shape
    assert bool(jnp.all(jnp.isfinite(out)))
    print("KERNEL_OK")
</pallas_src>

<mosaic_0001>
module attributes {stable_mosaic.version = 11 : i64} {
  func.func @kernel(%arg0: i32, %arg1: memref<64x48xf32, #tpu.memory_space<vmem>>, %arg2: memref<3xf32, #tpu.memory_space<smem>>, %arg3: memref<3xf32, #tpu.memory_space<smem>>, %arg4: memref<48x128xbf16, #tpu.memory_space<vmem>>, %arg5: memref<1x128xf32, #tpu.memory_space<vmem>>, %arg6: memref<64x128xf32, #tpu.memory_space<vmem>>, %arg7: memref<64x128xf32, #tpu.memory_space<vmem>>) attributes {dimension_semantics = [#tpu.dimension_semantics<parallel>], iteration_bounds = array<i64: 2>, scalar_prefetch = 0 : i64, scratch_operands = 0 : i64, tpu.core_type = #tpu.core_type<tc>, window_params = [{transform_indices = @transform_0, window_bounds = array<i64: 64, 48>}, {transform_indices = @transform_1, window_bounds = array<i64: 3>}, {transform_indices = @transform_2, window_bounds = array<i64: 3>}, {pipeline_mode = #tpu.pipeline_mode<synchronous>, transform_indices = @transform_3, window_bounds = array<i64: 48, 128>}, {pipeline_mode = #tpu.pipeline_mode<synchronous>, transform_indices = @transform_4, window_bounds = array<i64: 1, 128>}, {pipeline_mode = #tpu.pipeline_mode<synchronous>, transform_indices = @transform_5, window_bounds = array<i64: 64, 128>}, {transform_indices = @transform_6, window_bounds = array<i64: 64, 128>}]} {
    %c0 = arith.constant 0 : index
    %c0_0 = arith.constant 0 : index
    %0 = vector.load %arg1[%c0, %c0_0] : memref<64x48xf32, #tpu.memory_space<vmem>>, vector<64x48xf32>
    %1 = tpu.iota {dimensions = array<i32: 1>} : vector<64x48xi32>
    %cst = arith.constant 0.000000e+00 : f32
    %2 = vector.broadcast %cst : f32 to vector<64x48xf32>
    %cst_1 = arith.constant 0.000000e+00 : f32
    %3 = vector.broadcast %cst_1 : f32 to vector<64x48xf32>
    %c0_i32 = arith.constant 0 : i32
    %4 = vector.broadcast %c0_i32 : i32 to vector<64x48xi32>
    %5 = arith.cmpi sge, %1, %4 : vector<64x48xi32>
    %c16_i32 = arith.constant 16 : i32
    %6 = vector.broadcast %c16_i32 : i32 to vector<64x48xi32>
    %7 = arith.cmpi slt, %1, %6 : vector<64x48xi32>
    %8 = arith.andi %5, %7 : vector<64x48xi1>
    %cst_2 = arith.constant 0.000000e+00 : f32
    %9 = vector.broadcast %cst_2 : f32 to vector<64x48xf32>
    %10 = arith.select %8, %0, %9 : vector<64x48xi1>, vector<64x48xf32>
    %11 = vector.shape_cast %10 : vector<64x48xf32> to vector<1x64x48xf32>
    %cst_3 = arith.constant dense<0.000000e+00> : vector<1xf32>
    %12 = vector.multi_reduction <add>, %11, %cst_3 [1, 2] : vector<1x64x48xf32> to vector<1xf32>
    %13 = vector.shape_cast %12 : vector<1xf32> to vector<1x1x1xf32>
    %14 = vector.extract %13[0, 0, 0] : f32 from vector<1x1x1xf32>
    %cst_4 = arith.constant 1.024000e+03 : f32
    %15 = arith.divf %14, %cst_4 : f32
    %16 = vector.broadcast %15 : f32 to vector<64x48xf32>
    %17 = arith.subf %0, %16 : vector<64x48xf32>
    %18 = arith.mulf %17, %17 : vector<64x48xf32>
    %cst_5 = arith.constant 0.000000e+00 : f32
    %19 = vector.broadcast %cst_5 : f32 to vector<64x48xf32>
    %20 = arith.select %8, %18, %19 : vector<64x48xi1>, vector<64x48xf32>
    %21 = vector.shape_cast %20 : vector<64x48xf32> to vector<1x64x48xf32>
    %cst_6 = arith.constant dense<0.000000e+00> : vector<1xf32>
    %22 = vector.multi_reduction <add>, %21, %cst_6 [1, 2] : vector<1x64x48xf32> to vector<1xf32>
    %23 = vector.shape_cast %22 : vector<1xf32> to vector<1x1x1xf32>
    %24 = vector.extract %23[0, 0, 0] : f32 from vector<1x1x1xf32>
    %cst_7 = arith.constant 1.024000e+03 : f32
    %25 = arith.divf %24, %cst_7 : f32
    %c0_8 = arith.constant 0 : index
    %26 = memref.load %arg2[%c0_8] : memref<3xf32, #tpu.memory_space<smem>>
    %cst_9 = arith.constant 9.99999974E-6 : f32
    %27 = arith.addf %25, %cst_9 : f32
    %28 = math.rsqrt %27 : f32
    %29 = arith.mulf %26, %28 : f32
    %30 = vector.broadcast %29 : f32 to vector<64x48xf32>
    %31 = arith.select %8, %30, %2 : vector<64x48xi1>, vector<64x48xf32>
    %c0_10 = arith.constant 0 : index
    %32 = memref.load %arg3[%c0_10] : memref<3xf32, #tpu.memory_space<smem>>
    %33 = arith.mulf %15, %29 : f32
    %34 = arith.subf %32, %33 : f32
    %35 = vector.broadcast %34 : f32 to vector<64x48xf32>
    %36 = arith.select %8, %35, %3 : vector<64x48xi1>, vector<64x48xf32>
    %c16_i32_11 = arith.constant 16 : i32
    %37 = vector.broadcast %c16_i32_11 : i32 to vector<64x48xi32>
    %38 = arith.cmpi sge, %1, %37 : vector<64x48xi32>
    %c32_i32 = arith.constant 32 : i32
    %39 = vector.broadcast %c32_i32 : i32 to vector<64x48xi32>
    %40 = arith.cmpi slt, %1, %39 : vector<64x48xi32>
    %41 = arith.andi %38, %40 : vector<64x48xi1>
    %cst_12 = arith.constant 0.000000e+00 : f32
    %42 = vector.broadcast %cst_12 : f32 to vector<64x48xf32>
    %43 = arith.select %41, %0, %42 : vector<64x48xi1>, vector<64x48xf32>
    %44 = vector.shape_cast %43 : vector<64x48xf32> to vector<1x64x48xf32>
    %cst_13 = arith.constant dense<0.000000e+00> : vector<1xf32>
    %45 = vector.multi_reduction <add>, %44, %cst_13 [1, 2] : vector<1x64x48xf32> to vector<1xf32>
    %46 = vector.shape_cast %45 : vector<1xf32> to vector<1x1x1xf32>
    %47 = vector.extract %46[0, 0, 0] : f32 from vector<1x1x1xf32>
    %cst_14 = arith.constant 1.024000e+03 : f32
    %48 = arith.divf %47, %cst_14 : f32
    %49 = vector.broadcast %48 : f32 to vector<64x48xf32>
    %50 = arith.subf %0, %49 : vector<64x48xf32>
    %51 = arith.mulf %50, %50 : vector<64x48xf32>
    %cst_15 = arith.constant 0.000000e+00 : f32
    %52 = vector.broadcast %cst_15 : f32 to vector<64x48xf32>
    %53 = arith.select %41, %51, %52 : vector<64x48xi1>, vector<64x48xf32>
    %54 = vector.shape_cast %53 : vector<64x48xf32> to vector<1x64x48xf32>
    %cst_16 = arith.constant dense<0.000000e+00> : vector<1xf32>
    %55 = vector.multi_reduction <add>, %54, %cst_16 [1, 2] : vector<1x64x48xf32> to vector<1xf32>
    %56 = vector.shape_cast %55 : vector<1xf32> to vector<1x1x1xf32>
    %57 = vector.extract %56[0, 0, 0] : f32 from vector<1x1x1xf32>
    %cst_17 = arith.constant 1.024000e+03 : f32
    %58 = arith.divf %57, %cst_17 : f32
    %c1 = arith.constant 1 : index
    %59 = memref.load %arg2[%c1] : memref<3xf32, #tpu.memory_space<smem>>
    %cst_18 = arith.constant 9.99999974E-6 : f32
    %60 = arith.addf %58, %cst_18 : f32
    %61 = math.rsqrt %60 : f32
    %62 = arith.mulf %59, %61 : f32
    %63 = vector.broadcast %62 : f32 to vector<64x48xf32>
    %64 = arith.select %41, %63, %31 : vector<64x48xi1>, vector<64x48xf32>
    %c1_19 = arith.constant 1 : index
    %65 = memref.load %arg3[%c1_19] : memref<3xf32, #tpu.memory_space<smem>>
    %66 = arith.mulf %48, %62 : f32
    %67 = arith.subf %65, %66 : f32
    %68 = vector.broadcast %67 : f32 to vector<64x48xf32>
    %69 = arith.select %41, %68, %36 : vector<64x48xi1>, vector<64x48xf32>
    %c32_i32_20 = arith.constant 32 : i32
    %70 = vector.broadcast %c32_i32_20 : i32 to vector<64x48xi32>
    %71 = arith.cmpi sge, %1, %70 : vector<64x48xi32>
    %c48_i32 = arith.constant 48 : i32
    %72 = vector.broadcast %c48_i32 : i32 to vector<64x48xi32>
    %73 = arith.cmpi slt, %1, %72 : vector<64x48xi32>
    %74 = arith.andi %71, %73 : vector<64x48xi1>
    %cst_21 = arith.constant 0.000000e+00 : f32
    %75 = vector.broadcast %cst_21 : f32 to vector<64x48xf32>
    %76 = arith.select %74, %0, %75 : vector<64x48xi1>, vector<64x48xf32>
    %77 = vector.shape_cast %76 : vector<64x48xf32> to vector<1x64x48xf32>
    %cst_22 = arith.constant dense<0.000000e+00> : vector<1xf32>
    %78 = vector.multi_reduction <add>, %77, %cst_22 [1, 2] : vector<1x64x48xf32> to vector<1xf32>
    %79 = vector.shape_cast %78 : vector<1xf32> to vector<1x1x1xf32>
    %80 = vector.extract %79[0, 0, 0] : f32 from vector<1x1x1xf32>
    %cst_23 = arith.constant 1.024000e+03 : f32
    %81 = arith.divf %80, %cst_23 : f32
    %82 = vector.broadcast %81 : f32 to vector<64x48xf32>
    %83 = arith.subf %0, %82 : vector<64x48xf32>
    %84 = arith.mulf %83, %83 : vector<64x48xf32>
    %cst_24 = arith.constant 0.000000e+00 : f32
    %85 = vector.broadcast %cst_24 : f32 to vector<64x48xf32>
    %86 = arith.select %74, %84, %85 : vector<64x48xi1>, vector<64x48xf32>
    %87 = vector.shape_cast %86 : vector<64x48xf32> to vector<1x64x48xf32>
    %cst_25 = arith.constant dense<0.000000e+00> : vector<1xf32>
    %88 = vector.multi_reduction <add>, %87, %cst_25 [1, 2] : vector<1x64x48xf32> to vector<1xf32>
    %89 = vector.shape_cast %88 : vector<1xf32> to vector<1x1x1xf32>
    %90 = vector.extract %89[0, 0, 0] : f32 from vector<1x1x1xf32>
    %cst_26 = arith.constant 1.024000e+03 : f32
    %91 = arith.divf %90, %cst_26 : f32
    %c2 = arith.constant 2 : index
    %92 = memref.load %arg2[%c2] : memref<3xf32, #tpu.memory_space<smem>>
    %cst_27 = arith.constant 9.99999974E-6 : f32
    %93 = arith.addf %91, %cst_27 : f32
    %94 = math.rsqrt %93 : f32
    %95 = arith.mulf %92, %94 : f32
    %96 = vector.broadcast %95 : f32 to vector<64x48xf32>
    %97 = arith.select %74, %96, %64 : vector<64x48xi1>, vector<64x48xf32>
    %c2_28 = arith.constant 2 : index
    %98 = memref.load %arg3[%c2_28] : memref<3xf32, #tpu.memory_space<smem>>
    %99 = arith.mulf %81, %95 : f32
    %100 = arith.subf %98, %99 : f32
    %101 = vector.broadcast %100 : f32 to vector<64x48xf32>
    %102 = arith.select %74, %101, %69 : vector<64x48xi1>, vector<64x48xf32>
    %103 = arith.mulf %0, %97 : vector<64x48xf32>
    %104 = arith.addf %103, %102 : vector<64x48xf32>
    %105 = arith.truncf %104 : vector<64x48xf32> to vector<64x48xbf16>
    %c0_29 = arith.constant 0 : index
    %c0_30 = arith.constant 0 : index
    %106 = vector.load %arg4[%c0_29, %c0_30] : memref<48x128xbf16, #tpu.memory_space<vmem>>, vector<48x128xbf16>
    %cst_31 = arith.constant dense<0.000000e+00> : vector<64x128xf32>
    %107 = tpu.matmul %105, %106, %cst_31 {dimension_numbers = #tpu.dot_dimension_numbers<[1], [0], [0], [1], [0, 0, 1, 1], [], []>} : vector<64x48xbf16>, vector<48x128xbf16>, vector<64x128xf32> -> vector<64x128xf32>
    %c0_32 = arith.constant 0 : index
    %c0_33 = arith.constant 0 : index
    %108 = vector.load %arg5[%c0_32, %c0_33] : memref<1x128xf32, #tpu.memory_space<vmem>>, vector<1x128xf32>
    %109 = vector.broadcast %108 : vector<1x128xf32> to vector<64x128xf32>
    %110 = arith.addf %107, %109 : vector<64x128xf32>
    %c0_34 = arith.constant 0 : index
    %c0_35 = arith.constant 0 : index
    %111 = vector.load %arg6[%c0_34, %c0_35] : memref<64x128xf32, #tpu.memory_space<vmem>>, vector<64x128xf32>
    %112 = arith.addf %110, %111 : vector<64x128xf32>
    %c0_36 = arith.constant 0 : index
    %c0_37 = arith.constant 0 : index
    %113 = vector.load %arg7[%c0_36, %c0_37] : memref<64x128xf32, #tpu.memory_space<vmem>>, vector<64x128xf32>
    tpu.vector_store %arg7[%c0_36, %c0_37], %112 {strides = array<i32>} : memref<64x128xf32, #tpu.memory_space<vmem>>, vector<64x128xf32>,
    return
  }
  func.func @transform_0(%arg0: i32) -> (i32, i32) {
    %c0_i32 = arith.constant 0 : i32
    %c0_i32_0 = arith.constant 0 : i32
    return %arg0, %c0_i32 : i32, i32
  }
  func.func @transform_1(%arg0: i32) -> i32 {
    %c0_i32 = arith.constant 0 : i32
    %c0_i32_0 = arith.constant 0 : i32
    return %c0_i32 : i32
  }
  func.func @transform_2(%arg0: i32) -> i32 {
    %c0_i32 = arith.constant 0 : i32
    %c0_i32_0 = arith.constant 0 : i32
    return %c0_i32 : i32
  }
  func.func @transform_3(%arg0: i32) -> (i32, i32) {
    %c0_i32 = arith.constant 0 : i32
    %c0_i32_0 = arith.constant 0 : i32
    %c0_i32_1 = arith.constant 0 : i32
    return %c0_i32, %c0_i32_0 : i32, i32
  }
  func.func @transform_4(%arg0: i32) -> (i32, i32) {
    %c0_i32 = arith.constant 0 : i32
    %c0_i32_0 = arith.constant 0 : i32
    %c0_i32_1 = arith.constant 0 : i32
    return %c0_i32, %c0_i32_0 : i32, i32
  }
  func.func @transform_5(%arg0: i32) -> (i32, i32) {
    %c0_i32 = arith.constant 0 : i32
    %c0_i32_0 = arith.constant 0 : i32
    %c0_i32_1 = arith.constant 0 : i32
    return %c0_i32, %c0_i32_0 : i32, i32
  }
  func.func @transform_6(%arg0: i32) -> (i32, i32) {
    %c0_i32 = arith.constant 0 : i32
    %c0_i32_0 = arith.constant 0 : i32
    return %arg0, %c0_i32 : i32, i32
  }
}

module attributes {stable_mosaic.version = 11 : i64} {
  func.func @gf_block_kernel(%arg0: i32, %arg1: memref<64x128xf32, #tpu.memory_space<vmem>>, %arg2: memref<1x128xf32, #tpu.memory_space<vmem>>, %arg3: memref<1x128xf32, #tpu.memory_space<vmem>>, %arg4: memref<40x64xf32, #tpu.memory_space<vmem>>, %arg5: memref<40x64xf32, #tpu.memory_space<vmem>>, %arg6: memref<40x128xf32, #tpu.memory_space<vmem>>, %arg7: memref<40x128xf32, #tpu.memory_space<vmem>>, %arg8: memref<64x40xf32, #tpu.memory_space<vmem>>, %arg9: memref<64x40xf32, #tpu.memory_space<vmem>>, %arg10: memref<1x128xf32, #tpu.memory_space<vmem>>, %arg11: memref<1x128xf32, #tpu.memory_space<vmem>>, %arg12: memref<128x512xbf16, #tpu.memory_space<vmem>>, %arg13: memref<1x512xf32, #tpu.memory_space<vmem>>, %arg14: memref<512x128xbf16, #tpu.memory_space<vmem>>, %arg15: memref<1x128xf32, #tpu.memory_space<vmem>>, %arg16: memref<64x128xf32, #tpu.memory_space<vmem>>) attributes {dimension_semantics = [#tpu.dimension_semantics<parallel>], iteration_bounds = array<i64: 2>, scalar_prefetch = 0 : i64, scratch_operands = 0 : i64, tpu.core_type = #tpu.core_type<tc>, window_params = [{transform_indices = @transform_0, window_bounds = array<i64: 64, 128>}, {pipeline_mode = #tpu.pipeline_mode<synchronous>, transform_indices = @transform_1, window_bounds = array<i64: 1, 128>}, {pipeline_mode = #tpu.pipeline_mode<synchronous>, transform_indices = @transform_2, window_bounds = array<i64: 1, 128>}, {pipeline_mode = #tpu.pipeline_mode<synchronous>, transform_indices = @transform_3, window_bounds = array<i64: 40, 64>}, {pipeline_mode = #tpu.pipeline_mode<synchronous>, transform_indices = @transform_4, window_bounds = array<i64: 40, 64>}, {pipeline_mode = #tpu.pipeline_mode<synchronous>, transform_indices = @transform_5, window_bounds = array<i64: 40, 128>}, {pipeline_mode = #tpu.pipeline_mode<synchronous>, transform_indices = @transform_6, window_bounds = array<i64: 40, 128>}, {pipeline_mode = #tpu.pipeline_mode<synchronous>, transform_indices = @transform_7, window_bounds = array<i64: 64, 40>}, {pipeline_mode = #tpu.pipeline_mode<synchronous>, transform_indices = @transform_8, window_bounds = array<i64: 64, 40>}, {pipeline_mode = #tpu.pipeline_mode<synchronous>, transform_indices = @transform_9, window_bounds = array<i64: 1, 128>}, {pipeline_mode = #tpu.pipeline_mode<synchronous>, transform_indices = @transform_10, window_bounds = array<i64: 1, 128>}, {pipeline_mode = #tpu.pipeline_mode<synchronous>, transform_indices = @transform_11, window_bounds = array<i64: 128, 512>}, {pipeline_mode = #tpu.pipeline_mode<synchronous>, transform_indices = @transform_12, window_bounds = array<i64: 1, 512>}, {pipeline_mode = #tpu.pipeline_mode<synchronous>, transform_indices = @transform_13, window_bounds = array<i64: 512, 128>}, {pipeline_mode = #tpu.pipeline_mode<synchronous>, transform_indices = @transform_14, window_bounds = array<i64: 1, 128>}, {transform_indices = @transform_15, window_bounds = array<i64: 64, 128>}]} {
    %c0 = arith.constant 0 : index
    %c0_0 = arith.constant 0 : index
    %0 = vector.load %arg1[%c0, %c0_0] : memref<64x128xf32, #tpu.memory_space<vmem>>, vector<64x128xf32>
    %cst = arith.constant dense<0.000000e+00> : vector<64xf32>
    %1 = vector.multi_reduction <add>, %0, %cst [1] : vector<64x128xf32> to vector<64xf32>
    %2 = vector.shape_cast %1 : vector<64xf32> to vector<64x1xf32>
    %cst_1 = arith.constant 1.280000e+02 : f32
    %3 = vector.broadcast %cst_1 : f32 to vector<64x1xf32>
    %4 = arith.divf %2, %3 : vector<64x1xf32>
    %5 = vector.broadcast %4 : vector<64x1xf32> to vector<64x128xf32>
    %6 = arith.subf %0, %5 : vector<64x128xf32>
    %7 = arith.mulf %6, %6 : vector<64x128xf32>
    %cst_2 = arith.constant dense<0.000000e+00> : vector<64xf32>
    %8 = vector.multi_reduction <add>, %7, %cst_2 [1] : vector<64x128xf32> to vector<64xf32>
    %9 = vector.shape_cast %8 : vector<64xf32> to vector<64x1xf32>
    %cst_3 = arith.constant 1.280000e+02 : f32
    %10 = vector.broadcast %cst_3 : f32 to vector<64x1xf32>
    %11 = arith.divf %9, %10 : vector<64x1xf32>
    %12 = vector.broadcast %4 : vector<64x1xf32> to vector<64x128xf32>
    %13 = arith.subf %0, %12 : vector<64x128xf32>
    %cst_4 = arith.constant 9.99999997E-7 : f32
    %14 = vector.broadcast %cst_4 : f32 to vector<64x1xf32>
    %15 = arith.addf %11, %14 : vector<64x1xf32>
    %16 = math.rsqrt %15 : vector<64x1xf32>
    %17 = vector.broadcast %16 : vector<64x1xf32> to vector<64x128xf32>
    %18 = arith.mulf %13, %17 : vector<64x128xf32>
    %c0_5 = arith.constant 0 : index
    %c0_6 = arith.constant 0 : index
    %19 = vector.load %arg2[%c0_5, %c0_6] : memref<1x128xf32, #tpu.memory_space<vmem>>, vector<1x128xf32>
    %20 = vector.broadcast %19 : vector<1x128xf32> to vector<64x128xf32>
    %21 = arith.mulf %18, %20 : vector<64x128xf32>
    %c0_7 = arith.constant 0 : index
    %c0_8 = arith.constant 0 : index
    %22 = vector.load %arg3[%c0_7, %c0_8] : memref<1x128xf32, #tpu.memory_space<vmem>>, vector<1x128xf32>
    %23 = vector.broadcast %22 : vector<1x128xf32> to vector<64x128xf32>
    %24 = arith.addf %21, %23 : vector<64x128xf32>
    %c0_9 = arith.constant 0 : index
    %c0_10 = arith.constant 0 : index
    %25 = vector.load %arg4[%c0_9, %c0_10] : memref<40x64xf32, #tpu.memory_space<vmem>>, vector<40x64xf32>
    %cst_11 = arith.constant dense<0.000000e+00> : vector<40x128xf32>
    %26 = tpu.matmul %25, %24, %cst_11 {dimension_numbers = #tpu.dot_dimension_numbers<[1], [0], [0], [1], [0, 0, 1, 1], [], []>} : vector<40x64xf32>, vector<64x128xf32>, vector<40x128xf32> -> vector<40x128xf32>
    %c0_12 = arith.constant 0 : index
    %c0_13 = arith.constant 0 : index
    %27 = vector.load %arg5[%c0_12, %c0_13] : memref<40x64xf32, #tpu.memory_space<vmem>>, vector<40x64xf32>
    %cst_14 = arith.constant dense<0.000000e+00> : vector<40x128xf32>
    %28 = tpu.matmul %27, %24, %cst_14 {dimension_numbers = #tpu.dot_dimension_numbers<[1], [0], [0], [1], [0, 0, 1, 1], [], []>} : vector<40x64xf32>, vector<64x128xf32>, vector<40x128xf32> -> vector<40x128xf32>
    %c0_15 = arith.constant 0 : index
    %c0_16 = arith.constant 0 : index
    %29 = vector.load %arg6[%c0_15, %c0_16] : memref<40x128xf32, #tpu.memory_space<vmem>>, vector<40x128xf32>
    %c0_17 = arith.constant 0 : index
    %c0_18 = arith.constant 0 : index
    %30 = vector.load %arg7[%c0_17, %c0_18] : memref<40x128xf32, #tpu.memory_space<vmem>>, vector<40x128xf32>
    %31 = arith.mulf %26, %29 : vector<40x128xf32>
    %32 = arith.mulf %28, %30 : vector<40x128xf32>
    %33 = arith.subf %31, %32 : vector<40x128xf32>
    %34 = arith.mulf %26, %30 : vector<40x128xf32>
    %35 = arith.mulf %28, %29 : vector<40x128xf32>
    %36 = arith.addf %34, %35 : vector<40x128xf32>
    %c0_19 = arith.constant 0 : index
    %c0_20 = arith.constant 0 : index
    %37 = vector.load %arg8[%c0_19, %c0_20] : memref<64x40xf32, #tpu.memory_space<vmem>>, vector<64x40xf32>
    %cst_21 = arith.constant dense<0.000000e+00> : vector<64x128xf32>
    %38 = tpu.matmul %37, %33, %cst_21 {dimension_numbers = #tpu.dot_dimension_numbers<[1], [0], [0], [1], [0, 0, 1, 1], [], []>} : vector<64x40xf32>, vector<40x128xf32>, vector<64x128xf32> -> vector<64x128xf32>
    %c0_22 = arith.constant 0 : index
    %c0_23 = arith.constant 0 : index
    %39 = vector.load %arg9[%c0_22, %c0_23] : memref<64x40xf32, #tpu.memory_space<vmem>>, vector<64x40xf32>
    %cst_24 = arith.constant dense<0.000000e+00> : vector<64x128xf32>
    %40 = tpu.matmul %39, %36, %cst_24 {dimension_numbers = #tpu.dot_dimension_numbers<[1], [0], [0], [1], [0, 0, 1, 1], [], []>} : vector<64x40xf32>, vector<40x128xf32>, vector<64x128xf32> -> vector<64x128xf32>
    %41 = arith.addf %38, %40 : vector<64x128xf32>
    %cst_25 = arith.constant dense<0.000000e+00> : vector<64xf32>
    %42 = vector.multi_reduction <add>, %41, %cst_25 [1] : vector<64x128xf32> to vector<64xf32>
    %43 = vector.shape_cast %42 : vector<64xf32> to vector<64x1xf32>
    %cst_26 = arith.constant 1.280000e+02 : f32
    %44 = vector.broadcast %cst_26 : f32 to vector<64x1xf32>
    %45 = arith.divf %43, %44 : vector<64x1xf32>
    %46 = vector.broadcast %45 : vector<64x1xf32> to vector<64x128xf32>
    %47 = arith.subf %41, %46 : vector<64x128xf32>
    %48 = arith.mulf %47, %47 : vector<64x128xf32>
    %cst_27 = arith.constant dense<0.000000e+00> : vector<64xf32>
    %49 = vector.multi_reduction <add>, %48, %cst_27 [1] : vector<64x128xf32> to vector<64xf32>
    %50 = vector.shape_cast %49 : vector<64xf32> to vector<64x1xf32>
    %cst_28 = arith.constant 1.280000e+02 : f32
    %51 = vector.broadcast %cst_28 : f32 to vector<64x1xf32>
    %52 = arith.divf %50, %51 : vector<64x1xf32>
    %53 = vector.broadcast %45 : vector<64x1xf32> to vector<64x128xf32>
    %54 = arith.subf %41, %53 : vector<64x128xf32>
    %cst_29 = arith.constant 9.99999997E-7 : f32
    %55 = vector.broadcast %cst_29 : f32 to vector<64x1xf32>
    %56 = arith.addf %52, %55 : vector<64x1xf32>
    %57 = math.rsqrt %56 : vector<64x1xf32>
    %58 = vector.broadcast %57 : vector<64x1xf32> to vector<64x128xf32>
    %59 = arith.mulf %54, %58 : vector<64x128xf32>
    %c0_30 = arith.constant 0 : index
    %c0_31 = arith.constant 0 : index
    %60 = vector.load %arg10[%c0_30, %c0_31] : memref<1x128xf32, #tpu.memory_space<vmem>>, vector<1x128xf32>
    %61 = vector.broadcast %60 : vector<1x128xf32> to vector<64x128xf32>
    %62 = arith.mulf %59, %61 : vector<64x128xf32>
    %c0_32 = arith.constant 0 : index
    %c0_33 = arith.constant 0 : index
    %63 = vector.load %arg11[%c0_32, %c0_33] : memref<1x128xf32, #tpu.memory_space<vmem>>, vector<1x128xf32>
    %64 = vector.broadcast %63 : vector<1x128xf32> to vector<64x128xf32>
    %65 = arith.addf %62, %64 : vector<64x128xf32>
    %66 = arith.truncf %65 : vector<64x128xf32> to vector<64x128xbf16>
    %c0_34 = arith.constant 0 : index
    %c0_35 = arith.constant 0 : index
    %67 = vector.load %arg12[%c0_34, %c0_35] : memref<128x512xbf16, #tpu.memory_space<vmem>>, vector<128x512xbf16>
    %cst_36 = arith.constant dense<0.000000e+00> : vector<64x512xf32>
    %68 = tpu.matmul %66, %67, %cst_36 {dimension_numbers = #tpu.dot_dimension_numbers<[1], [0], [0], [1], [0, 0, 1, 1], [], []>} : vector<64x128xbf16>, vector<128x512xbf16>, vector<64x512xf32> -> vector<64x512xf32>
    %c0_37 = arith.constant 0 : index
    %c0_38 = arith.constant 0 : index
    %69 = vector.load %arg13[%c0_37, %c0_38] : memref<1x512xf32, #tpu.memory_space<vmem>>, vector<1x512xf32>
    %70 = vector.broadcast %69 : vector<1x512xf32> to vector<64x512xf32>
    %71 = arith.addf %68, %70 : vector<64x512xf32>
    %cst_39 = arith.constant 5.000000e-01 : f32
    %72 = vector.broadcast %cst_39 : f32 to vector<64x512xf32>
    %73 = arith.mulf %72, %71 : vector<64x512xf32>
    %cst_40 = arith.constant 0.707106769 : f32
    %74 = vector.broadcast %cst_40 : f32 to vector<64x512xf32>
    %75 = arith.mulf %71, %74 : vector<64x512xf32>
    %76 = math.erf %75 : vector<64x512xf32>
    %cst_41 = arith.constant 1.000000e+00 : f32
    %77 = vector.broadcast %cst_41 : f32 to vector<64x512xf32>
    %78 = arith.addf %77, %76 : vector<64x512xf32>
    %79 = arith.mulf %73, %78 : vector<64x512xf32>
    %80 = arith.truncf %79 : vector<64x512xf32> to vector<64x512xbf16>
    %c0_42 = arith.constant 0 : index
    %c0_43 = arith.constant 0 : index
    %81 = vector.load %arg14[%c0_42, %c0_43] : memref<512x128xbf16, #tpu.memory_space<vmem>>, vector<512x128xbf16>
    %cst_44 = arith.constant dense<0.000000e+00> : vector<64x128xf32>
    %82 = tpu.matmul %80, %81, %cst_44 {dimension_numbers = #tpu.dot_dimension_numbers<[1], [0], [0], [1], [0, 0, 1, 1], [], []>} : vector<64x512xbf16>, vector<512x128xbf16>, vector<64x128xf32> -> vector<64x128xf32>
    %c0_45 = arith.constant 0 : index
    %c0_46 = arith.constant 0 : index
    %83 = vector.load %arg15[%c0_45, %c0_46] : memref<1x128xf32, #tpu.memory_space<vmem>>, vector<1x128xf32>
    %84 = vector.broadcast %83 : vector<1x128xf32> to vector<64x128xf32>
    %85 = arith.addf %82, %84 : vector<64x128xf32>
    %86 = arith.addf %0, %85 : vector<64x128xf32>
    %c0_47 = arith.constant 0 : index
    %c0_48 = arith.constant 0 : index
    %87 = vector.load %arg16[%c0_47, %c0_48] : memref<64x128xf32, #tpu.memory_space<vmem>>, vector<64x128xf32>
    tpu.vector_store %arg16[%c0_47, %c0_48], %86 {strides = array<i32>} : memref<64x128xf32, #tpu.memory_space<vmem>>, vector<64x128xf32>,
    return
  }
  func.func @transform_0(%arg0: i32) -> (i32, i32) {
    %c0_i32 = arith.constant 0 : i32
    %c0_i32_0 = arith.constant 0 : i32
    return %arg0, %c0_i32 : i32, i32
  }
  func.func @transform_1(%arg0: i32) -> (i32, i32) {
    %c0_i32 = arith.constant 0 : i32
    %c0_i32_0 = arith.constant 0 : i32
    %c0_i32_1 = arith.constant 0 : i32
    return %c0_i32, %c0_i32_0 : i32, i32
  }
  func.func @transform_2(%arg0: i32) -> (i32, i32) {
    %c0_i32 = arith.constant 0 : i32
    %c0_i32_0 = arith.constant 0 : i32
    %c0_i32_1 = arith.constant 0 : i32
    return %c0_i32, %c0_i32_0 : i32, i32
  }
  func.func @transform_3(%arg0: i32) -> (i32, i32) {
    %c0_i32 = arith.constant 0 : i32
    %c0_i32_0 = arith.constant 0 : i32
    %c0_i32_1 = arith.constant 0 : i32
    return %c0_i32, %c0_i32_0 : i32, i32
  }
  func.func @transform_4(%arg0: i32) -> (i32, i32) {
    %c0_i32 = arith.constant 0 : i32
    %c0_i32_0 = arith.constant 0 : i32
    %c0_i32_1 = arith.constant 0 : i32
    return %c0_i32, %c0_i32_0 : i32, i32
  }
  func.func @transform_5(%arg0: i32) -> (i32, i32) {
    %c0_i32 = arith.constant 0 : i32
    %c0_i32_0 = arith.constant 0 : i32
    %c0_i32_1 = arith.constant 0 : i32
    return %c0_i32, %c0_i32_0 : i32, i32
  }
  func.func @transform_6(%arg0: i32) -> (i32, i32) {
    %c0_i32 = arith.constant 0 : i32
    %c0_i32_0 = arith.constant 0 : i32
    %c0_i32_1 = arith.constant 0 : i32
    return %c0_i32, %c0_i32_0 : i32, i32
  }
  func.func @transform_7(%arg0: i32) -> (i32, i32) {
    %c0_i32 = arith.constant 0 : i32
    %c0_i32_0 = arith.constant 0 : i32
    %c0_i32_1 = arith.constant 0 : i32
    return %c0_i32, %c0_i32_0 : i32, i32
  }
  func.func @transform_8(%arg0: i32) -> (i32, i32) {
    %c0_i32 = arith.constant 0 : i32
    %c0_i32_0 = arith.constant 0 : i32
    %c0_i32_1 = arith.constant 0 : i32
    return %c0_i32, %c0_i32_0 : i32, i32
  }
  func.func @transform_9(%arg0: i32) -> (i32, i32) {
    %c0_i32 = arith.constant 0 : i32
    %c0_i32_0 = arith.constant 0 : i32
    %c0_i32_1 = arith.constant 0 : i32
    return %c0_i32, %c0_i32_0 : i32, i32
  }
  func.func @transform_10(%arg0: i32) -> (i32, i32) {
    %c0_i32 = arith.constant 0 : i32
    %c0_i32_0 = arith.constant 0 : i32
    %c0_i32_1 = arith.constant 0 : i32
    return %c0_i32, %c0_i32_0 : i32, i32
  }
  func.func @transform_11(%arg0: i32) -> (i32, i32) {
    %c0_i32 = arith.constant 0 : i32
    %c0_i32_0 = arith.constant 0 : i32
    %c0_i32_1 = arith.constant 0 : i32
    return %c0_i32, %c0_i32_0 : i32, i32
  }
  func.func @transform_12(%arg0: i32) -> (i32, i32) {
    %c0_i32 = arith.constant 0 : i32
    %c0_i32_0 = arith.constant 0 : i32
    %c0_i32_1 = arith.constant 0 : i32
    return %c0_i32, %c0_i32_0 : i32, i32
  }
  func.func @transform_13(%arg0: i32) -> (i32, i32) {
    %c0_i32 = arith.constant 0 : i32
    %c0_i32_0 = arith.constant 0 : i32
    %c0_i32_1 = arith.constant 0 : i32
    return %c0_i32, %c0_i32_0 : i32, i32
  }
  func.func @transform_14(%arg0: i32) -> (i32, i32) {
    %c0_i32 = arith.constant 0 : i32
    %c0_i32_0 = arith.constant 0 : i32
    %c0_i32_1 = arith.constant 0 : i32
    return %c0_i32, %c0_i32_0 : i32, i32
  }
  func.func @transform_15(%arg0: i32) -> (i32, i32) {
    %c0_i32 = arith.constant 0 : i32
    %c0_i32_0 = arith.constant 0 : i32
    return %arg0, %c0_i32 : i32, i32
  }
}

module attributes {stable_mosaic.version = 11 : i64} {
  func.func @final_norm_mean_kernel(%arg0: i32, %arg1: memref<64x128xf32, #tpu.memory_space<vmem>>, %arg2: memref<1x128xf32, #tpu.memory_space<vmem>>, %arg3: memref<1x128xf32, #tpu.memory_space<vmem>>, %arg4: memref<1x1x128xf32, #tpu.memory_space<vmem>>) attributes {dimension_semantics = [#tpu.dimension_semantics<parallel>], iteration_bounds = array<i64: 2>, scalar_prefetch = 0 : i64, scratch_operands = 0 : i64, tpu.core_type = #tpu.core_type<tc>, window_params = [{transform_indices = @transform_0, window_bounds = array<i64: 64, 128>}, {pipeline_mode = #tpu.pipeline_mode<synchronous>, transform_indices = @transform_1, window_bounds = array<i64: 1, 128>}, {pipeline_mode = #tpu.pipeline_mode<synchronous>, transform_indices = @transform_2, window_bounds = array<i64: 1, 128>}, {transform_indices = @transform_3, window_bounds = array<i64: 1, 1, 128>}]} {
    %c0 = arith.constant 0 : index
    %c0_0 = arith.constant 0 : index
    %0 = vector.load %arg1[%c0, %c0_0] : memref<64x128xf32, #tpu.memory_space<vmem>>, vector<64x128xf32>
    %cst = arith.constant dense<0.000000e+00> : vector<64xf32>
    %1 = vector.multi_reduction <add>, %0, %cst [1] : vector<64x128xf32> to vector<64xf32>
    %2 = vector.shape_cast %1 : vector<64xf32> to vector<64x1xf32>
    %cst_1 = arith.constant 1.280000e+02 : f32
    %3 = vector.broadcast %cst_1 : f32 to vector<64x1xf32>
    %4 = arith.divf %2, %3 : vector<64x1xf32>
    %5 = vector.broadcast %4 : vector<64x1xf32> to vector<64x128xf32>
    %6 = arith.subf %0, %5 : vector<64x128xf32>
    %7 = arith.mulf %6, %6 : vector<64x128xf32>
    %cst_2 = arith.constant dense<0.000000e+00> : vector<64xf32>
    %8 = vector.multi_reduction <add>, %7, %cst_2 [1] : vector<64x128xf32> to vector<64xf32>
    %9 = vector.shape_cast %8 : vector<64xf32> to vector<64x1xf32>
    %cst_3 = arith.constant 1.280000e+02 : f32
    %10 = vector.broadcast %cst_3 : f32 to vector<64x1xf32>
    %11 = arith.divf %9, %10 : vector<64x1xf32>
    %12 = vector.broadcast %4 : vector<64x1xf32> to vector<64x128xf32>
    %13 = arith.subf %0, %12 : vector<64x128xf32>
    %cst_4 = arith.constant 9.99999997E-7 : f32
    %14 = vector.broadcast %cst_4 : f32 to vector<64x1xf32>
    %15 = arith.addf %11, %14 : vector<64x1xf32>
    %16 = math.rsqrt %15 : vector<64x1xf32>
    %17 = vector.broadcast %16 : vector<64x1xf32> to vector<64x128xf32>
    %18 = arith.mulf %13, %17 : vector<64x128xf32>
    %c0_5 = arith.constant 0 : index
    %c0_6 = arith.constant 0 : index
    %19 = vector.load %arg2[%c0_5, %c0_6] : memref<1x128xf32, #tpu.memory_space<vmem>>, vector<1x128xf32>
    %20 = vector.broadcast %19 : vector<1x128xf32> to vector<64x128xf32>
    %21 = arith.mulf %18, %20 : vector<64x128xf32>
    %c0_7 = arith.constant 0 : index
    %c0_8 = arith.constant 0 : index
    %22 = vector.load %arg3[%c0_7, %c0_8] : memref<1x128xf32, #tpu.memory_space<vmem>>, vector<1x128xf32>
    %23 = vector.broadcast %22 : vector<1x128xf32> to vector<64x128xf32>
    %24 = arith.addf %21, %23 : vector<64x128xf32>
    %cst_9 = arith.constant dense<0.000000e+00> : vector<128xf32>
    %25 = vector.multi_reduction <add>, %24, %cst_9 [0] : vector<64x128xf32> to vector<128xf32>
    %26 = vector.shape_cast %25 : vector<128xf32> to vector<1x128xf32>
    %cst_10 = arith.constant 6.400000e+01 : f32
    %27 = vector.broadcast %cst_10 : f32 to vector<1x128xf32>
    %28 = arith.divf %26, %27 : vector<1x128xf32>
    %c0_11 = arith.constant 0 : index
    %c0_12 = arith.constant 0 : index
    %c0_13 = arith.constant 0 : index
    %29 = vector.load %arg4[%c0_11, %c0_12, %c0_13] : memref<1x1x128xf32, #tpu.memory_space<vmem>>, vector<1x1x128xf32>
    %30 = vector.shape_cast %29 : vector<1x1x128xf32> to vector<1x128xf32>
    %31 = vector.shape_cast %28 : vector<1x128xf32> to vector<1x1x128xf32>
    tpu.vector_store %arg4[%c0_11, %c0_12, %c0_13], %31 {strides = array<i32>} : memref<1x1x128xf32, #tpu.memory_space<vmem>>, vector<1x1x128xf32>,
    return
  }
  func.func @transform_0(%arg0: i32) -> (i32, i32) {
    %c0_i32 = arith.constant 0 : i32
    %c0_i32_0 = arith.constant 0 : i32
    return %arg0, %c0_i32 : i32, i32
  }
  func.func @transform_1(%arg0: i32) -> (i32, i32) {
    %c0_i32 = arith.constant 0 : i32
    %c0_i32_0 = arith.constant 0 : i32
    %c0_i32_1 = arith.constant 0 : i32
    return %c0_i32, %c0_i32_0 : i32, i32
  }
  func.func @transform_2(%arg0: i32) -> (i32, i32) {
    %c0_i32 = arith.constant 0 : i32
    %c0_i32_0 = arith.constant 0 : i32
    %c0_i32_1 = arith.constant 0 : i32
    return %c0_i32, %c0_i32_0 : i32, i32
  }
  func.func @transform_3(%arg0: i32) -> (i32, i32, i32) {
    %c0_i32 = arith.constant 0 : i32
    %c0_i32_0 = arith.constant 0 : i32
    %c0_i32_1 = arith.constant 0 : i32
    return %arg0, %c0_i32, %c0_i32_0 : i32, i32, i32
  }
}

</mosaic_0001>

<bundles_post_ra>
// kernel: gfnet_forward_eval.7
= control target key start
LH: loop header
LB: loop body
LE: loop exit
PB: predicated region body
PF: predicated region fallthrough
CT: control target
= control target key end

     0   :  { %8 = vsyncpa [#allocation3], 0  ;;  %s677_s0 = inlined_call_operand.vmem [shape: f32[128,128], index: 0, kind: input, shape index: {}]   ;;  %s678_s1 = inlined_call_operand.vmem [shape: f32[1,128], index: 1, kind: input, shape index: {}]   ;;  %s679_s2 = inlined_call_operand.vmem [shape: f32[1,128], index: 2, kind: input, shape index: {}]   ;;  %s680_s3 = inlined_call_operand.hbm [shape: f32[2,1,128], index: 3, kind: output, shape index: {}]  }
   0x1   :  { %10 = vsyncpa [#allocation3 + $0x1], 0  ;;  %s532_s12 = smov 0   ;;  %s534_s13 = smov 0  }
   0x2   :  { %s536_s14 = smov 0   ;;  %s538_s15 = smov 0  }
   0x3 LB: > { %s553_s16 = sadd.s32 4294967295, %s509_s15   ;;  %s381_s17 = sadd.s32 4294967294, %s509_s15   ;;  %s509_s15 = sphi %s538_s15, %s686_s15   ;;  %s505_s14 = sphi %s536_s14, %s685_s14   ;;  %s501_s13 = sphi %s534_s13, %s684_s13   ;;  %s497_s12 = sphi %s532_s12, %s683_s12  }
   0x4   : > { %s557_s18 = sadd.s32 1, %s509_s15   ;;  %s91_s19 = sadd.s32 1, %s505_s14 }
   0x5   : > { %s88_s20 = ssub.s32 %s509_s15, %s557_s18  ;;  %p101_p0 = scmp.ne.s32.totalorder %s505_s14, %s501_s13 }
   0x6   : > { %p89_p1 = scmp.eq.s32.totalorder %s88_s20, 0  ;;  %p102_p2 = scmp.eq.s32.totalorder %s553_s16, 1 }
   0x7   : > { %p107_p3 = scmp.ne.s32.totalorder %s501_s13, %s497_s12  ;;  %p108_p4 = scmp.eq.s32.totalorder %s381_s17, 1 }
   0x8   : > { %s568_s21 = scalar_select %p89_p1, %s505_s14, %s91_s19  }
   0x9   : > { %p570_p5 = por %p102_p2, %p101_p0  ;;  %p574_p6 = por %p108_p4, %p107_p3 }
   0xa   : > { %p384_p7 = scmp.ge.s32.totalorder %s509_s15, 1  ;;  %p141_p8 = scmp.lt.s32.totalorder %s509_s15, 3 }
   0xc   : > { %p142_p9 = pnand %p384_p7, %p141_p8 }
   0xd   : > { %s385_s24 = sshll.u32 (!%p142_p9), %s553_s16, 3  ;;  %s162_s6 = sand.u32 (!%p142_p9), 1, %s501_s13  }
   0xe   : > { %145 = sbr.rel (%p142_p9) target bundleno = 382 (0x17e), region = 32  ;;  %p165_p10 = scmp.lt.s32.totalorder (!%p142_p9), %s385_s24, 15 }
   0xf   : > { %s389_s7 = sshll.u32 (!%p142_p9), %s553_s16, 4  ;;  %s163_s8 = scalar_lea.vmem (!%p142_p9), [#allocation2], %s162_s6 }
  0x10   : > { %s326_s9 = sshll.u32 (!%p142_p9), %s163_s8, 4  ;;  %s635_s17 = scalar_lea.hbm (!%p142_p9), %s680_s3, %s389_s7  ;;  %s637_s9 = int_to_ptr.vmem [resolvable:$true] %s326_s9 }
  0x11   : > { %s314_s19 = scalar_lea.sflag (!%p142_p9), [#allocation3], %s162_s6  ;;  %s447_s20 = scalar_lea.vmem (!%p142_p9), %s637_s9, 16 }
  0x12   : > { %p448_p11 = scmp.ne.s32.totalorder (!%p142_p9), %s637_s9, %s447_s20  ;;  %s511_s16 = smov (!%p142_p9), [#allocation2]  }
  0x14   : > { %p449_p12 = pnand (!%p142_p9), %p448_p11, %p570_p5 }
  0x15   : > { %s688_s24 = smov (!%p165_p10, %s385_s24), 15 }
  0x16   : > { %s386_s25 = sshll.u32 %s688_s24, 3  ;;  %p450_p13 = pneg %p449_p12 }
  0x17   : > { %s168_s28 = scalar_lea.vmem %s677_s0, %s386_s25  ;;  %s451_s24 = sshll.u32 %s511_s16, 4  ;;  %s452_s24 = int_to_ptr.vmem [resolvable:$false] %s451_s24 }
  0x18   : > { %v170_v0 = vld [vmem:[%s168_s28] sm:$0xff]  ;;  %v172_v1 = vld [vmem:[%s168_s28 + $0x10] sm:$0xff]  ;;  %v171_v2 = vld [vmem:[%s168_s28 + $0x8] sm:$0xff]  ;;  %s453_s25 = scalar_lea.vmem %s452_s24, 32  ;;  %p454_p0 = scmp.lt.s32.totalorder %s637_s9, %s452_s24 }
  0x19   : > { %178 = vadd.xlane.f32.xlu0 %v170_v0  ;;  %182 = vadd.xlane.f32.xlu1 %v172_v1  ;;  %v173_v3 = vld [vmem:[%s168_s28 + $0x18] sm:$0xff]  ;;  %v174_v4 = vld [vmem:[%s168_s28 + $0x20] sm:$0xff]  ;;  %v175_v5 = vld [vmem:[%s168_s28 + $0x28] sm:$0xff]  ;;  %p455_p1 = scmp.lt.s32.totalorder %s453_s25, %s447_s20 }
  0x1a   : > { %v176_v6 = vld [vmem:[%s168_s28 + $0x30] sm:$0xff]  ;;  %v177_v7 = vld [vmem:[%s168_s28 + $0x38] sm:$0xff] }
  0x1b   : > { %p456_p2 = por %p455_p1, %p454_p0 }
  0x1d   : > { %180 = vadd.xlane.f32.xlu0 %v171_v2  ;;  %184 = vadd.xlane.f32.xlu1 %v173_v3  ;;  %p457_p3 = pnand %p456_p2, %p450_p13 }
  0x21   : > { %186 = vadd.xlane.f32.xlu0 %v174_v4  ;;  %188 = vadd.xlane.f32.xlu1 %v175_v5 }
  0x25   : > { %190 = vadd.xlane.f32.xlu0 %v176_v6  ;;  %192 = vadd.xlane.f32.xlu1 %v177_v7 }
  0xa6   : > { %v179_v8 = vpop.xlane.xlu0 %178  ;;  %v183_v9 = vpop.xlane.xlu1 %182 }
  0xa7   : > { %v195_v10 = vmul.f32 0.0078125, %v179_v8  ;;  %v197_v11 = vmul.f32 0.0078125, %v183_v9 }
  0xa9   : > { %v584_v12 = vsub.f32 %v170_v0, %v195_v10  ;;  %v586_v13 = vsub.f32 %v172_v1, %v197_v11  ;;  %v387_v0 = vld [vmem:[%s678_s1] ss:$0 sm:$0xff] }
  0xaa   : > { %v181_v14 = vpop.xlane.xlu0 %180  ;;  %v185_v15 = vpop.xlane.xlu1 %184 }
  0xab   : > { %v196_v16 = vmul.f32 0.0078125, %v181_v14  ;;  %v211_v17 = vmul.f32 %v584_v12, %v584_v12  ;;  %v198_v18 = vmul.f32 0.0078125, %v185_v15  ;;  %v213_v21 = vmul.f32 %v586_v13, %v586_v13 }
  0xad   : > { %v590_v19 = vsub.f32 %v171_v2, %v196_v16  ;;  %219 = vadd.xlane.f32.xlu0 %v211_v17  ;;  %v592_v20 = vsub.f32 %v173_v3, %v198_v18 }
  0xae   : > { %v187_v22 = vpop.xlane.xlu0 %186  ;;  %v189_v23 = vpop.xlane.xlu1 %188 }
  0xaf   : > { %v199_v24 = vmul.f32 0.0078125, %v187_v22  ;;  %v212_v25 = vmul.f32 %v590_v19, %v590_v19  ;;  %v200_v26 = vmul.f32 0.0078125, %v189_v23  ;;  %v214_v29 = vmul.f32 %v592_v20, %v592_v20 }
  0xb1   : > { %v598_v27 = vsub.f32 %v174_v4, %v199_v24  ;;  %223 = vadd.xlane.f32.xlu0 %v213_v21  ;;  %221 = vadd.xlane.f32.xlu1 %v212_v25  ;;  %v600_v28 = vsub.f32 %v175_v5, %v200_v26 }
  0xb2   : > { %v191_v30 = vpop.xlane.xlu0 %190  ;;  %v193_v31 = vpop.xlane.xlu1 %192 }
  0xb3   : > { %v201_v32 = vmul.f32 0.0078125, %v191_v30  ;;  %v215_v33 = vmul.f32 %v598_v27, %v598_v27  ;;  %v202_v34 = vmul.f32 0.0078125, %v193_v31  ;;  %v216_v37 = vmul.f32 %v600_v28, %v600_v28 }
  0xb5   : > { %v606_v35 = vsub.f32 %v176_v6, %v201_v32  ;;  %225 = vadd.xlane.f32.xlu1 %v214_v29  ;;  %227 = vadd.xlane.f32.xlu0 %v215_v33  ;;  %v608_v36 = vsub.f32 %v177_v7, %v202_v34  ;;  %v388_v7 = vld [vmem:[%s679_s2] ss:$0 sm:$0xff] }
  0xb7   : > { %v217_v38 = vmul.f32 %v606_v35, %v606_v35  ;;  %v218_v39 = vmul.f32 %v608_v36, %v608_v36 }
  0xb9   : > { %229 = vadd.xlane.f32.xlu1 %v216_v37  ;;  %231 = vadd.xlane.f32.xlu0 %v217_v38 }
  0xbd   : > { %233 = vadd.xlane.f32.xlu1 %v218_v39 }
 0x13a   : > { %v220_v40 = vpop.xlane.xlu0 %219 }
 0x13b   : > { %v235_v41 = vmul.f32 0.0078125, %v220_v40 }
 0x13d   : > { %v243_v42 = vadd.f32 1e-06, %v235_v41 }
 0x13e   : > { %v222_v43 = vpop.xlane.xlu1 %221  ;;  %v224_v44 = vpop.xlane.xlu0 %223 }
 0x13f   : > { %431 = vrsqrt.f32 %v243_v42  ;;  %v236_v45 = vmul.f32 0.0078125, %v222_v43  ;;  %v237_v46 = vmul.f32 0.0078125, %v224_v44 }
 0x141   : > { %v244_v47 = vadd.f32 1e-06, %v236_v45  ;;  %v245_v48 = vadd.f32 1e-06, %v237_v46 }
 0x142   : > { %v226_v49 = vpop.xlane.xlu1 %225  ;;  %v228_v50 = vpop.xlane.xlu0 %227 }
 0x143   : > { %433 = vrsqrt.f32 %v244_v47  ;;  %v238_v51 = vmul.f32 0.0078125, %v226_v49  ;;  %v239_v52 = vmul.f32 0.0078125, %v228_v50 }
 0x144   : > { %435 = vrsqrt.f32 %v245_v48 }
 0x145   : > { %v246_v53 = vadd.f32 1e-06, %v238_v51  ;;  %v247_v54 = vadd.f32 1e-06, %v239_v52 }
 0x146   : > { %v230_v55 = vpop.xlane.xlu1 %229  ;;  %v232_v56 = vpop.xlane.xlu0 %231 }
 0x147   : > { %437 = vrsqrt.f32 %v246_v53  ;;  %v240_v57 = vmul.f32 0.0078125, %v230_v55  ;;  %v241_v58 = vmul.f32 0.0078125, %v232_v56 }
 0x148   : > { %439 = vrsqrt.f32 %v247_v54 }
 0x149   : > { %v432_v59 = vpop.eup %431  ;;  %v248_v60 = vadd.f32 1e-06, %v240_v57  ;;  %v249_v61 = vadd.f32 1e-06, %v241_v58 }
 0x14a   : > { %v259_v62 = vmul.f32 %v432_v59, %v584_v12  ;;  %v234_v63 = vpop.xlane.xlu1 %233 }
 0x14b   : > { %441 = vrsqrt.f32 %v248_v60  ;;  %v242_v1 = vmul.f32 0.0078125, %v234_v63 }
 0x14c   : > { %443 = vrsqrt.f32 %v249_v61  ;;  %v274_v5 = vmul.f32 %v387_v0, %v259_v62 }
 0x14d   : > { %v434_v2 = vpop.eup %433  ;;  %v250_v3 = vadd.f32 1e-06, %v242_v1 }
 0x14e   : > { %v436_v4 = vpop.eup %435  ;;  %v260_v6 = vmul.f32 %v434_v2, %v590_v19  ;;  %v289_v14 = vadd.f32 %v388_v7, %v274_v5 }
 0x14f   : > { %v261_v8 = vmul.f32 %v436_v4, %v586_v13  ;;  %445 = vrsqrt.f32 %v250_v3 }
 0x150   : > { %v275_v9 = vmul.f32 %v387_v0, %v260_v6 }
 0x151   : > { %v438_v10 = vpop.eup %437  ;;  %v276_v11 = vmul.f32 %v387_v0, %v261_v8 }
 0x152   : > { %v440_v12 = vpop.eup %439  ;;  %v290_v15 = vadd.f32 %v388_v7, %v275_v9  ;;  %v262_v16 = vmul.f32 %v438_v10, %v592_v20 }
 0x153   : > { %v263_v17 = vmul.f32 %v440_v12, %v598_v27  ;;  %v291_v21 = vadd.f32 %v388_v7, %v276_v11 }
 0x154   : > { %v297_v18 = vadd.f32 %v290_v15, %v289_v14  ;;  %v277_v19 = vmul.f32 %v387_v0, %v262_v16 }
 0x155   : > { %v442_v22 = vpop.eup %441  ;;  %v278_v23 = vmul.f32 %v387_v0, %v263_v17 }
 0x156   : > { %v444_v24 = vpop.eup %443  ;;  %v298_v25 = vadd.f32 %v297_v18, %v291_v21  ;;  %v292_v26 = vadd.f32 %v388_v7, %v277_v19  ;;  %v264_v13 = vmul.f32 %v442_v22, %v600_v28 }
 0x157   : > { %v265_v29 = vmul.f32 %v444_v24, %v606_v35  ;;  %v293_v31 = vadd.f32 %v388_v7, %v278_v23 }
 0x158   : > { %v299_v30 = vadd.f32 %v298_v25, %v292_v26  ;;  %v279_v32 = vmul.f32 %v387_v0, %v264_v13 }
 0x159   : > { %v446_v33 = vpop.eup %445  ;;  %v280_v20 = vmul.f32 %v387_v0, %v265_v29 }
 0x15a   : > { %v294_v27 = vadd.f32 %v388_v7, %v279_v32  ;;  %v266_v34 = vmul.f32 %v446_v33, %v608_v36  ;;  %v300_v37 = vadd.f32 %v299_v30, %v293_v31 }
 0x15b   : > { %v295_v38 = vadd.f32 %v388_v7, %v280_v20 }
 0x15c   : > { %v281_v39 = vmul.f32 %v387_v0, %v266_v34  ;;  %v301_v40 = vadd.f32 %v300_v37, %v294_v27 }
 0x15e   : > { %v296_v41 = vadd.f32 %v388_v7, %v281_v39  ;;  %v302_v42 = vadd.f32 %v301_v40, %v295_v38 }
 0x160   : > { %v303_v43 = vadd.f32 %v302_v42, %v296_v41 }
 0x162   : > { %v304_v28 = vrot.slane %v303_v43, 4 }
 0x164   : > { %v305_v44 = vadd.f32 %v304_v28, %v303_v43 }
 0x166   : > { %v306_v35 = vrot.slane %v305_v44, 2 }
 0x168   : > { %v307_v45 = vadd.f32 %v306_v35, %v305_v44 }
 0x16a   : > { %v308_v46 = vrot.slane %v307_v45, 1 }
 0x16c   : > { %v309_v47 = vadd.f32 %v308_v46, %v307_v45 }
 0x16e   : > { %v311_v48 = vmul.f32 0.015625, %v309_v47 }
 0x170   : > { %312 = vst [vmem:[%s163_s8] sm:$0x1] %v311_v48 }
 0x171   : > { %460 = shalt.err (!%p457_p3)
}
 0x172   : > { %s461_s26 = scalar_lea.hbm %s635_s17, 16  ;;  %s465_s29 = scalar_lea.hbm %s680_s3, 32 }
 0x173   : > { %p462_p4 = scmp.ne.s32.totalorder %s635_s17, %s461_s26  ;;  %p466_p9 = scmp.lt.u32.totalorder %s635_s17, %s680_s3 }
 0x174   : > { %p467_p10 = scmp.lt.u32.totalorder %s465_s29, %s461_s26  ;;  %p469_p12 = scmp.lt.u32.totalorder %s461_s26, %s635_s17 }
 0x175   : > { %p463_p7 = pnand %p462_p4, %p570_p5 }
 0x176   : > { %p468_p11 = por %p467_p10, %p466_p9 }
 0x177   : > { %p464_p8 = pneg %p463_p7 }
 0x178   : > { %p470_p13 = por %p469_p12, %p468_p11 }
 0x17a   : > { %p471_p0 = pnand %p470_p13, %p464_p8 }
 0x17c   : > { %474 = shalt.err (!%p471_p0)
}
 0x17d   : > { %392 = dma.vmem_to_hbm [thread:$0]  (%p570_p5), %s637_s9, 16, %s635_s17, %s314_s19  }
 0x17e PF: > { %p398_p1 = scmp.ge.s32.totalorder %s509_s15, 2  ;;  %s338_s5 = sand.u32 1, %s497_s12  }
 0x17f   : > { %s339_s6 = scalar_lea.sflag [#allocation3], %s338_s5 }
 0x180   : > { %p395_p2 = pnand %p398_p1, %p574_p6 }
 0x182   : > { %492 = dma.done.wait (!%p395_p2), %s339_s6, 16  }
 0x183   : > { %494 = vsyncadd (!%p395_p2), %s339_s6, 4294967280  ;;  %p13_p3 = scmp.ge.s32.totalorder %s557_s18, 4   ;;  %s683_s12 = smov %s501_s13 }
 0x184   : > { %s684_s13 = smov %s505_s14  ;;  %s685_s14 = smov %s568_s21 }
 0x185   : > { %s686_s15 = smov %s557_s18  ;;  %15 = sbr.rel (!%p13_p3) target bundleno = 3 (0x3), region = 67 }
 0x18c   :  { %343 = vsyncpa [#allocation3], 1 }
 0x18d   :  { %345 = vsyncpa [#allocation3 + $0x1], 1 }

// kernel: gfnet_forward_eval.4
= control target key start
LH: loop header
LB: loop body
LE: loop exit
PB: predicated region body
PF: predicated region fallthrough
CT: control target
= control target key end

     0   :  { %11 = vsyncpa [#allocation3], 0  ;;  %s1413_s0 = inlined_call_operand.vmem [shape: f32[128,48], index: 0, kind: input, shape index: {}]   ;;  %s1414_s1 = inlined_call_operand.vmem [shape: f32[3], index: 1, kind: input, shape index: {}]   ;;  %s1415_s2 = inlined_call_operand.vmem [shape: f32[3], index: 2, kind: input, shape index: {}]   ;;  %s1416_s3 = inlined_call_operand.vmem [shape: bf16[48,128], index: 3, kind: input, shape index: {}]   ;;  %s1417_s4 = inlined_call_operand.vmem [shape: f32[1,128], index: 4, kind: input, shape index: {}]   ;;  %s1418_s5 = inlined_call_operand.vmem [shape: f32[64,128], index: 5, kind: input, shape index: {}]   ;;  %s1419_s6 = inlined_call_operand.vmem [shape: f32[128,128], index: 6, kind: output, shape index: {}]  }
   0x1   :  { %12 = vsyncpa [#allocation5], 0  ;;  %s1026_s21 = smov 0  }
   0x2 LB: > { %s833_s22 = sadd.s32 4294967295, %s987_s21   ;;  %p835_p0 = scmp.ge.s32.totalorder %s987_s21, 1  ;;  %s987_s21 = sphi %s1026_s21, %s18_s21  }
   0x3   : > { %p180_p1 = scmp.lt.s32.totalorder %s987_s21, 3  ;;  %s193_s25 = sshll.u32 %s1414_s1, 4  ;;  %s194_s25 = int_to_ptr.vmem [resolvable:$true] %s193_s25 }
   0x4   : > { %p1043_p3 = scmp.eq.s32.totalorder %s833_s22, 0  ;;  %s204_s30 = sshll.u32 %s1415_s2, 4  ;;  %s205_s30 = int_to_ptr.vmem [resolvable:$true] %s204_s30 }
   0x5   : > { %p1037_p2 = pnand %p835_p0, %p180_p1  ;;  %s943_s8 = scalar_lea.vmem %s194_s25, 16 }
   0x6   : > { %s1424_s27 = scalar_select %p1043_p3, 1, 0 }
   0x7   : > { %s1423_s26 = scalar_select %p1037_p2, 1, 0 }
   0x8   : > { %p913_p4 = pneg %p1037_p2  ;;  %p944_p6 = scmp.ne.s32.totalorder %s194_s25, %s943_s8 }
   0x9   : > { %p951_p10 = scmp.lt.s32.totalorder %s194_s25, %s194_s25  ;;  %p952_p11 = scmp.lt.s32.totalorder %s943_s8, %s943_s8 }
   0xa   : > { %p1054_p5 = pnand %p1043_p3, %p913_p4 }
   0xb   : > { %p953_p12 = por %p952_p11, %p951_p10 }
   0xc   : > { %p945_p7 = pneg %p1054_p5 }
   0xe   : > { %p946_p8 = pnand %p945_p7, %p944_p6 }
  0x10   : > { %p947_p9 = pneg %p946_p8 }
  0x12   : > { %p954_p13 = pnand %p953_p12, %p947_p9 }
  0x14   : > { %957 = shalt.err (!%p954_p13)
}
  0x15   : > { %s989_s9 = smov [#allocation2]   ;;  %s958_s10 = scalar_lea.vmem %s205_s30, 16 }
  0x16   : > { %916 = dma.vmem_to_smem (!%p1054_p5), %s194_s25, 16, %s989_s9, [#allocation3]  }
  0x17   : > { %p959_p0 = scmp.ne.s32.totalorder %s205_s30, %s958_s10  ;;  %p966_p3 = scmp.lt.s32.totalorder %s205_s30, %s205_s30 }
  0x18   : > { %p967_p2 = scmp.lt.s32.totalorder %s958_s10, %s958_s10 }
  0x19   : > { %p961_p1 = pnand %p959_p0, %p945_p7 }
  0x1a   : > { %p968_p6 = por %p967_p2, %p966_p3 }
  0x1b   : > { %p962_p4 = pneg %p961_p1 }
  0x1d   : > { %p969_p8 = pnand %p968_p6, %p962_p4 }
  0x1f   : > { %972 = shalt.err (!%p969_p8)
}
  0x20   : > { %s990_s11 = smov [#allocation4]   ;;  %p1426_p9 = scmp.ne.s32.totalorder %s1423_s26, 0 }
  0x21   : > { %919 = dma.vmem_to_smem (!%p1054_p5), %s205_s30, 16, %s990_s11, [#allocation5]  }
  0x22   : > { %235 = sbr.rel (%p1426_p9) target bundleno = 1387 (0x56b), region = 44  ;;  %p1427_p10 = scmp.ne.s32.totalorder (!%p1426_p9), %s1424_s27, 0 }
  0x29   : > { %978 = dma.done.wait (%p1427_p10), [#allocation3], 16  }
  0x2a   : > { %980 = vsyncadd (%p1427_p10), [#allocation3], 4294967280 }
  0x2b   : > { %982 = dma.done.wait (%p1427_p10), [#allocation5], 16  }
  0x2c   : > { %984 = vsyncadd (%p1427_p10), [#allocation5], 4294967280 }
  0x2d   : > { %245 = sfence }
  0x2e   : > { %s842_s12 = sshll.u32 %s833_s22, 3  ;;  %v291_v0 = vlaneseq  ;;  %vm304_vm1 = vcmask 392192   ;;  %s384_s29 = sld [smem:[#allocation2]] }
  0x2f   : > { %p271_p2 = scmp.lt.s32.totalorder %s842_s12, 15  ;;  %s392_s7 = sld [smem:[#allocation4]] }
  0x30   : > { %v1076_v1 = vand.u32 127, %v291_v0  ;;  %s846_s8 = sld [smem:[#allocation2 + $0x1]] }
  0x31   : > { %s1433_s12 = smov (!%p271_p2, %s842_s12), 15  ;;  %s847_s10 = sld [smem:[#allocation4 + $0x1]] }
  0x32   : > { %s843_s13 = sshll.u32 %s1433_s12, 3  ;;  %vm294_vm0 = vcmp.lt.s32.totalorder %v1076_v1, 16  ;;  %vm397_vm2 = vcmp.ge.s32.totalorder %v1076_v1, 16  ;;  %vm398_vm3 = vcmp.lt.s32.totalorder %v1076_v1, 32  ;;  %vm500_vm5 = vcmp.ge.s32.totalorder %v1076_v1, 32 }
  0x33   : > { %s274_s16 = scalar_lea.vmem %s1413_s0, %s843_s13  ;;  %vm1137_vm4 = vmand %vm397_vm2, %vm398_vm3  ;;  %vm501_vm6 = vcmp.lt.s32.totalorder %v1076_v1, 48 }
  0x34   : > { %v1087_v2 = vld [vmem:[%s274_s16] sm:$0xff]  ;;  %v1089_v3 = vld [vmem:[%s274_s16 + $0x8] sm:$0xff]  ;;  %v1091_v4 = vld [vmem:[%s274_s16 + $0x10] sm:$0xff] }
  0x35   : > { %v1093_v5 = vld [vmem:[%s274_s16 + $0x18] sm:$0xff]  ;;  %v1095_v6 = vld [vmem:[%s274_s16 + $0x20] sm:$0xff]  ;;  %v296_v7 = vsel %vm294_vm0, %v1087_v2, 0.0  ;;  %v297_v8 = vsel %vm294_vm0, %v1089_v3, 0.0  ;;  %v298_v9 = vsel %vm294_vm0, %v1091_v4, 0.0  ;;  %v1110_v12 = vld [vmem:[%s274_s16 + $0x28] sm:$0xff] }
  0x36   : > { %v299_v10 = vsel %vm294_vm0, %v1093_v5, 0.0  ;;  %v305_v11 = vsel %vm304_vm1, %v296_v7, 0.0  ;;  %v306_v13 = vsel %vm304_vm1, %v297_v8, 0.0  ;;  %v308_v14 = vsel %vm304_vm1, %v298_v9, 0.0  ;;  %v1117_v17 = vld [vmem:[%s274_s16 + $0x30] sm:$0xff]  ;;  %v1123_v21 = vld [vmem:[%s274_s16 + $0x38] sm:$0xff]  ;;  %vm1212_vm7 = vmand %vm500_vm5, %vm501_vm6 }
  0x37   : > { %v300_v15 = vsel %vm294_vm0, %v1095_v6, 0.0  ;;  %v307_v16 = vadd.f32 %v306_v13, %v305_v11  ;;  %v310_v18 = vsel %vm304_vm1, %v299_v10, 0.0  ;;  %v301_v19 = vsel %vm294_vm0, %v1110_v12, 0.0 }
  0x38   : > { %v312_v22 = vsel %vm304_vm1, %v300_v15, 0.0  ;;  %v302_v23 = vsel %vm294_vm0, %v1117_v17, 0.0  ;;  %v314_v25 = vsel %vm304_vm1, %v301_v19, 0.0  ;;  %v303_v26 = vsel %vm294_vm0, %v1123_v21, 0.0 }
  0x39   : > { %v309_v20 = vadd.f32 %v308_v14, %v307_v16  ;;  %v316_v28 = vsel %vm304_vm1, %v302_v23, 0.0  ;;  %v318_v30 = vsel %vm304_vm1, %v303_v26, 0.0  ;;  %v400_v34 = vsel %vm1137_vm4, %v1087_v2, 0.0 }
  0x3a   : > { %v401_v35 = vsel %vm1137_vm4, %v1089_v3, 0.0  ;;  %v402_v36 = vsel %vm1137_vm4, %v1091_v4, 0.0  ;;  %v403_v37 = vsel %vm1137_vm4, %v1093_v5, 0.0  ;;  %v408_v38 = vsel %vm304_vm1, %v400_v34, 0.0 }
  0x3b   : > { %v311_v24 = vadd.f32 %v310_v18, %v309_v20  ;;  %v409_v39 = vsel %vm304_vm1, %v401_v35, 0.0  ;;  %v411_v40 = vsel %vm304_vm1, %v402_v36, 0.0  ;;  %v404_v41 = vsel %vm1137_vm4, %v1095_v6, 0.0 }
  0x3c   : > { %v410_v42 = vadd.f32 %v409_v39, %v408_v38  ;;  %v413_v43 = vsel %vm304_vm1, %v403_v37, 0.0  ;;  %v405_v44 = vsel %vm1137_vm4, %v1110_v12, 0.0  ;;  %v415_v46 = vsel %vm304_vm1, %v404_v41, 0.0 }
  0x3d   : > { %v313_v27 = vadd.f32 %v312_v22, %v311_v24  ;;  %v406_v47 = vsel %vm1137_vm4, %v1117_v17, 0.0  ;;  %v417_v49 = vsel %vm304_vm1, %v405_v44, 0.0  ;;  %v407_v50 = vsel %vm1137_vm4, %v1123_v21, 0.0 }
  0x3e   : > { %v412_v45 = vadd.f32 %v411_v40, %v410_v42  ;;  %v419_v52 = vsel %vm304_vm1, %v406_v47, 0.0  ;;  %v421_v54 = vsel %vm304_vm1, %v407_v50, 0.0 }
  0x3f   : > { %v315_v29 = vadd.f32 %v314_v25, %v313_v27 }
  0x40   : > { %v414_v48 = vadd.f32 %v413_v43, %v412_v45 }
  0x41   : > { %v317_v31 = vadd.f32 %v316_v28, %v315_v29 }
  0x42   : > { %v416_v51 = vadd.f32 %v415_v46, %v414_v48 }
  0x43   : > { %v319_v32 = vadd.f32 %v318_v30, %v317_v31 }
  0x44   : > { %v418_v53 = vadd.f32 %v417_v49, %v416_v51 }
  0x45   : > { %320 = vadd.xlane.f32.xlu0 %v319_v32 }
  0x46   : > { %v420_v55 = vadd.f32 %v419_v52, %v418_v53 }
  0x48   : > { %v422_v56 = vadd.f32 %v421_v54, %v420_v55 }
  0x4a   : > { %423 = vadd.xlane.f32.xlu1 %v422_v56 }
  0xd2   : > { %v321_v57 = vpop.xlane.xlu0 %320 }
  0xd3   : > { %v322_v58 = vrot.slane %v321_v57, 4 }
  0xd5   : > { %v323_v59 = vadd.f32 %v322_v58, %v321_v57  ;;  %v503_v58 = vsel %vm1212_vm7, %v1087_v2, 0.0 }
  0xd7   : > { %v324_v60 = vrot.slane %v323_v59, 2 }
  0xd9   : > { %v325_v61 = vadd.f32 %v324_v60, %v323_v59  ;;  %v504_v59 = vsel %vm1212_vm7, %v1089_v3, 0.0  ;;  %v505_v60 = vsel %vm1212_vm7, %v1091_v4, 0.0 }
  0xdb   : > { %v326_v62 = vrot.slane %v325_v61, 1 }
  0xdd   : > { %v327_v63 = vadd.f32 %v326_v62, %v325_v61  ;;  %v506_v61 = vsel %vm1212_vm7, %v1093_v5, 0.0  ;;  %v511_v62 = vsel %vm304_vm1, %v503_v58, 0.0 }
  0xdf   : > { %887 = vpush %v327_v63  ;;  %v512_v63 = vsel %vm304_vm1, %v504_v59, 0.0 }
 0x110   : > { %s1173_s17 = spop %887 }
 0x111   : > { %s331_s18 = smul.f32 0.0009765625, %s1173_s17 }
 0x113   : > { %v332_v0 = vstv %s331_s18 }
 0x114   : > { %v333_v7 = vsub.f32 %v1087_v2, %v332_v0  ;;  %v334_v8 = vsub.f32 %v1089_v3, %v332_v0  ;;  %v335_v9 = vsub.f32 %v1091_v4, %v332_v0  ;;  %v336_v10 = vsub.f32 %v1093_v5, %v332_v0 }
 0x115   : > { %v337_v11 = vsub.f32 %v1095_v6, %v332_v0  ;;  %v338_v16 = vsub.f32 %v1110_v12, %v332_v0  ;;  %v339_v22 = vsub.f32 %v1117_v17, %v332_v0  ;;  %v340_v27 = vsub.f32 %v1123_v21, %v332_v0 }
 0x116   : > { %v341_v13 = vmul.f32 %v333_v7, %v333_v7  ;;  %v342_v14 = vmul.f32 %v334_v8, %v334_v8  ;;  %v343_v15 = vmul.f32 %v335_v9, %v335_v9  ;;  %v344_v18 = vmul.f32 %v336_v10, %v336_v10 }
 0x117   : > { %v345_v23 = vmul.f32 %v337_v11, %v337_v11  ;;  %v346_v28 = vmul.f32 %v338_v16, %v338_v16  ;;  %v347_v32 = vmul.f32 %v339_v22, %v339_v22  ;;  %v348_v37 = vmul.f32 %v340_v27, %v340_v27 }
 0x118   : > { %v349_v19 = vsel %vm294_vm0, %v341_v13, 0.0  ;;  %v350_v20 = vsel %vm294_vm0, %v342_v14, 0.0  ;;  %v351_v24 = vsel %vm294_vm0, %v343_v15, 0.0  ;;  %v352_v29 = vsel %vm294_vm0, %v344_v18, 0.0 }
 0x119   : > { %v357_v25 = vsel %vm304_vm1, %v349_v19, 0.0  ;;  %v358_v26 = vsel %vm304_vm1, %v350_v20, 0.0  ;;  %v360_v31 = vsel %vm304_vm1, %v351_v24, 0.0  ;;  %v353_v34 = vsel %vm294_vm0, %v345_v23, 0.0 }
 0x11a   : > { %v359_v30 = vadd.f32 %v358_v26, %v357_v25  ;;  %v362_v36 = vsel %vm304_vm1, %v352_v29, 0.0  ;;  %v354_v38 = vsel %vm294_vm0, %v346_v28, 0.0  ;;  %v364_v40 = vsel %vm304_vm1, %v353_v34, 0.0  ;;  %v424_v26 = vpop.xlane.xlu1 %423 }
 0x11b   : > { %v355_v41 = vsel %vm294_vm0, %v347_v32, 0.0  ;;  %v366_v43 = vsel %vm304_vm1, %v354_v38, 0.0  ;;  %v356_v44 = vsel %vm294_vm0, %v348_v37, 0.0  ;;  %v514_v0 = vsel %vm304_vm1, %v505_v60, 0.0 }
 0x11c   : > { %v361_v35 = vadd.f32 %v360_v31, %v359_v30  ;;  %v368_v46 = vsel %vm304_vm1, %v355_v41, 0.0  ;;  %v370_v48 = vsel %vm304_vm1, %v356_v44, 0.0  ;;  %v507_v7 = vsel %vm1212_vm7, %v1095_v6, 0.0 }
 0x11d   : > { %v513_v8 = vadd.f32 %v512_v63, %v511_v62  ;;  %v516_v9 = vsel %vm304_vm1, %v506_v61, 0.0  ;;  %v508_v10 = vsel %vm1212_vm7, %v1110_v12, 0.0  ;;  %v518_v13 = vsel %vm304_vm1, %v507_v7, 0.0 }
 0x11e   : > { %v363_v39 = vadd.f32 %v362_v36, %v361_v35  ;;  %v509_v14 = vsel %vm1212_vm7, %v1117_v17, 0.0  ;;  %v520_v16 = vsel %vm304_vm1, %v508_v10, 0.0  ;;  %v510_v18 = vsel %vm1212_vm7, %v1123_v21, 0.0 }
 0x11f   : > { %v515_v11 = vadd.f32 %v514_v0, %v513_v8  ;;  %v522_v20 = vsel %vm304_vm1, %v509_v14, 0.0  ;;  %v524_v23 = vsel %vm304_vm1, %v510_v18, 0.0  ;;  %v425_v27 = vrot.slane %v424_v26, 4 }
 0x120   : > { %v365_v42 = vadd.f32 %v364_v40, %v363_v39 }
 0x121   : > { %v517_v15 = vadd.f32 %v516_v9, %v515_v11  ;;  %v426_v28 = vadd.f32 %v425_v27, %v424_v26 }
 0x122   : > { %v367_v45 = vadd.f32 %v366_v43, %v365_v42 }
 0x123   : > { %v519_v19 = vadd.f32 %v518_v13, %v517_v15  ;;  %v427_v29 = vrot.slane %v426_v28, 2 }
 0x124   : > { %v369_v47 = vadd.f32 %v368_v46, %v367_v45 }
 0x125   : > { %v521_v22 = vadd.f32 %v520_v16, %v519_v19  ;;  %v428_v31 = vadd.f32 %v427_v29, %v426_v28 }
 0x126   : > { %v371_v49 = vadd.f32 %v370_v48, %v369_v47 }
 0x127   : > { %v523_v24 = vadd.f32 %v522_v20, %v521_v22  ;;  %v429_v32 = vrot.slane %v428_v31, 1 }
 0x128   : > { %372 = vadd.xlane.f32.xlu0 %v371_v49 }
 0x129   : > { %v525_v25 = vadd.f32 %v524_v23, %v523_v24  ;;  %v430_v35 = vadd.f32 %v429_v32, %v428_v31 }
 0x12c   : > { %526 = vadd.xlane.f32.xlu0 %v525_v25 }
 0x1b5   : > { %v373_v50 = vpop.xlane.xlu0 %372 }
 0x1b6   : > { %v374_v51 = vrot.slane %v373_v50, 4 }
 0x1b8   : > { %v375_v52 = vadd.f32 %v374_v51, %v373_v50 }
 0x1b9   : > { %v527_v29 = vpop.xlane.xlu0 %526 }
 0x1ba   : > { %v376_v53 = vrot.slane %v375_v52, 2 }
 0x1bc   : > { %v377_v54 = vadd.f32 %v376_v53, %v375_v52 }
 0x1be   : > { %v378_v55 = vrot.slane %v377_v54, 1 }
 0x1c0   : > { %v379_v56 = vadd.f32 %v378_v55, %v377_v54 }
 0x1c2   : > { %889 = vpush %v379_v56 }
 0x1f3   : > { %s890_s19 = spop %889 }
 0x1f4   : > { %s383_s20 = smul.f32 0.0009765625, %s890_s19 }
 0x1f6   : > { %s385_s22 = sadd.f32 1e-05, %s383_s20 }
 0x1f8   : > { %v386_v30 = vstv %s385_s22 }
 0x1f9   : > { %937 = vrsqrt.f32 %v386_v30  ;;  %v528_v30 = vrot.slane %v527_v29, 4 }
 0x1fb   : > { %v529_v31 = vadd.f32 %v528_v30, %v527_v29 }
 0x1fd   : > { %v530_v32 = vrot.slane %v529_v31, 2 }
 0x203   : > { %v938_v34 = vpop.eup %937 }
 0x204   : > { %891 = vpush %v938_v34 }
 0x205   : > { %893 = vpush %v430_v35  ;;  %v531_v35 = vadd.f32 %v530_v32, %v529_v31 }
 0x235   : > { %s1248_s23 = spop %891 }
 0x236   : > { %s1250_s24 = spop %893  ;;  %s389_s30 = smul.f32 %s1248_s23, %s384_s29 }
 0x237   : > { %s434_s25 = smul.f32 0.0009765625, %s1250_s24 }
 0x238   : > { %s393_s9 = smul.f32 %s389_s30, %s331_s18 }
 0x239   : > { %v435_v36 = vstv %s434_s25 }
 0x23a   : > { %v436_v37 = vsub.f32 %v1087_v2, %v435_v36  ;;  %v437_v38 = vsub.f32 %v1089_v3, %v435_v36  ;;  %v438_v39 = vsub.f32 %v1091_v4, %v435_v36  ;;  %v439_v40 = vsub.f32 %v1093_v5, %v435_v36  ;;  %s394_s11 = ssub.f32 %s392_s7, %s393_s9  ;;  %s849_s7 = sld [smem:[#allocation4 + $0x2]] }
 0x23b   : > { %v440_v41 = vsub.f32 %v1095_v6, %v435_v36  ;;  %v441_v45 = vsub.f32 %v1110_v12, %v435_v36  ;;  %v442_v49 = vsub.f32 %v1117_v17, %v435_v36  ;;  %v443_v54 = vsub.f32 %v1123_v21, %v435_v36 }
 0x23c   : > { %v444_v42 = vmul.f32 %v436_v37, %v436_v37  ;;  %v445_v43 = vmul.f32 %v437_v38, %v437_v38  ;;  %v446_v44 = vmul.f32 %v438_v39, %v438_v39  ;;  %v447_v46 = vmul.f32 %v439_v40, %v439_v40 }
 0x23d   : > { %v448_v50 = vmul.f32 %v440_v41, %v440_v41  ;;  %v449_v55 = vmul.f32 %v441_v45, %v441_v45  ;;  %v450_v60 = vmul.f32 %v442_v49, %v442_v49  ;;  %v451_v0 = vmul.f32 %v443_v54, %v443_v54 }
 0x23e   : > { %v452_v47 = vsel %vm1137_vm4, %v444_v42, 0.0  ;;  %v453_v48 = vsel %vm1137_vm4, %v445_v43, 0.0  ;;  %v454_v51 = vsel %vm1137_vm4, %v446_v44, 0.0  ;;  %v455_v56 = vsel %vm1137_vm4, %v447_v46, 0.0 }
 0x23f   : > { %v460_v52 = vsel %vm304_vm1, %v452_v47, 0.0  ;;  %v461_v53 = vsel %vm304_vm1, %v453_v48, 0.0  ;;  %v463_v59 = vsel %vm304_vm1, %v454_v51, 0.0  ;;  %v456_v61 = vsel %vm1137_vm4, %v448_v50, 0.0 }
 0x240   : > { %v462_v58 = vadd.f32 %v461_v53, %v460_v52  ;;  %v465_v63 = vsel %vm304_vm1, %v455_v56, 0.0  ;;  %v457_v7 = vsel %vm1137_vm4, %v449_v55, 0.0  ;;  %v467_v9 = vsel %vm304_vm1, %v456_v61, 0.0 }
 0x241   : > { %v458_v10 = vsel %vm1137_vm4, %v450_v60, 0.0  ;;  %v469_v13 = vsel %vm304_vm1, %v457_v7, 0.0  ;;  %v459_v14 = vsel %vm1137_vm4, %v451_v0, 0.0  ;;  %v532_v36 = vrot.slane %v531_v35, 1 }
 0x242   : > { %v464_v62 = vadd.f32 %v463_v59, %v462_v58  ;;  %v471_v16 = vsel %vm304_vm1, %v458_v10, 0.0  ;;  %v473_v19 = vsel %vm304_vm1, %v459_v14, 0.0  ;;  %v390_v39 = vstv %s389_s30  ;;  %s848_s30 = sld [smem:[#allocation2 + $0x2]] }
 0x243   : > { %v533_v38 = vadd.f32 %v532_v36, %v531_v35  ;;  %v391_v40 = vsel %vm294_vm0, %v390_v39, 0.0  ;;  %v395_v41 = vstv %s394_s11  ;;  %v934_v35 = vld [vmem:[%s1416_s3] sm:$0xff]  }
 0x244   : > { %v466_v8 = vadd.f32 %v465_v63, %v464_v62  ;;  %v1309_v49 = vsel %vm294_vm0, %v395_v41, 0.0  ;;  %867 = vmatprep.subr.bf16.mxu0 %v934_v35  ;;  %881 = vmatprep.subr.bf16.mxu1 %v934_v35 }
 0x245   : > { %868 = vmatpush3.bf16.msra.mxu0 %v934_v35  ;;  %884 = vmatpush3.bf16.msra.mxu1 %v934_v35 }
 0x246   : > { %v468_v11 = vadd.f32 %v467_v9, %v466_v8 }
 0x248   : > { %v470_v15 = vadd.f32 %v469_v13, %v468_v11 }
 0x24a   : > { %v472_v18 = vadd.f32 %v471_v16, %v470_v15 }
 0x24c   : > { %v474_v20 = vadd.f32 %v473_v19, %v472_v18 }
 0x24e   : > { %475 = vadd.xlane.f32.xlu1 %v474_v20 }
 0x2db   : > { %v476_v22 = vpop.xlane.xlu1 %475 }
 0x2dc   : > { %v477_v23 = vrot.slane %v476_v22, 4 }
 0x2de   : > { %v478_v24 = vadd.f32 %v477_v23, %v476_v22 }
 0x2e0   : > { %v479_v25 = vrot.slane %v478_v24, 2 }
 0x2e2   : > { %v480_v26 = vadd.f32 %v479_v25, %v478_v24 }
 0x2e4   : > { %v481_v27 = vrot.slane %v480_v26, 1 }
 0x2e6   : > { %v482_v28 = vadd.f32 %v481_v27, %v480_v26 }
 0x2e8   : > { %895 = vpush %v482_v28 }
 0x319   : > { %s896_s26 = spop %895 }
 0x31a   : > { %s486_s27 = smul.f32 0.0009765625, %s896_s26 }
 0x31c   : > { %s488_s28 = sadd.f32 1e-05, %s486_s27 }
 0x31e   : > { %v489_v34 = vstv %s488_s28 }
 0x31f   : > { %939 = vrsqrt.f32 %v489_v34 }
 0x329   : > { %v940_v37 = vpop.eup %939 }
 0x32a   : > { %897 = vpush %v940_v37 }
 0x32b   : > { %899 = vpush %v533_v38  ;;  %v935_v38 = vld [vmem:[%s1416_s3 + $0x8] sm:$0xff]  }
 0x32c   : > { %869 = vmatprep.subr.bf16.mxu0 %v935_v38  ;;  %882 = vmatprep.subr.bf16.mxu1 %v935_v38 }
 0x32d   : > { %870 = vmatpush3.bf16.msra.mxu0 %v935_v38  ;;  %885 = vmatpush3.bf16.msra.mxu1 %v935_v38 }
 0x35b   : > { %s898_s14 = spop %897 }
 0x35c   : > { %s492_s15 = smul.f32 %s898_s14, %s846_s8  ;;  %s1290_s16 = spop %899 }
 0x35d   : > { %s537_s19 = smul.f32 0.0009765625, %s1290_s16 }
 0x35e   : > { %v493_v42 = vstv %s492_s15  ;;  %s496_s20 = smul.f32 %s492_s15, %s434_s25 }
 0x35f   : > { %v1299_v43 = vsel %vm1137_vm4, %v493_v42, %v391_v40  ;;  %v538_v44 = vstv %s537_s19  ;;  %v936_v40 = vld [vmem:[%s1416_s3 + $0x10] sm:$0xff]  }
 0x360   : > { %s497_s17 = ssub.f32 %s847_s10, %s496_s20  ;;  %v539_v45 = vsub.f32 %v1087_v2, %v538_v44  ;;  %v540_v46 = vsub.f32 %v1089_v3, %v538_v44  ;;  %v541_v47 = vsub.f32 %v1091_v4, %v538_v44  ;;  %v542_v48 = vsub.f32 %v1093_v5, %v538_v44  ;;  %871 = vmatprep.subr.bf16.mxu0 %v936_v40 }
 0x361   : > { %v543_v50 = vsub.f32 %v1095_v6, %v538_v44  ;;  %v544_v56 = vsub.f32 %v1110_v12, %v538_v44  ;;  %v545_v60 = vsub.f32 %v1117_v17, %v538_v44  ;;  %v546_v7 = vsub.f32 %v1123_v21, %v538_v44  ;;  %883 = vmatprep.subr.bf16.mxu1 %v936_v40 }
 0x362   : > { %v1312_v51 = vstv %s497_s17  ;;  %v547_v52 = vmul.f32 %v539_v45, %v539_v45  ;;  %v548_v53 = vmul.f32 %v540_v46, %v540_v46  ;;  %v549_v54 = vmul.f32 %v541_v47, %v541_v47  ;;  %872 = vmatpush3.bf16.msra.mxu0 %v936_v40  ;;  %886 = vmatpush3.bf16.msra.mxu1 %v936_v40 }
 0x363   : > { %v499_v55 = vsel %vm1137_vm4, %v1312_v51, %v1309_v49  ;;  %v550_v58 = vmul.f32 %v542_v48, %v542_v48  ;;  %v551_v61 = vmul.f32 %v543_v50, %v543_v50  ;;  %v552_v8 = vmul.f32 %v544_v56, %v544_v56 }
 0x364   : > { %v555_v1 = vsel %vm1212_vm7, %v547_v52, 0.0  ;;  %v556_v59 = vsel %vm1212_vm7, %v548_v53, 0.0  ;;  %v557_v62 = vsel %vm1212_vm7, %v549_v54, 0.0  ;;  %v553_v13 = vmul.f32 %v545_v60, %v545_v60 }
 0x365   : > { %v563_v63 = vsel %vm304_vm1, %v555_v1, 0.0  ;;  %v564_v0 = vsel %vm304_vm1, %v556_v59, 0.0  ;;  %v558_v9 = vsel %vm1212_vm7, %v550_v58, 0.0  ;;  %v566_v11 = vsel %vm304_vm1, %v557_v62, 0.0 }
 0x366   : > { %v565_v10 = vadd.f32 %v564_v0, %v563_v63  ;;  %v559_v14 = vsel %vm1212_vm7, %v551_v61, 0.0  ;;  %v568_v16 = vsel %vm304_vm1, %v558_v9, 0.0  ;;  %v554_v18 = vmul.f32 %v546_v7, %v546_v7  ;;  %v731_v9 = vld [vmem:[%s1418_s5] sm:$0xff] }
 0x367   : > { %v560_v19 = vsel %vm1212_vm7, %v552_v8, 0.0  ;;  %v570_v22 = vsel %vm304_vm1, %v559_v14, 0.0  ;;  %v561_v23 = vsel %vm1212_vm7, %v553_v13, 0.0 }
 0x368   : > { %v567_v15 = vadd.f32 %v566_v11, %v565_v10  ;;  %v572_v25 = vsel %vm304_vm1, %v560_v19, 0.0  ;;  %v562_v26 = vsel %vm1212_vm7, %v554_v18, 0.0  ;;  %v574_v28 = vsel %vm304_vm1, %v561_v23, 0.0  ;;  %v735_v11 = vld [vmem:[%s1418_s5 + $0x20] sm:$0xff]  ;;  %v738_v19 = vld [vmem:[%s1418_s5 + $0x38] sm:$0xff] }
 0x369   : > { %v576_v30 = vsel %vm304_vm1, %v562_v26, 0.0  ;;  %v732_v26 = vld [vmem:[%s1418_s5 + $0x8] sm:$0xff] }
 0x36a   : > { %v569_v20 = vadd.f32 %v568_v16, %v567_v15  ;;  %v734_v16 = vld [vmem:[%s1418_s5 + $0x18] sm:$0xff] }
 0x36c   : > { %v571_v24 = vadd.f32 %v570_v22, %v569_v20 }
 0x36e   : > { %v573_v27 = vadd.f32 %v572_v25, %v571_v24 }
 0x370   : > { %v575_v29 = vadd.f32 %v574_v28, %v573_v27  ;;  %v736_v28 = vld [vmem:[%s1418_s5 + $0x28] sm:$0xff] }
 0x372   : > { %v577_v31 = vadd.f32 %v576_v30, %v575_v29 }
 0x374   : > { %578 = vadd.xlane.f32.xlu1 %v577_v31 }
 0x401   : > { %v579_v32 = vpop.xlane.xlu1 %578 }
 0x402   : > { %v580_v34 = vrot.slane %v579_v32, 4 }
 0x404   : > { %v581_v36 = vadd.f32 %v580_v34, %v579_v32 }
 0x406   : > { %v582_v37 = vrot.slane %v581_v36, 2 }
 0x408   : > { %v583_v39 = vadd.f32 %v582_v37, %v581_v36 }
 0x40a   : > { %v584_v41 = vrot.slane %v583_v39, 1 }
 0x40c   : > { %v585_v42 = vadd.f32 %v584_v41, %v583_v39 }
 0x40e   : > { %901 = vpush %v585_v42 }
 0x43f   : > { %s902_s27 = spop %901 }
 0x440   : > { %s589_s28 = smul.f32 0.0009765625, %s902_s27  ;;  %s280_s27 = scalar_lea.vmem %s1419_s6, %s843_s13 }
 0x442   : > { %s591_s29 = sadd.f32 1e-05, %s589_s28 }
 0x444   : > { %v592_v44 = vstv %s591_s29 }
 0x445   : > { %941 = vrsqrt.f32 %v592_v44 }
 0x44f   : > { %v942_v45 = vpop.eup %941 }
 0x450   : > { %903 = vpush %v942_v45 }
 0x481   : > { %s904_s8 = spop %903 }
 0x482   : > { %s595_s9 = smul.f32 %s904_s8, %s848_s30 }
 0x484   : > { %v596_v46 = vstv %s595_s9  ;;  %s599_s10 = smul.f32 %s595_s9, %s537_s19 }
 0x485   : > { %v597_v47 = vsel %vm1212_vm7, %v596_v46, %v1299_v43 }
 0x486   : > { %s600_s11 = ssub.f32 %s849_s7, %s599_s10  ;;  %v603_v48 = vmul.f32 %v597_v47, %v1087_v2  ;;  %v604_v50 = vmul.f32 %v597_v47, %v1089_v3  ;;  %v607_v53 = vmul.f32 %v597_v47, %v1095_v6  ;;  %v608_v54 = vmul.f32 %v597_v47, %v1110_v12 }
 0x487   : > { %v605_v56 = vmul.f32 %v597_v47, %v1091_v4  ;;  %v606_v58 = vmul.f32 %v597_v47, %v1093_v5  ;;  %v609_v2 = vmul.f32 %v597_v47, %v1117_v17  ;;  %v610_v3 = vmul.f32 %v597_v47, %v1123_v21  ;;  %v850_v5 = vld [vmem:[%s1417_s4] ss:$0 sm:$0xff]  ;;  %v733_v21 = vld [vmem:[%s1418_s5 + $0x10] sm:$0xff] }
 0x488   : > { %v601_v52 = vstv %s600_s11 }
 0x489   : > { %v602_v43 = vsel %vm1212_vm7, %v601_v52, %v499_v55  ;;  %v737_v55 = vld [vmem:[%s1418_s5 + $0x30] sm:$0xff] }
 0x48a   : > { %v611_v1 = vadd.f32 %v603_v48, %v602_v43  ;;  %v612_v6 = vadd.f32 %v604_v50, %v602_v43  ;;  %v615_v59 = vadd.f32 %v607_v53, %v602_v43  ;;  %v616_v12 = vadd.f32 %v608_v54, %v602_v43 }
 0x48b   : > { %v613_v60 = vadd.f32 %v605_v56, %v602_v43  ;;  %v614_v4 = vadd.f32 %v606_v58, %v602_v43  ;;  %v617_v61 = vadd.f32 %v609_v2, %v602_v43  ;;  %v618_v33 = vadd.f32 %v610_v3, %v602_v43 }
 0x48c   : > { %v619_v62 = vpack.c.bf16 %v612_v6, %v611_v1  ;;  %v621_v63 = vpack.c.bf16 %v616_v12, %v615_v59 }
 0x48d   : > { %v620_v49 = vpack.c.bf16 %v614_v4, %v613_v60  ;;  %v622_v51 = vpack.c.bf16 %v618_v33, %v617_v61 }
 0x48e   : > { %873 = vmatprep.mubr.msk.bf16.mxu0 %vm304_vm1, %v619_v62  ;;  %877 = vmatprep.mubr.msk.bf16.mxu1 %vm304_vm1, %v621_v63 }
 0x48f   : > { %874 = vmatmul.mubr.msk.bf16.vlgmr.msra.gmra.mrb[0].mxu0 %vm304_vm1, %v620_v49  ;;  %878 = vmatmul.mubr.msk.bf16.vlgmr.msra.gmra.mrb[0].mxu1 %vm304_vm1, %v622_v51 }
 0x562   : > { %v875_v17 = vpop.f32.mrb[0].mxu0  ;;  %v879_v57 = vpop.f32.mrb[0].mxu1 }
 0x563   : > { %v709_v0 = vadd.f32 %v875_v17, %v850_v5  ;;  %v725_v7 = vadd.f32 %v879_v57, %v850_v5  ;;  %v700_v8 = vpop.f32.mrb[1].mxu0  ;;  %v716_v10 = vpop.f32.mrb[1].mxu1 }
 0x564   : > { %v701_v13 = vadd.f32 %v850_v5, %v700_v8  ;;  %v717_v14 = vadd.f32 %v850_v5, %v716_v10  ;;  %v876_v15 = vpop.f32.mrb[2].mxu0  ;;  %v880_v18 = vpop.f32.mrb[2].mxu1 }
 0x565   : > { %v741_v20 = vadd.f32 %v733_v21, %v709_v0  ;;  %v745_v22 = vadd.f32 %v737_v55, %v725_v7  ;;  %v712_v23 = vadd.f32 %v876_v15, %v850_v5  ;;  %v728_v24 = vadd.f32 %v880_v18, %v850_v5  ;;  %v703_v25 = vpop.f32.mrb[3].mxu0  ;;  %v719_v27 = vpop.f32.mrb[3].mxu1 }
 0x566   : > { %v739_v29 = vadd.f32 %v731_v9, %v701_v13  ;;  %v743_v30 = vadd.f32 %v735_v11, %v717_v14  ;;  %v704_v31 = vadd.f32 %v850_v5, %v703_v25  ;;  %v720_v32 = vadd.f32 %v850_v5, %v719_v27 }
 0x567   : > { %749 = vst [vmem:[%s280_s27 + $0x10] sm:$0xff] %v741_v20  ;;  %753 = vst [vmem:[%s280_s27 + $0x30] sm:$0xff] %v745_v22  ;;  %v742_v34 = vadd.f32 %v734_v16, %v712_v23  ;;  %v746_v35 = vadd.f32 %v738_v19, %v728_v24 }
 0x568   : > { %747 = vst [vmem:[%s280_s27] sm:$0xff] %v739_v29  ;;  %751 = vst [vmem:[%s280_s27 + $0x20] sm:$0xff] %v743_v30  ;;  %v740_v36 = vadd.f32 %v732_v26, %v704_v31  ;;  %v744_v37 = vadd.f32 %v736_v28, %v720_v32 }
 0x569   : > { %750 = vst [vmem:[%s280_s27 + $0x18] sm:$0xff] %v742_v34  ;;  %754 = vst [vmem:[%s280_s27 + $0x38] sm:$0xff] %v746_v35 }
 0x56a   : > { %748 = vst [vmem:[%s280_s27 + $0x8] sm:$0xff] %v740_v36  ;;  %752 = vst [vmem:[%s280_s27 + $0x28] sm:$0xff] %v744_v37 }
 0x56b PF: > { %s18_s21 = sadd.s32 1, %s987_s21  }
 0x56c   : > { %p15_p3 = scmp.ge.s32.totalorder %s18_s21, 4  }
 0x56e   :  { %17 = sbr.rel (!%p15_p3) target bundleno = 2 (0x2), region = 83 }
 0x575   :  { %777 = vsyncpa [#allocation3], 1 }
 0x576   :  { %779 = vsyncpa [#allocation3 + $0x1], 1 }
 0x577   :  { %780 = vsyncpa [#allocation5], 1 }

// kernel: gfnet_forward_eval.5
= control target key start
LH: loop header
LB: loop body
LE: loop exit
PB: predicated region body
PF: predicated region fallthrough
CT: control target
= control target key end

     0   :  { %s2958_s18 = smov 0   ;;  %s3622_s0 = inlined_call_operand.vmem [shape: f32[128,128], index: 0, kind: input, shape index: {}, may-alias: {0,15}]   ;;  %s3623_s1 = inlined_call_operand.vmem [shape: f32[1,128], index: 1, kind: input, shape index: {}]   ;;  %s3624_s2 = inlined_call_operand.vmem [shape: f32[1,128], index: 2, kind: input, shape index: {}]   ;;  %s3625_s3 = inlined_call_operand.vmem [shape: f32[40,64], index: 3, kind: input, shape index: {}]   ;;  %s3626_s4 = inlined_call_operand.vmem [shape: f32[40,64], index: 4, kind: input, shape index: {}]   ;;  %s3627_s5 = inlined_call_operand.vmem [shape: f32[40,128], index: 5, kind: input, shape index: {}]   ;;  %s3628_s6 = inlined_call_operand.vmem [shape: f32[40,128], index: 6, kind: input, shape index: {}]   ;;  %s3629_s7 = inlined_call_operand.vmem [shape: f32[64,40], index: 7, kind: input, shape index: {}]   ;;  %s3630_s8 = inlined_call_operand.vmem [shape: f32[64,40], index: 8, kind: input, shape index: {}]   ;;  %s3631_s9 = inlined_call_operand.vmem [shape: f32[1,128], index: 9, kind: input, shape index: {}]   ;;  %s3632_s10 = inlined_call_operand.vmem [shape: f32[1,128], index: 10, kind: input, shape index: {}]   ;;  %s3633_s11 = inlined_call_operand.vmem [shape: bf16[128,512], index: 11, kind: input, shape index: {}]   ;;  %s3634_s12 = inlined_call_operand.vmem [shape: f32[1,512], index: 12, kind: input, shape index: {}]   ;;  %s3635_s13 = inlined_call_operand.vmem [shape: bf16[512,128], index: 13, kind: input, shape index: {}]   ;;  %s3636_s14 = inlined_call_operand.vmem [shape: f32[1,128], index: 14, kind: input, shape index: {}]   ;;  %s3637_s15 = inlined_call_operand.vmem [shape: f32[128,128], index: 15, kind: output, shape index: {}, may-alias: {0,15}]  }
   0x1 LB: > { %s2285_s19 = sadd.s32 4294967295, %s2872_s18   ;;  %p2289_p0 = scmp.ge.s32.totalorder %s2872_s18, 1  ;;  %s2872_s18 = sphi %s2958_s18, %s25_s18  }
   0x2   : > { %p438_p1 = scmp.lt.s32.totalorder %s2872_s18, 3 }
   0x4   : > { %p439_p2 = pnand %p2289_p0, %p438_p1 }
   0x5   : > { %s2290_s20 = sshll.u32 (!%p439_p2), %s2285_s19, 3  ;;  %v2874_v40 = vmov (!%p439_p2), 0.0|0.0   ;;  %vm2875_vm0 = vmmov (!%p439_p2), 0   ;;  %v2876_v41 = vmov (!%p439_p2), 0.0   ;;  %vm631_vm1 = vcmask (!%p439_p2), 523264  }
   0x6   : > { %442 = sbr.rel (%p439_p2) target bundleno = 1662 (0x67e), region = 80  ;;  %p487_p3 = scmp.lt.s32.totalorder (!%p439_p2), %s2290_s20, 15  ;;  %2629 = vmatprep.subr.bf16.mxu0 (!%p439_p2), %v2874_v40  ;;  %2539 = vmatprep.mubr.msk.f32.mxu0 (!%p439_p2), %vm2875_vm0, %v2876_v41  ;;  %vm903_vm2 = vcmask (!%p439_p2), 326656  }
   0xd   : > { %s3639_s20 = smov (!%p487_p3, %s2290_s20), 15 }
   0xe   : > { %s2291_s21 = sshll.u32 %s3639_s20, 3 }
   0xf   : > { %s2974_s24 = scalar_lea.vmem %s3622_s0, %s2291_s21  ;;  %s3601_s30 = scalar_lea.vmem %s3637_s15, %s2291_s21 }
  0x10   : > { %v499_v0 = vld [vmem:[%s2974_s24] sm:$0xff]  ;;  %v2978_v1 = vld [vmem:[%s2974_s24 + $0x10] sm:$0xff]  ;;  %v2982_v2 = vld [vmem:[%s2974_s24 + $0x8] sm:$0xff] }
  0x11   : > { %507 = vadd.xlane.f32.xlu0 %v499_v0  ;;  %511 = vadd.xlane.f32.xlu1 %v2978_v1  ;;  %v2985_v3 = vld [vmem:[%s2974_s24 + $0x18] sm:$0xff]  ;;  %v2988_v4 = vld [vmem:[%s2974_s24 + $0x20] sm:$0xff]  ;;  %v2991_v5 = vld [vmem:[%s2974_s24 + $0x28] sm:$0xff] }
  0x12   : > { %v2996_v6 = vld [vmem:[%s2974_s24 + $0x30] sm:$0xff]  ;;  %v2999_v7 = vld [vmem:[%s2974_s24 + $0x38] sm:$0xff] }
  0x15   : > { %509 = vadd.xlane.f32.xlu0 %v2982_v2  ;;  %513 = vadd.xlane.f32.xlu1 %v2985_v3 }
  0x19   : > { %515 = vadd.xlane.f32.xlu0 %v2988_v4  ;;  %517 = vadd.xlane.f32.xlu1 %v2991_v5 }
  0x1d   : > { %519 = vadd.xlane.f32.xlu0 %v2996_v6  ;;  %521 = vadd.xlane.f32.xlu1 %v2999_v7 }
  0x9e   : > { %v508_v8 = vpop.xlane.xlu0 %507  ;;  %v512_v9 = vpop.xlane.xlu1 %511 }
  0x9f   : > { %v524_v10 = vmul.f32 0.0078125, %v508_v8  ;;  %v526_v11 = vmul.f32 0.0078125, %v512_v9 }
  0xa1   : > { %v3005_v12 = vsub.f32 %v499_v0, %v524_v10  ;;  %v3008_v13 = vsub.f32 %v2978_v1, %v526_v11  ;;  %v2294_v10 = vld [vmem:[%s3623_s1] ss:$0 sm:$0xff] }
  0xa2   : > { %v510_v14 = vpop.xlane.xlu0 %509  ;;  %v514_v15 = vpop.xlane.xlu1 %513 }
  0xa3   : > { %v525_v16 = vmul.f32 0.0078125, %v510_v14  ;;  %v540_v17 = vmul.f32 %v3005_v12, %v3005_v12  ;;  %v527_v18 = vmul.f32 0.0078125, %v514_v15  ;;  %v542_v21 = vmul.f32 %v3008_v13, %v3008_v13 }
  0xa5   : > { %v3013_v19 = vsub.f32 %v2982_v2, %v525_v16  ;;  %548 = vadd.xlane.f32.xlu0 %v540_v17  ;;  %v3016_v20 = vsub.f32 %v2985_v3, %v527_v18  ;;  %v2295_v18 = vld [vmem:[%s3624_s2] ss:$0 sm:$0xff] }
  0xa6   : > { %v516_v22 = vpop.xlane.xlu0 %515  ;;  %v518_v23 = vpop.xlane.xlu1 %517 }
  0xa7   : > { %v528_v24 = vmul.f32 0.0078125, %v516_v22  ;;  %v541_v25 = vmul.f32 %v3013_v19, %v3013_v19  ;;  %v529_v26 = vmul.f32 0.0078125, %v518_v23  ;;  %v543_v29 = vmul.f32 %v3016_v20, %v3016_v20 }
  0xa9   : > { %v3023_v27 = vsub.f32 %v2988_v4, %v528_v24  ;;  %552 = vadd.xlane.f32.xlu0 %v542_v21  ;;  %550 = vadd.xlane.f32.xlu1 %v541_v25  ;;  %v3026_v28 = vsub.f32 %v2991_v5, %v529_v26 }
  0xaa   : > { %v520_v30 = vpop.xlane.xlu0 %519  ;;  %v522_v31 = vpop.xlane.xlu1 %521 }
  0xab   : > { %v530_v32 = vmul.f32 0.0078125, %v520_v30  ;;  %v544_v33 = vmul.f32 %v3023_v27, %v3023_v27  ;;  %v531_v34 = vmul.f32 0.0078125, %v522_v31  ;;  %v545_v37 = vmul.f32 %v3026_v28, %v3026_v28 }
  0xad   : > { %v3033_v35 = vsub.f32 %v2996_v6, %v530_v32  ;;  %554 = vadd.xlane.f32.xlu1 %v543_v29  ;;  %556 = vadd.xlane.f32.xlu0 %v544_v33  ;;  %v3036_v36 = vsub.f32 %v2999_v7, %v531_v34 }
  0xaf   : > { %v546_v38 = vmul.f32 %v3033_v35, %v3033_v35  ;;  %v547_v39 = vmul.f32 %v3036_v36, %v3036_v36 }
  0xb1   : > { %558 = vadd.xlane.f32.xlu1 %v545_v37  ;;  %560 = vadd.xlane.f32.xlu0 %v546_v38 }
  0xb5   : > { %562 = vadd.xlane.f32.xlu1 %v547_v39 }
 0x132   : > { %v549_v42 = vpop.xlane.xlu0 %548 }
 0x133   : > { %v564_v43 = vmul.f32 0.0078125, %v549_v42 }
 0x135   : > { %v572_v44 = vadd.f32 1e-06, %v564_v43 }
 0x136   : > { %v551_v45 = vpop.xlane.xlu1 %550  ;;  %v553_v46 = vpop.xlane.xlu0 %552 }
 0x137   : > { %2769 = vrsqrt.f32 %v572_v44  ;;  %v565_v47 = vmul.f32 0.0078125, %v551_v45  ;;  %v566_v48 = vmul.f32 0.0078125, %v553_v46 }
 0x139   : > { %v573_v49 = vadd.f32 1e-06, %v565_v47  ;;  %v574_v50 = vadd.f32 1e-06, %v566_v48 }
 0x13a   : > { %v555_v51 = vpop.xlane.xlu1 %554  ;;  %v557_v52 = vpop.xlane.xlu0 %556 }
 0x13b   : > { %2771 = vrsqrt.f32 %v573_v49  ;;  %v567_v53 = vmul.f32 0.0078125, %v555_v51  ;;  %v568_v54 = vmul.f32 0.0078125, %v557_v52  ;;  %v628_v51 = vld [vmem:[%s3625_s3 + $0x10] sm:$0xff]  ;;  %v629_v52 = vld [vmem:[%s3625_s3 + $0x18] sm:$0xff] }
 0x13c   : > { %2773 = vrsqrt.f32 %v574_v50 }
 0x13d   : > { %v575_v55 = vadd.f32 1e-06, %v567_v53  ;;  %v576_v56 = vadd.f32 1e-06, %v568_v54  ;;  %v630_v53 = vld [vmem:[%s3625_s3 + $0x20] sm:$0xff] }
 0x13e   : > { %v559_v57 = vpop.xlane.xlu1 %558  ;;  %v561_v58 = vpop.xlane.xlu0 %560  ;;  %v737_v54 = vld [vmem:[%s3626_s4] sm:$0xff] }
 0x13f   : > { %2775 = vrsqrt.f32 %v575_v55  ;;  %v569_v59 = vmul.f32 0.0078125, %v559_v57  ;;  %v570_v60 = vmul.f32 0.0078125, %v561_v58  ;;  %v739_v55 = vld [vmem:[%s3626_s4 + $0x10] sm:$0xff]  ;;  %v741_v57 = vld [vmem:[%s3626_s4 + $0x20] sm:$0xff] }
 0x140   : > { %2777 = vrsqrt.f32 %v576_v56  ;;  %v740_v56 = vld [vmem:[%s3626_s4 + $0x18] sm:$0xff]  ;;  %v895_v58 = vld [vmem:[%s3630_s8] sm:$0xff] }
 0x141   : > { %v2770_v61 = vpop.eup %2769  ;;  %v577_v62 = vadd.f32 1e-06, %v569_v59  ;;  %v578_v63 = vadd.f32 1e-06, %v570_v60 }
 0x142   : > { %v563_v0 = vpop.xlane.xlu1 %562  ;;  %v588_v8 = vmul.f32 %v2770_v61, %v3005_v12 }
 0x143   : > { %2779 = vrsqrt.f32 %v577_v62  ;;  %v571_v9 = vmul.f32 0.0078125, %v563_v0 }
 0x144   : > { %2781 = vrsqrt.f32 %v578_v63  ;;  %v603_v17 = vmul.f32 %v2294_v10, %v588_v8 }
 0x145   : > { %v2772_v11 = vpop.eup %2771  ;;  %v579_v14 = vadd.f32 1e-06, %v571_v9 }
 0x146   : > { %v2774_v15 = vpop.eup %2773  ;;  %v589_v16 = vmul.f32 %v2772_v11, %v3013_v19  ;;  %v618_v24 = vadd.f32 %v2295_v18, %v603_v17  ;;  %v847_v11 = vld [vmem:[%s3627_s5] sm:$0xff] }
 0x147   : > { %2783 = vrsqrt.f32 %v579_v14  ;;  %v590_v12 = vmul.f32 %v2774_v15, %v3008_v13  ;;  %v852_v14 = vld [vmem:[%s3628_s6] sm:$0xff] }
 0x148   : > { %v604_v21 = vmul.f32 %v2294_v10, %v589_v16 }
 0x149   : > { %v2776_v22 = vpop.eup %2775  ;;  %v605_v29 = vmul.f32 %v2294_v10, %v590_v12 }
 0x14a   : > { %v2778_v23 = vpop.eup %2777  ;;  %v619_v25 = vadd.f32 %v2295_v18, %v604_v21  ;;  %v591_v26 = vmul.f32 %v2776_v22, %v3016_v20  ;;  %v848_v22 = vld [vmem:[%s3627_s5 + $0x8] sm:$0xff] }
 0x14b   : > { %v592_v30 = vmul.f32 %v2778_v23, %v3023_v27  ;;  %v620_v34 = vadd.f32 %v2295_v18, %v605_v29  ;;  %v853_v23 = vld [vmem:[%s3628_s6 + $0x8] sm:$0xff] }
 0x14c   : > { %v2630_v31 = vpack.c.bf16 %v619_v25, %v618_v24  ;;  %v606_v19 = vmul.f32 %v2294_v10, %v591_v26 }
 0x14d   : > { %v2780_v32 = vpop.eup %2779  ;;  %v607_v13 = vmul.f32 %v2294_v10, %v592_v30 }
 0x14e   : > { %v2782_v33 = vpop.eup %2781  ;;  %2631 = vmatpush3.bf16.msra.mxu0 %v2630_v31  ;;  %v621_v37 = vadd.f32 %v2295_v18, %v606_v19  ;;  %v593_v38 = vmul.f32 %v2780_v32, %v3026_v28  ;;  %v854_v19 = vld [vmem:[%s3628_s6 + $0x10] sm:$0xff] }
 0x14f   : > { %2632 = vmatprep.subr.bf16.mxu0 %v2874_v40  ;;  %v594_v39 = vmul.f32 %v2782_v33, %v3033_v35  ;;  %v622_v44 = vadd.f32 %v2295_v18, %v607_v13  ;;  %v626_v35 = vld [vmem:[%s3625_s3] sm:$0xff] }
 0x150   : > { %v2633_v42 = vpack.c.bf16 %v621_v37, %v620_v34  ;;  %v608_v43 = vmul.f32 %v2294_v10, %v593_v38 }
 0x151   : > { %v2784_v20 = vpop.eup %2783  ;;  %v609_v46 = vmul.f32 %v2294_v10, %v594_v39 }
 0x152   : > { %2634 = vmatpush3.bf16.msra.mxu0 %v2633_v42  ;;  %v623_v27 = vadd.f32 %v2295_v18, %v608_v43  ;;  %v595_v45 = vmul.f32 %v2784_v20, %v3036_v36  ;;  %v627_v36 = vld [vmem:[%s3625_s3 + $0x8] sm:$0xff] }
 0x153   : > { %2635 = vmatprep.subr.bf16.mxu0 %v2874_v40  ;;  %v624_v28 = vadd.f32 %v2295_v18, %v609_v46  ;;  %v850_v46 = vld [vmem:[%s3627_s5 + $0x18] sm:$0xff] }
 0x154   : > { %v2636_v47 = vpack.c.bf16 %v623_v27, %v622_v44  ;;  %v610_v48 = vmul.f32 %v2294_v10, %v595_v45 }
 0x156   : > { %2637 = vmatpush3.bf16.msra.mxu0 %v2636_v47  ;;  %v625_v49 = vadd.f32 %v2295_v18, %v610_v48 }
 0x157   : > { %2638 = vmatprep.subr.bf16.mxu0 %v2874_v40 }
 0x158   : > { %v2639_v50 = vpack.c.bf16 %v625_v49, %v624_v28 }
 0x15a   : > { %2640 = vmatpush3.bf16.msra.mxu0 %v2639_v50 }
 0x15b   : > { %2641 = vmatprep.subr.bf16.mxu0 %v2874_v40 }
 0x15d   : > { %2540 = vmatmul.mubr.msk.f32.vlgmr.msra.gmra.mrb[0].mxu0 %vm631_vm1, %v626_v35 }
 0x15e   : > { %2643 = vmatpush3.bf16.msra.mxu0 %v2630_v31  ;;  %2542 = vmatprep.mubr.msk.f32.mxu0 %vm2875_vm0, %v2876_v41  ;;  %v849_v31 = vld [vmem:[%s3627_s5 + $0x10] sm:$0xff] }
 0x15f   : > { %2644 = vmatprep.subr.bf16.mxu0 %v2874_v40 }
 0x161   : > { %2543 = vmatmul.mubr.msk.f32.gmra.mrb[2].mxu0 %vm631_vm1, %v627_v36  ;;  %v851_v36 = vld [vmem:[%s3627_s5 + $0x20] sm:$0xff] }
 0x162   : > { %2646 = vmatpush3.bf16.msra.mxu0 %v2633_v42  ;;  %2545 = vmatprep.mubr.msk.f32.mxu0 %vm2875_vm0, %v2876_v41 }
 0x163   : > { %2647 = vmatprep.subr.bf16.mxu0 %v2874_v40 }
 0x165   : > { %2546 = vmatmul.mubr.msk.f32.gmra.mrb[4].mxu0 %vm631_vm1, %v628_v51  ;;  %v856_v51 = vld [vmem:[%s3628_s6 + $0x20] sm:$0xff] }
 0x166   : > { %2649 = vmatpush3.bf16.msra.mxu0 %v2636_v47  ;;  %2548 = vmatprep.mubr.msk.f32.mxu0 %vm2875_vm0, %v2876_v41  ;;  %v855_v47 = vld [vmem:[%s3628_s6 + $0x18] sm:$0xff] }
 0x167   : > { %2650 = vmatprep.subr.bf16.mxu0 %v2874_v40  ;;  %v738_v40 = vld [vmem:[%s3626_s4 + $0x8] sm:$0xff] }
 0x169   : > { %2549 = vmatmul.mubr.msk.f32.gmra.mrb[6].mxu0 %vm631_vm1, %v629_v52 }
 0x16a   : > { %2652 = vmatpush3.bf16.msra.mxu0 %v2639_v50  ;;  %2551 = vmatprep.mubr.msk.f32.mxu0 %vm2875_vm0, %v2876_v41 }
 0x16d   : > { %2552 = vmatmul.mubr.msk.f32.gmra.mrb[8].mxu0 %vm631_vm1, %v630_v53 }
 0x16e   : > { %2570 = vmatprep.mubr.msk.f32.mxu0 %vm2875_vm0, %v2876_v41 }
 0x171   : > { %2571 = vmatmul.mubr.msk.f32.vlgmr.msra.gmra.mrb[10].mxu0 %vm631_vm1, %v737_v54 }
 0x172   : > { %2573 = vmatprep.mubr.msk.f32.mxu0 %vm2875_vm0, %v2876_v41 }
 0x175   : > { %2574 = vmatmul.mubr.msk.f32.gmra.mrb[12].mxu0 %vm631_vm1, %v738_v40 }
 0x176   : > { %2576 = vmatprep.mubr.msk.f32.mxu0 %vm2875_vm0, %v2876_v41 }
 0x179   : > { %2577 = vmatmul.mubr.msk.f32.gmra.mrb[14].mxu0 %vm631_vm1, %v739_v55 }
 0x17a   : > { %2579 = vmatprep.mubr.msk.f32.mxu0 %vm2875_vm0, %v2876_v41 }
 0x17d   : > { %2580 = vmatmul.mubr.msk.f32.gmra.mrb[16].mxu0 %vm631_vm1, %v740_v56 }
 0x17e   : > { %2582 = vmatprep.mubr.msk.f32.mxu0 %vm2875_vm0, %v2876_v41 }
 0x181   : > { %2583 = vmatmul.mubr.msk.f32.gmra.mrb[18].mxu0 %vm631_vm1, %v741_v57 }
 0x182   : > { %2595 = vmatprep.mubr.msk.f32.mxu0 %vm903_vm2, %v895_v58 }
 0x230   : > { %v713_v59 = vpop.f32.mrb[0].mxu0 }
 0x231   : > { %v2541_v60 = vpop.f32.mrb[1].mxu0  ;;  %v857_v16 = vmul.f32 %v847_v11, %v713_v59  ;;  %v872_v17 = vmul.f32 %v852_v14, %v713_v59 }
 0x234   : > { %v718_v61 = vpop.f32.mrb[2].mxu0 }
 0x235   : > { %v2544_v62 = vpop.f32.mrb[3].mxu0  ;;  %v858_v29 = vmul.f32 %v848_v22, %v718_v61  ;;  %v873_v30 = vmul.f32 %v853_v23, %v718_v61 }
 0x238   : > { %v723_v63 = vpop.f32.mrb[4].mxu0 }
 0x239   : > { %v2547_v0 = vpop.f32.mrb[5].mxu0  ;;  %v859_v13 = vmul.f32 %v849_v31, %v723_v63  ;;  %v874_v39 = vmul.f32 %v854_v19, %v723_v63 }
 0x23c   : > { %v728_v41 = vpop.f32.mrb[6].mxu0 }
 0x23d   : > { %v2550_v8 = vpop.f32.mrb[7].mxu0  ;;  %v860_v50 = vmul.f32 %v850_v46, %v728_v41  ;;  %v875_v35 = vmul.f32 %v855_v47, %v728_v41 }
 0x23e   : > { %v896_v8 = vld [vmem:[%s3630_s8 + $0x8] sm:$0xff] }
 0x240   : > { %v733_v9 = vpop.f32.mrb[8].mxu0 }
 0x241   : > { %v2553_v10 = vpop.f32.mrb[9].mxu0  ;;  %v861_v56 = vmul.f32 %v851_v36, %v733_v9  ;;  %v876_v57 = vmul.f32 %v856_v51, %v733_v9  ;;  %v898_v9 = vld [vmem:[%s3630_s8 + $0x18] sm:$0xff] }
 0x242   : > { %v897_v10 = vld [vmem:[%s3630_s8 + $0x10] sm:$0xff] }
 0x244   : > { %v823_v15 = vpop.f32.mrb[10].mxu0 }
 0x245   : > { %v862_v18 = vmul.f32 %v852_v14, %v823_v15  ;;  %v877_v12 = vmul.f32 %v847_v11, %v823_v15  ;;  %v2572_v21 = vpop.f32.mrb[11].mxu0  ;;  %v899_v11 = vld [vmem:[%s3630_s8 + $0x20] sm:$0xff]  ;;  %v900_v14 = vld [vmem:[%s3630_s8 + $0x28] sm:$0xff]  ;;  %v901_v15 = vld [vmem:[%s3630_s8 + $0x30] sm:$0xff] }
 0x246   : > { %v890_v21 = vld [vmem:[%s3629_s7 + $0x18] sm:$0xff] }
 0x247   : > { %v867_v24 = vsub.f32 %v857_v16, %v862_v18  ;;  %v882_v25 = vadd.f32 %v877_v12, %v872_v17  ;;  %v902_v16 = vld [vmem:[%s3630_s8 + $0x38] sm:$0xff]  ;;  %v887_v17 = vld [vmem:[%s3629_s7] sm:$0xff]  ;;  %v888_v18 = vld [vmem:[%s3629_s7 + $0x8] sm:$0xff] }
 0x248   : > { %v828_v26 = vpop.f32.mrb[12].mxu0  ;;  %v889_v12 = vld [vmem:[%s3629_s7 + $0x10] sm:$0xff] }
 0x249   : > { %v863_v32 = vmul.f32 %v853_v23, %v828_v26  ;;  %v878_v33 = vmul.f32 %v848_v22, %v828_v26  ;;  %v2575_v34 = vpop.f32.mrb[13].mxu0  ;;  %v891_v22 = vld [vmem:[%s3629_s7 + $0x20] sm:$0xff]  ;;  %v892_v23 = vld [vmem:[%s3629_s7 + $0x28] sm:$0xff] }
 0x24b   : > { %v868_v37 = vsub.f32 %v858_v29, %v863_v32  ;;  %v883_v38 = vadd.f32 %v878_v33, %v873_v30 }
 0x24c   : > { %v833_v42 = vpop.f32.mrb[14].mxu0 }
 0x24d   : > { %v864_v43 = vmul.f32 %v854_v19, %v833_v42  ;;  %v879_v20 = vmul.f32 %v849_v31, %v833_v42  ;;  %v2578_v44 = vpop.f32.mrb[15].mxu0  ;;  %v2653_v27 = vpack.c.bf16 %v883_v38, %v882_v25  ;;  %v2661_v45 = vpack.c.bf16 %v868_v37, %v867_v24  ;;  %v893_v24 = vld [vmem:[%s3629_s7 + $0x30] sm:$0xff]  ;;  %v894_v25 = vld [vmem:[%s3629_s7 + $0x38] sm:$0xff] }
 0x24e   : > { %v2689_v37 = vld [vmem:[%s3633_s11 + $0x4] ss:$16 sps:$4 sm:$0xff]   ;;  %v2691_v38 = vld [vmem:[%s3633_s11] ss:$16 sps:$4 sm:$0xff]  }
 0x24f   : > { %v869_v48 = vsub.f32 %v859_v13, %v864_v43  ;;  %v884_v28 = vadd.f32 %v879_v20, %v874_v39  ;;  %2654 = vmatprep.subr.bf16.mxu0 %v2653_v27  ;;  %v2692_v13 = vld [vmem:[%s3633_s11 + $0x24] ss:$16 sps:$4 sm:$0xff]   ;;  %1498 = vmatprep.subr.bf16.mxu1 %v2689_v37  ;;  %v2694_v39 = vld [vmem:[%s3633_s11 + $0x20] ss:$16 sps:$4 sm:$0xff]  }
 0x250   : > { %v838_v49 = vpop.f32.mrb[16].mxu0  ;;  %2656 = vmatpush3.bf16.msra.mxu0 %v2653_v27  ;;  %1499 = vmatpush1.bf16.msra.mxu1 %v2691_v38 }
 0x251   : > { %v865_v52 = vmul.f32 %v855_v47, %v838_v49  ;;  %v880_v53 = vmul.f32 %v850_v46, %v838_v49  ;;  %v2581_v54 = vpop.f32.mrb[17].mxu0  ;;  %1500 = vmatprep.subr.bf16.mxu1 %v2692_v13 }
 0x253   : > { %v870_v40 = vsub.f32 %v860_v50, %v865_v52  ;;  %v885_v55 = vadd.f32 %v880_v53, %v875_v35 }
 0x254   : > { %v843_v58 = vpop.f32.mrb[18].mxu0  ;;  %1501 = vmatpush1.bf16.msra.mxu1 %v2694_v39 }
 0x255   : > { %v866_v59 = vmul.f32 %v856_v51, %v843_v58  ;;  %v881_v60 = vmul.f32 %v851_v36, %v843_v58  ;;  %v2657_v61 = vpack.c.bf16 %v885_v55, %v884_v28  ;;  %v2584_v62 = vpop.f32.mrb[19].mxu0  ;;  %v2665_v63 = vpack.c.bf16 %v870_v40, %v869_v48 }
 0x257   : > { %v871_v0 = vsub.f32 %v861_v56, %v866_v59  ;;  %v886_v41 = vadd.f32 %v881_v60, %v876_v57  ;;  %2658 = vmatprep.subr.bf16.mxu0 %v2657_v61 }
 0x258   : > { %2660 = vmatpush3.bf16.msra.mxu0 %v2657_v61 }
 0x259   : > { %2593 = vmatprep.subr.mxu0 %v886_v41 }
 0x25c   : > { %2594 = vmatpush3.msra.mxu0 %v886_v41 }
 0x25d   : > { %2596 = vmatmul.mubr.msk.f32.vlgmr.msra.gmra.mrb[20].mxu0 %vm903_vm2, %v896_v8  ;;  %2662 = vmatprep.subr.bf16.mxu0 %v2661_v45 }
 0x25e   : > { %2664 = vmatpush3.bf16.msra.mxu0 %v2661_v45  ;;  %2598 = vmatprep.mubr.msk.f32.mxu0 %vm903_vm2, %v897_v10 }
 0x25f   : > { %2666 = vmatprep.subr.bf16.mxu0 %v2665_v63 }
 0x261   : > { %2599 = vmatmul.mubr.msk.f32.gmra.mrb[22].mxu0 %vm903_vm2, %v898_v9  ;;  %v2695_v9 = vld [vmem:[%s3633_s11 + $0x44] ss:$16 sps:$4 sm:$0xff]  }
 0x262   : > { %2668 = vmatpush3.bf16.msra.mxu0 %v2665_v63  ;;  %2601 = vmatprep.mubr.msk.f32.mxu0 %vm903_vm2, %v899_v11  ;;  %v2697_v11 = vld [vmem:[%s3633_s11 + $0x40] ss:$16 sps:$4 sm:$0xff]  }
 0x263   : > { %2615 = vmatprep.subr.mxu0 %v871_v0  ;;  %1502 = vmatprep.subr.bf16.mxu1 %v2695_v9 }
 0x264   : > { %1503 = vmatpush1.bf16.msra.mxu1 %v2697_v11 }
 0x265   : > { %2602 = vmatmul.mubr.msk.f32.gmra.mrb[24].mxu0 %vm903_vm2, %v900_v14  ;;  %v2698_v14 = vld [vmem:[%s3633_s11 + $0x64] ss:$16 sps:$4 sm:$0xff]  }
 0x266   : > { %2616 = vmatpush3.msra.mxu0 %v871_v0  ;;  %2604 = vmatprep.mubr.msk.f32.mxu0 %vm903_vm2, %v901_v15  ;;  %v2700_v15 = vld [vmem:[%s3633_s11 + $0x60] ss:$16 sps:$4 sm:$0xff]  }
 0x267   : > { %1504 = vmatprep.subr.bf16.mxu1 %v2698_v14 }
 0x268   : > { %1505 = vmatpush1.bf16.msra.mxu1 %v2700_v15 }
 0x269   : > { %2605 = vmatmul.mubr.msk.f32.gmra.mrb[26].mxu0 %vm903_vm2, %v902_v16  ;;  %v2701_v16 = vld [vmem:[%s3633_s11 + $0x84] ss:$16 sps:$4 sm:$0xff]  }
 0x26a   : > { %2617 = vmatprep.mubr.msk.f32.mxu0 %vm903_vm2, %v887_v17  ;;  %v2703_v17 = vld [vmem:[%s3633_s11 + $0x80] ss:$16 sps:$4 sm:$0xff]   ;;  %1506 = vmatprep.subr.bf16.mxu1 %v2701_v16 }
 0x26c   : > { %1507 = vmatpush1.bf16.msra.mxu1 %v2703_v17 }
 0x26d   : > { %2618 = vmatmul.mubr.msk.f32.vlgmr.msra.gmra.mrb[20].mxu0 %vm903_vm2, %v888_v18  ;;  %v2704_v18 = vld [vmem:[%s3633_s11 + $0xa4] ss:$16 sps:$4 sm:$0xff]  }
 0x26e   : > { %2620 = vmatprep.mubr.msk.f32.mxu0 %vm903_vm2, %v889_v12  ;;  %v2706_v12 = vld [vmem:[%s3633_s11 + $0xa0] ss:$16 sps:$4 sm:$0xff]   ;;  %1508 = vmatprep.subr.bf16.mxu1 %v2704_v18 }
 0x270   : > { %1509 = vmatpush1.bf16.msra.mxu1 %v2706_v12 }
 0x271   : > { %2621 = vmatmul.mubr.msk.f32.gmra.mrb[22].mxu0 %vm903_vm2, %v890_v21  ;;  %v2707_v21 = vld [vmem:[%s3633_s11 + $0xc4] ss:$16 sps:$4 sm:$0xff]  }
 0x272   : > { %2623 = vmatprep.mubr.msk.f32.mxu0 %vm903_vm2, %v891_v22  ;;  %v2709_v22 = vld [vmem:[%s3633_s11 + $0xc0] ss:$16 sps:$4 sm:$0xff]   ;;  %1510 = vmatprep.subr.bf16.mxu1 %v2707_v21  ;;  %v2718_v21 = vld [vmem:[%s3633_s11 + $0x2c] ss:$16 sps:$4 sm:$0xff]  }
 0x274   : > { %1511 = vmatpush1.bf16.msra.mxu1 %v2709_v22 }
 0x275   : > { %2624 = vmatmul.mubr.msk.f32.gmra.mrb[24].mxu0 %vm903_vm2, %v892_v23  ;;  %v2710_v23 = vld [vmem:[%s3633_s11 + $0xe4] ss:$16 sps:$4 sm:$0xff]  }
 0x276   : > { %2626 = vmatprep.mubr.msk.f32.mxu0 %vm903_vm2, %v893_v24  ;;  %v2712_v24 = vld [vmem:[%s3633_s11 + $0xe0] ss:$16 sps:$4 sm:$0xff]   ;;  %1512 = vmatprep.subr.bf16.mxu1 %v2710_v23 }
 0x278   : > { %1513 = vmatpush1.bf16.msra.mxu1 %v2712_v24 }
 0x279   : > { %2627 = vmatmul.mubr.msk.f32.gmra.mrb[26].mxu0 %vm903_vm2, %v894_v25  ;;  %v2877_v25 = vmov 0  }
 0x27a   : > { %1530 = vmatprep.mubr.bf16.mxu1 %v2877_v25 }
 0x340   : > { %v2619_v26 = vpop.f32.mrb[20].mxu0 }
 0x341   : > { %1164 = vadd.xlane.f32.xlu1 %v2619_v26  ;;  %v1123_v29 = vpop.f32.mrb[21].mxu0 }
 0x342   : > { %1162 = vadd.xlane.f32.xlu0 %v1123_v29 }
 0x344   : > { %v2622_v30 = vpop.f32.mrb[22].mxu0 }
 0x345   : > { %1168 = vadd.xlane.f32.xlu1 %v2622_v30  ;;  %v1133_v31 = vpop.f32.mrb[23].mxu0 }
 0x346   : > { %1166 = vadd.xlane.f32.xlu0 %v1133_v31 }
 0x348   : > { %v2625_v19 = vpop.f32.mrb[24].mxu0 }
 0x349   : > { %1172 = vadd.xlane.f32.xlu1 %v2625_v19  ;;  %v1143_v32 = vpop.f32.mrb[25].mxu0 }
 0x34a   : > { %1170 = vadd.xlane.f32.xlu0 %v1143_v32 }
 0x34c   : > { %v2628_v33 = vpop.f32.mrb[26].mxu0 }
 0x34d   : > { %1176 = vadd.xlane.f32.xlu1 %v2628_v33  ;;  %v1153_v34 = vpop.f32.mrb[27].mxu0 }
 0x34e   : > { %1174 = vadd.xlane.f32.xlu0 %v1153_v34 }
 0x3ce   : > { %v1165_v42 = vpop.xlane.xlu1 %1164 }
 0x3cf   : > { %v1179_v43 = vmul.f32 0.0078125, %v1165_v42  ;;  %v1163_v20 = vpop.xlane.xlu0 %1162 }
 0x3d0   : > { %v1178_v44 = vmul.f32 0.0078125, %v1163_v20 }
 0x3d1   : > { %v3232_v27 = vsub.f32 %v2619_v26, %v1179_v43  ;;  %v2715_v26 = vld [vmem:[%s3633_s11 + $0xc] ss:$16 sps:$4 sm:$0xff]  }
 0x3d2   : > { %v3234_v45 = vsub.f32 %v1123_v29, %v1178_v44  ;;  %v1169_v46 = vpop.xlane.xlu1 %1168  ;;  %1571 = vmatprep.subr.bf16.mxu1 %v2715_v26  ;;  %v2737_v29 = vld [vmem:[%s3635_s13 + $0x40] sm:$0xff]  }
 0x3d3   : > { %v1181_v47 = vmul.f32 0.0078125, %v1169_v46  ;;  %v1167_v48 = vpop.xlane.xlu0 %1166  ;;  %v1195_v28 = vmul.f32 %v3232_v27, %v3232_v27  ;;  %2443 = vmatprep.subr.bf16.mxu0 %v2737_v29  ;;  %v2721_v29 = vld [vmem:[%s3633_s11 + $0x4c] ss:$16 sps:$4 sm:$0xff]  }
 0x3d4   : > { %v1180_v49 = vmul.f32 0.0078125, %v1167_v48  ;;  %v1194_v50 = vmul.f32 %v3234_v45, %v3234_v45 }
 0x3d5   : > { %v3240_v35 = vsub.f32 %v2622_v30, %v1181_v47  ;;  %1204 = vadd.xlane.f32.xlu1 %v1195_v28  ;;  %v2738_v30 = vld [vmem:[%s3635_s13] sm:$0xff]  }
 0x3d6   : > { %v3242_v36 = vsub.f32 %v1133_v31, %v1180_v49  ;;  %v1173_v51 = vpop.xlane.xlu1 %1172  ;;  %1202 = vadd.xlane.f32.xlu0 %v1194_v50  ;;  %v2739_v31 = vld [vmem:[%s3635_s13 + $0x48] sm:$0xff]   ;;  %2444 = vmatpush3.bf16.msra.mxu0 %v2738_v30 }
 0x3d7   : > { %v1183_v52 = vmul.f32 0.0078125, %v1173_v51  ;;  %v1171_v53 = vpop.xlane.xlu0 %1170  ;;  %v1197_v54 = vmul.f32 %v3240_v35, %v3240_v35  ;;  %2445 = vmatprep.subr.bf16.mxu0 %v2739_v31 }
 0x3d8   : > { %v1182_v40 = vmul.f32 0.0078125, %v1171_v53  ;;  %v1196_v55 = vmul.f32 %v3242_v36, %v3242_v36 }
 0x3d9   : > { %v3248_v56 = vsub.f32 %v2625_v19, %v1183_v52  ;;  %1208 = vadd.xlane.f32.xlu1 %v1197_v54  ;;  %v2740_v19 = vld [vmem:[%s3635_s13 + $0x8] sm:$0xff]  }
 0x3da   : > { %v3250_v57 = vsub.f32 %v1143_v32, %v1182_v40  ;;  %v1177_v58 = vpop.xlane.xlu1 %1176  ;;  %1206 = vadd.xlane.f32.xlu0 %v1196_v55  ;;  %2446 = vmatpush3.bf16.msra.mxu0 %v2740_v19  ;;  %v2719_v19 = vld [vmem:[%s3633_s11 + $0x48] ss:$16 sps:$4 sm:$0xff]  }
 0x3db   : > { %v1185_v59 = vmul.f32 0.0078125, %v1177_v58  ;;  %v1175_v60 = vpop.xlane.xlu0 %1174  ;;  %v1199_v61 = vmul.f32 %v3248_v56, %v3248_v56  ;;  %v2322_v58 = vld [vmem:[%s3631_s9] ss:$0 sm:$0xff] }
 0x3dc   : > { %v1184_v62 = vmul.f32 0.0078125, %v1175_v60  ;;  %v1198_v63 = vmul.f32 %v3250_v57, %v3250_v57 }
 0x3dd   : > { %v3256_v0 = vsub.f32 %v2628_v33, %v1185_v59  ;;  %1212 = vadd.xlane.f32.xlu1 %v1199_v61 }
 0x3de   : > { %v3258_v41 = vsub.f32 %v1153_v34, %v1184_v62  ;;  %1210 = vadd.xlane.f32.xlu0 %v1198_v63  ;;  %v2323_v63 = vld [vmem:[%s3632_s10] ss:$0 sm:$0xff] }
 0x3df   : > { %v1201_v8 = vmul.f32 %v3256_v0, %v3256_v0 }
 0x3e0   : > { %v1200_v10 = vmul.f32 %v3258_v41, %v3258_v41 }
 0x3e1   : > { %1216 = vadd.xlane.f32.xlu1 %v1201_v8 }
 0x3e2   : > { %1214 = vadd.xlane.f32.xlu0 %v1200_v10 }
 0x462   : > { %v1205_v32 = vpop.xlane.xlu1 %1204 }
 0x463   : > { %v1219_v33 = vmul.f32 0.0078125, %v1205_v32  ;;  %v1203_v34 = vpop.xlane.xlu0 %1202 }
 0x464   : > { %v1218_v37 = vmul.f32 0.0078125, %v1203_v34  ;;  %v2724_v34 = vld [vmem:[%s3633_s11 + $0x6c] ss:$16 sps:$4 sm:$0xff]  }
 0x465   : > { %v1227_v38 = vadd.f32 1e-06, %v1219_v33 }
 0x466   : > { %v1226_v13 = vadd.f32 1e-06, %v1218_v37  ;;  %v1209_v39 = vpop.xlane.xlu1 %1208 }
 0x467   : > { %2785 = vrsqrt.f32 %v1227_v38  ;;  %v1221_v42 = vmul.f32 0.0078125, %v1209_v39  ;;  %v1207_v43 = vpop.xlane.xlu0 %1206 }
 0x468   : > { %2787 = vrsqrt.f32 %v1226_v13  ;;  %v1220_v20 = vmul.f32 0.0078125, %v1207_v43 }
 0x469   : > { %v1229_v44 = vadd.f32 1e-06, %v1221_v42  ;;  %v2727_v42 = vld [vmem:[%s3633_s11 + $0x8c] ss:$16 sps:$4 sm:$0xff]  }
 0x46a   : > { %v1228_v46 = vadd.f32 1e-06, %v1220_v20  ;;  %v1213_v47 = vpop.xlane.xlu1 %1212 }
 0x46b   : > { %2789 = vrsqrt.f32 %v1229_v44  ;;  %v1223_v48 = vmul.f32 0.0078125, %v1213_v47  ;;  %v1211_v28 = vpop.xlane.xlu0 %1210  ;;  %v2725_v44 = vld [vmem:[%s3633_s11 + $0x88] ss:$16 sps:$4 sm:$0xff]   ;;  %v2730_v47 = vld [vmem:[%s3633_s11 + $0xac] ss:$16 sps:$4 sm:$0xff]  }
 0x46c   : > { %2791 = vrsqrt.f32 %v1228_v46  ;;  %v1222_v49 = vmul.f32 0.0078125, %v1211_v28 }
 0x46d   : > { %v1231_v50 = vadd.f32 1e-06, %v1223_v48 }
 0x46e   : > { %v1230_v51 = vadd.f32 1e-06, %v1222_v49  ;;  %v1217_v52 = vpop.xlane.xlu1 %1216 }
 0x46f   : > { %2793 = vrsqrt.f32 %v1231_v50  ;;  %v1225_v53 = vmul.f32 0.0078125, %v1217_v52  ;;  %v1215_v54 = vpop.xlane.xlu0 %1214  ;;  %v2733_v50 = vld [vmem:[%s3633_s11 + $0xcc] ss:$16 sps:$4 sm:$0xff]  }
 0x470   : > { %2795 = vrsqrt.f32 %v1230_v51  ;;  %v1224_v40 = vmul.f32 0.0078125, %v1215_v54  ;;  %v2731_v51 = vld [vmem:[%s3633_s11 + $0xc8] ss:$16 sps:$4 sm:$0xff]  }
 0x471   : > { %v2786_v55 = vpop.eup %2785  ;;  %v1233_v61 = vadd.f32 1e-06, %v1225_v53  ;;  %v2736_v53 = vld [vmem:[%s3633_s11 + $0xec] ss:$16 sps:$4 sm:$0xff]   ;;  %v2734_v54 = vld [vmem:[%s3633_s11 + $0xe8] ss:$16 sps:$4 sm:$0xff]  }
 0x472   : > { %v2788_v59 = vpop.eup %2787  ;;  %v1243_v60 = vmul.f32 %v2786_v55, %v3232_v27  ;;  %v1232_v8 = vadd.f32 1e-06, %v1224_v40  ;;  %v2713_v27 = vld [vmem:[%s3633_s11 + $0x8] ss:$16 sps:$4 sm:$0xff]   ;;  %v2741_v40 = vld [vmem:[%s3635_s13 + $0x50] sm:$0xff]  }
 0x473   : > { %v1242_v62 = vmul.f32 %v2788_v59, %v3234_v45  ;;  %2797 = vrsqrt.f32 %v1233_v61  ;;  %v2742_v55 = vld [vmem:[%s3635_s13 + $0x10] sm:$0xff]   ;;  %2447 = vmatprep.subr.bf16.mxu0 %v2741_v40  ;;  %v2744_v59 = vld [vmem:[%s3635_s13 + $0x18] sm:$0xff]   ;;  %v2747_v61 = vld [vmem:[%s3635_s13 + $0x68] sm:$0xff]  }
 0x474   : > { %v1258_v10 = vmul.f32 %v2322_v58, %v1243_v60  ;;  %2799 = vrsqrt.f32 %v1232_v8  ;;  %2448 = vmatpush3.bf16.msra.mxu0 %v2742_v55  ;;  %v2746_v60 = vld [vmem:[%s3635_s13 + $0x20] sm:$0xff]   ;;  %v2750_v8 = vld [vmem:[%s3635_s13 + $0x30] sm:$0xff]  }
 0x475   : > { %v2790_v9 = vpop.eup %2789  ;;  %v1257_v11 = vmul.f32 %v2322_v58, %v1242_v62  ;;  %v2748_v62 = vld [vmem:[%s3635_s13 + $0x28] sm:$0xff]  }
 0x476   : > { %v2792_v14 = vpop.eup %2791  ;;  %v1273_v15 = vadd.f32 %v2323_v63, %v1258_v10  ;;  %v1245_v16 = vmul.f32 %v2790_v9, %v3240_v35  ;;  %v2716_v35 = vld [vmem:[%s3633_s11 + $0x28] ss:$16 sps:$4 sm:$0xff]  }
 0x477   : > { %v1272_v17 = vadd.f32 %v2323_v63, %v1257_v11  ;;  %v1244_v18 = vmul.f32 %v2792_v14, %v3242_v36  ;;  %v2751_v10 = vld [vmem:[%s3635_s13 + $0x78] sm:$0xff]   ;;  %v2753_v11 = vld [vmem:[%s3635_s13 + $0xc0] sm:$0xff]  }
 0x478   : > { %v1260_v23 = vmul.f32 %v2322_v58, %v1245_v16  ;;  %v2752_v9 = vld [vmem:[%s3635_s13 + $0x38] sm:$0xff]   ;;  %v2754_v14 = vld [vmem:[%s3635_s13 + $0x80] sm:$0xff]   ;;  %v2756_v16 = vld [vmem:[%s3635_s13 + $0x88] sm:$0xff]  }
 0x479   : > { %v2794_v45 = vpop.eup %2793  ;;  %v1280_v12 = vpack.c.bf16 %v1273_v15, %v1272_v17  ;;  %v1259_v22 = vmul.f32 %v2322_v58, %v1244_v18  ;;  %v2755_v15 = vld [vmem:[%s3635_s13 + $0xc8] sm:$0xff]   ;;  %v2757_v17 = vld [vmem:[%s3635_s13 + $0xd0] sm:$0xff]  }
 0x47a   : > { %v2796_v24 = vpop.eup %2795  ;;  %v1275_v26 = vadd.f32 %v2323_v63, %v1260_v23  ;;  %v1247_v31 = vmul.f32 %v2794_v45, %v3248_v56  ;;  %v2722_v56 = vld [vmem:[%s3633_s11 + $0x68] ss:$16 sps:$4 sm:$0xff]   ;;  %v2758_v18 = vld [vmem:[%s3635_s13 + $0x90] sm:$0xff]  }
 0x47b   : > { %1531 = vmatmul.mubr.bf16.vlgmr.msra.gmra.mrb[0].mxu1 %v1280_v12  ;;  %v1274_v36 = vadd.f32 %v2323_v63, %v1259_v22  ;;  %v1246_v30 = vmul.f32 %v2796_v24, %v3250_v57  ;;  %v2760_v45 = vld [vmem:[%s3635_s13 + $0x98] sm:$0xff]   ;;  %v2763_v22 = vld [vmem:[%s3635_s13 + $0xe8] sm:$0xff]   ;;  %v2765_v24 = vld [vmem:[%s3635_s13 + $0xf0] sm:$0xff]  }
 0x47c   : > { %1572 = vmatpush1.bf16.msra.mxu1 %v2713_v27  ;;  %1540 = vmatprep.mubr.bf16.mxu1 %v2877_v25  ;;  %v1262_v38 = vmul.f32 %v2322_v58, %v1247_v31  ;;  %v2759_v27 = vld [vmem:[%s3635_s13 + $0xd8] sm:$0xff]   ;;  %v2764_v23 = vld [vmem:[%s3635_s13 + $0xa8] sm:$0xff]  }
 0x47d   : > { %1573 = vmatprep.subr.bf16.mxu1 %v2718_v21  ;;  %v2798_v32 = vpop.eup %2797  ;;  %v1281_v33 = vpack.c.bf16 %v1275_v26, %v1274_v36  ;;  %v1261_v37 = vmul.f32 %v2322_v58, %v1246_v30  ;;  %v2762_v21 = vld [vmem:[%s3635_s13 + $0xa0] sm:$0xff]   ;;  %v2767_v36 = vld [vmem:[%s3635_s13 + $0xf8] sm:$0xff]  }
 0x47e   : > { %v2800_v13 = vpop.eup %2799  ;;  %v1277_v39 = vadd.f32 %v2323_v63, %v1262_v38  ;;  %v1249_v20 = vmul.f32 %v2798_v32, %v3256_v0  ;;  %v2768_v26 = vld [vmem:[%s3635_s13 + $0xb8] sm:$0xff]  }
 0x47f   : > { %v1276_v57 = vadd.f32 %v2323_v63, %v1261_v37  ;;  %v1248_v43 = vmul.f32 %v2800_v13, %v3258_v41  ;;  %v2728_v41 = vld [vmem:[%s3633_s11 + $0xa8] ss:$16 sps:$4 sm:$0xff]  }
 0x480   : > { %1574 = vmatpush1.bf16.msra.mxu1 %v2716_v35  ;;  %v1264_v28 = vmul.f32 %v2322_v58, %v1249_v20  ;;  %v2766_v35 = vld [vmem:[%s3635_s13 + $0xb0] sm:$0xff]  }
 0x481   : > { %1575 = vmatprep.subr.bf16.mxu1 %v2721_v29  ;;  %v1282_v46 = vpack.c.bf16 %v1277_v39, %v1276_v57  ;;  %v1263_v48 = vmul.f32 %v2322_v58, %v1248_v43  ;;  %v2743_v58 = vld [vmem:[%s3635_s13 + $0x58] sm:$0xff]   ;;  %v1318_v29 = vlaneseq }
 0x482   : > { %v1279_v49 = vadd.f32 %v2323_v63, %v1264_v28  ;;  %2449 = vmatprep.subr.bf16.mxu0 %v2743_v58 }
 0x483   : > { %1541 = vmatmul.mubr.bf16.gmra.mrb[4].mxu1 %v1281_v33  ;;  %v1278_v0 = vadd.f32 %v2323_v63, %v1263_v48  ;;  %2450 = vmatpush3.bf16.msra.mxu0 %v2744_v59  ;;  %v2749_v63 = vld [vmem:[%s3635_s13 + $0x70] sm:$0xff]   ;;  %v3466_v30 = vshrl.u32 %v1318_v29, 7 }
 0x484   : > { %1576 = vmatpush1.bf16.msra.mxu1 %v2719_v19  ;;  %1550 = vmatprep.mubr.bf16.mxu1 %v2877_v25  ;;  %v3472_v19 = vld [vmem:[%s3634_s12] sm:$0xf] }
 0x485   : > { %1577 = vmatprep.subr.bf16.mxu1 %v2724_v34  ;;  %v1283_v52 = vpack.c.bf16 %v1279_v49, %v1278_v0  ;;  %v1320_v31 = vsub.s32 0, %v3466_v30  ;;  %v1324_v32 = vsub.s32 1, %v3466_v30 }
 0x487   : > { %v3479_v34 = vrot.slane %v3472_v19, %v1324_v32 }
 0x488   : > { %1578 = vmatpush1.bf16.msra.mxu1 %v2722_v56 }
 0x489   : > { %1579 = vmatprep.subr.bf16.mxu1 %v2727_v42 }
 0x48b   : > { %1551 = vmatmul.mubr.bf16.gmra.mrb[8].mxu1 %v1282_v46 }
 0x48c   : > { %1580 = vmatpush1.bf16.msra.mxu1 %v2725_v44  ;;  %1560 = vmatprep.mubr.bf16.mxu1 %v2877_v25 }
 0x48d   : > { %1581 = vmatprep.subr.bf16.mxu1 %v2730_v47 }
 0x490   : > { %1582 = vmatpush1.bf16.msra.mxu1 %v2728_v41 }
 0x491   : > { %1583 = vmatprep.subr.bf16.mxu1 %v2733_v50 }
 0x493   : > { %1561 = vmatmul.mubr.bf16.gmra.mrb[12].mxu1 %v1283_v52 }
 0x494   : > { %1584 = vmatpush1.bf16.msra.mxu1 %v2731_v51  ;;  %1603 = vmatprep.mubr.bf16.mxu1 %v2877_v25 }
 0x495   : > { %1585 = vmatprep.subr.bf16.mxu1 %v2736_v53 }
 0x498   : > { %1586 = vmatpush1.bf16.msra.mxu1 %v2734_v54 }
 0x499   : > { %2483 = vmatprep.subr.bf16.mxu1 %v2753_v11 }
 0x49b   : > { %1604 = vmatmul.mubr.bf16.vlgmr.msra.gmra.mrb[16].mxu1 %v1280_v12  ;;  %v2761_v12 = vld [vmem:[%s3635_s13 + $0xe0] sm:$0xff]  }
 0x49c   : > { %1613 = vmatprep.mubr.bf16.mxu1 %v2877_v25  ;;  %2484 = vmatpush3.bf16.msra.mxu1 %v2754_v14 }
 0x49d   : > { %2485 = vmatprep.subr.bf16.mxu1 %v2755_v15 }
 0x4a0   : > { %2486 = vmatpush3.bf16.msra.mxu1 %v2756_v16 }
 0x4a1   : > { %2487 = vmatprep.subr.bf16.mxu1 %v2757_v17 }
 0x4a3   : > { %1614 = vmatmul.mubr.bf16.gmra.mrb[20].mxu1 %v1281_v33  ;;  %v3476_v33 = vrot.slane %v3472_v19, %v1320_v31 }
 0x4a4   : > { %1623 = vmatprep.mubr.bf16.mxu1 %v2877_v25  ;;  %2488 = vmatpush3.bf16.msra.mxu1 %v2758_v18 }
 0x4a5   : > { %2489 = vmatprep.subr.bf16.mxu1 %v2759_v27 }
 0x4a8   : > { %2490 = vmatpush3.bf16.msra.mxu1 %v2760_v45 }
 0x4a9   : > { %2491 = vmatprep.subr.bf16.mxu1 %v2761_v12 }
 0x4ab   : > { %1624 = vmatmul.mubr.bf16.gmra.mrb[24].mxu1 %v1282_v46 }
 0x4ac   : > { %1633 = vmatprep.mubr.bf16.mxu1 %v2877_v25  ;;  %v2745_v25 = vld [vmem:[%s3635_s13 + $0x60] sm:$0xff]   ;;  %2492 = vmatpush3.bf16.msra.mxu1 %v2762_v21 }
 0x4ad   : > { %2451 = vmatprep.subr.bf16.mxu0 %v2745_v25  ;;  %2493 = vmatprep.subr.bf16.mxu1 %v2763_v22 }
 0x4ae   : > { %2452 = vmatpush3.bf16.msra.mxu0 %v2746_v60 }
 0x4af   : > { %2453 = vmatprep.subr.bf16.mxu0 %v2747_v61 }
 0x4b0   : > { %2494 = vmatpush3.bf16.msra.mxu1 %v2764_v23 }
 0x4b1   : > { %2495 = vmatprep.subr.bf16.mxu1 %v2765_v24 }
 0x4b2   : > { %2454 = vmatpush3.bf16.msra.mxu0 %v2748_v62 }
 0x4b3   : > { %1634 = vmatmul.mubr.bf16.gmra.mrb[28].mxu1 %v1283_v52  ;;  %2455 = vmatprep.subr.bf16.mxu0 %v2749_v63 }
 0x4b4   : > { %2496 = vmatpush3.bf16.msra.mxu1 %v2766_v35 }
 0x4b5   : > { %2497 = vmatprep.subr.bf16.mxu1 %v2767_v36 }
 0x4b6   : > { %2456 = vmatpush3.bf16.msra.mxu0 %v2750_v8 }
 0x4b7   : > { %2457 = vmatprep.subr.bf16.mxu0 %v2751_v10  ;;  %v1328_v10 = vsub.s32 2, %v3466_v30 }
 0x4b8   : > { %2498 = vmatpush3.bf16.msra.mxu1 %v2768_v26 }
 0x4ba   : > { %2458 = vmatpush3.bf16.msra.mxu0 %v2752_v9 }
 0x54e   : > { %v1532_v37 = vpop.f32.mrb[0].mxu1 }
 0x54f   : > { %v1533_v38 = vadd.f32 %v1532_v37, %v3476_v33  ;;  %v1534_v13 = vpop.f32.mrb[1].mxu1 }
 0x550   : > { %v1535_v56 = vadd.f32 %v1534_v13, %v3479_v34  ;;  %v1536_v57 = vpop.f32.mrb[2].mxu1 }
 0x551   : > { %v1676_v39 = vmul.f32 0.70710677, %v1533_v38  ;;  %v1537_v42 = vadd.f32 %v1536_v57, %v3476_v33  ;;  %v1538_v43 = vpop.f32.mrb[3].mxu1  ;;  %v1644_v11 = vmul.f32 0.5, %v1533_v38 }
 0x552   : > { %v1677_v20 = vmul.f32 0.70710677, %v1535_v56  ;;  %v1539_v44 = vadd.f32 %v1538_v43, %v3479_v34  ;;  %v1645_v18 = vmul.f32 0.5, %v1535_v56 }
 0x553   : > { %2801 = verf.f32 %v1676_v39  ;;  %v1680_v46 = vmul.f32 0.70710677, %v1537_v42  ;;  %v1648_v14 = vmul.f32 0.5, %v1537_v42  ;;  %v1332_v42 = vsub.s32 3, %v3466_v30 }
 0x554   : > { %2803 = verf.f32 %v1677_v20  ;;  %v1681_v47 = vmul.f32 0.70710677, %v1539_v44  ;;  %v1649_v27 = vmul.f32 0.5, %v1539_v44 }
 0x555   : > { %2805 = verf.f32 %v1680_v46 }
 0x556   : > { %2807 = verf.f32 %v1681_v47  ;;  %v1542_v48 = vpop.f32.mrb[4].mxu1  ;;  %v3514_v47 = vrot.slane %v3472_v19, %v1328_v10 }
 0x557   : > { %v1543_v28 = vadd.f32 %v1542_v48, %v3476_v33  ;;  %v1544_v41 = vpop.f32.mrb[5].mxu1 }
 0x558   : > { %v3487_v0 = vadd.f32 %v1544_v41, %v3479_v34  ;;  %v1546_v49 = vpop.f32.mrb[6].mxu1 }
 0x559   : > { %v1684_v50 = vmul.f32 0.70710677, %v1543_v28  ;;  %v1547_v51 = vadd.f32 %v1546_v49, %v3476_v33  ;;  %v1548_v52 = vpop.f32.mrb[7].mxu1  ;;  %v1652_v41 = vmul.f32 0.5, %v1543_v28 }
 0x55a   : > { %v1685_v53 = vmul.f32 0.70710677, %v3487_v0  ;;  %v1549_v54 = vadd.f32 %v1548_v52, %v3479_v34  ;;  %v1653_v30 = vmul.f32 0.5, %v3487_v0  ;;  %v3527_v0 = vrot.slane %v3472_v19, %v1332_v42 }
 0x55b   : > { %2809 = verf.f32 %v1684_v50  ;;  %v1688_v40 = vmul.f32 0.70710677, %v1547_v51  ;;  %v1656_v49 = vmul.f32 0.5, %v1547_v51 }
 0x55c   : > { %2811 = verf.f32 %v1685_v53  ;;  %v1689_v55 = vmul.f32 0.70710677, %v1549_v54 }
 0x55d   : > { %v2802_v58 = vpop.eup %2801  ;;  %2813 = verf.f32 %v1688_v40  ;;  %v1657_v40 = vmul.f32 0.5, %v1549_v54 }
 0x55e   : > { %v2804_v59 = vpop.eup %2803  ;;  %v1740_v25 = vadd.f32 1.0, %v2802_v58  ;;  %2815 = verf.f32 %v1689_v55  ;;  %v1552_v60 = vpop.f32.mrb[8].mxu1 }
 0x55f   : > { %v2806_v61 = vpop.eup %2805  ;;  %v1741_v62 = vadd.f32 1.0, %v2804_v59  ;;  %v3493_v63 = vadd.f32 %v1552_v60, %v3476_v33  ;;  %v1554_v8 = vpop.f32.mrb[9].mxu1 }
 0x560   : > { %v2808_v9 = vpop.eup %2807  ;;  %v1744_v15 = vadd.f32 1.0, %v2806_v61  ;;  %v3497_v16 = vadd.f32 %v1554_v8, %v3479_v34  ;;  %v1556_v17 = vpop.f32.mrb[10].mxu1  ;;  %v1772_v22 = vmul.f32 %v1740_v25, %v1644_v11 }
 0x561   : > { %v1745_v45 = vadd.f32 1.0, %v2808_v9  ;;  %v1692_v12 = vmul.f32 0.70710677, %v3493_v63  ;;  %v1558_v21 = vpop.f32.mrb[11].mxu1  ;;  %v3502_v35 = vadd.f32 %v1556_v17, %v3476_v33  ;;  %v1773_v36 = vmul.f32 %v1741_v62, %v1645_v18 }
 0x562   : > { %v1776_v23 = vmul.f32 %v1744_v15, %v1648_v14  ;;  %v1693_v24 = vmul.f32 0.70710677, %v3497_v16  ;;  %v3505_v29 = vadd.f32 %v1558_v21, %v3479_v34 }
 0x563   : > { %v1777_v26 = vmul.f32 %v1745_v45, %v1649_v27  ;;  %2817 = verf.f32 %v1692_v12  ;;  %v1696_v32 = vmul.f32 0.70710677, %v3502_v35  ;;  %v1660_v45 = vmul.f32 0.5, %v3493_v63 }
 0x564   : > { %v1804_v31 = vpack.c.bf16 %v1776_v23, %v1772_v22  ;;  %2819 = verf.f32 %v1693_v24  ;;  %v1697_v38 = vmul.f32 0.70710677, %v3505_v29  ;;  %v1661_v23 = vmul.f32 0.5, %v3497_v16 }
 0x565   : > { %v2810_v37 = vpop.eup %2809  ;;  %v1805_v13 = vpack.c.bf16 %v1777_v26, %v1773_v36  ;;  %2821 = verf.f32 %v1696_v32  ;;  %v1664_v24 = vmul.f32 0.5, %v3502_v35  ;;  %v1665_v32 = vmul.f32 0.5, %v3505_v29 }
 0x566   : > { %v2812_v56 = vpop.eup %2811  ;;  %v1748_v57 = vadd.f32 1.0, %v2810_v37  ;;  %v1562_v39 = vpop.f32.mrb[12].mxu1  ;;  %2823 = verf.f32 %v1697_v38 }
 0x567   : > { %v2814_v43 = vpop.eup %2813  ;;  %v1749_v20 = vadd.f32 1.0, %v2812_v56  ;;  %v3511_v44 = vadd.f32 %v1562_v39, %v3476_v33  ;;  %v1564_v46 = vpop.f32.mrb[13].mxu1  ;;  %2115 = vmatprep.mubr.bf16.mxu0 %v1805_v13 }
 0x568   : > { %v2816_v48 = vpop.eup %2815  ;;  %v1752_v50 = vadd.f32 1.0, %v2814_v43  ;;  %v3517_v52 = vadd.f32 %v1564_v46, %v3479_v34  ;;  %v1566_v53 = vpop.f32.mrb[14].mxu1  ;;  %2116 = vmatmul.mubr.bf16.vlgmr.msra.gmra.mrb[28].mxu0 %v1804_v31  ;;  %v1780_v25 = vmul.f32 %v1748_v57, %v1652_v41 }
 0x569   : > { %v1753_v55 = vadd.f32 1.0, %v2816_v48  ;;  %v1700_v58 = vmul.f32 0.70710677, %v3511_v44  ;;  %v1568_v59 = vpop.f32.mrb[15].mxu1  ;;  %v1567_v28 = vadd.f32 %v1566_v53, %v3476_v33  ;;  %v1781_v51 = vmul.f32 %v1749_v20, %v1653_v30 }
 0x56a   : > { %v1784_v60 = vmul.f32 %v1752_v50, %v1656_v49  ;;  %v1701_v61 = vmul.f32 0.70710677, %v3517_v52  ;;  %v3524_v8 = vadd.f32 %v1568_v59, %v3479_v34  ;;  %v1668_v30 = vmul.f32 0.5, %v3511_v44 }
 0x56b   : > { %v1785_v62 = vmul.f32 %v1753_v55, %v1657_v40  ;;  %2825 = verf.f32 %v1700_v58  ;;  %v1704_v10 = vmul.f32 0.70710677, %v1567_v28 }
 0x56c   : > { %2827 = verf.f32 %v1701_v61  ;;  %v1808_v54 = vpack.c.bf16 %v1784_v60, %v1780_v25  ;;  %v1705_v11 = vmul.f32 0.70710677, %v3524_v8  ;;  %v1669_v25 = vmul.f32 0.5, %v3517_v52 }
 0x56d   : > { %v2818_v9 = vpop.eup %2817  ;;  %v1809_v14 = vpack.c.bf16 %v1785_v62, %v1781_v51  ;;  %2829 = verf.f32 %v1704_v10  ;;  %v1672_v60 = vmul.f32 0.5, %v1567_v28  ;;  %v1673_v10 = vmul.f32 0.5, %v3524_v8 }
 0x56e   : > { %v2820_v15 = vpop.eup %2819  ;;  %v1605_v17 = vpop.f32.mrb[16].mxu1  ;;  %v1756_v33 = vadd.f32 1.0, %v2818_v9  ;;  %2831 = verf.f32 %v1705_v11 }
 0x56f   : > { %v3531_v18 = vadd.f32 %v1605_v17, %v3514_v47  ;;  %v1607_v34 = vpop.f32.mrb[17].mxu1  ;;  %2123 = vmatprep.mubr.bf16.mxu0 %v1809_v14  ;;  %v2822_v27 = vpop.eup %2821  ;;  %v1757_v19 = vadd.f32 1.0, %v2820_v15 }
 0x570   : > { %v3535_v12 = vadd.f32 %v1607_v34, %v3527_v0  ;;  %v1609_v21 = vpop.f32.mrb[18].mxu1  ;;  %2124 = vmatmul.mubr.bf16.gmra.mrb[32].mxu0 %v1808_v54  ;;  %v2824_v22 = vpop.eup %2823  ;;  %v1760_v36 = vadd.f32 1.0, %v2822_v27  ;;  %v1788_v13 = vmul.f32 %v1756_v33, %v1660_v45 }
 0x571   : > { %v1678_v26 = vmul.f32 0.70710677, %v3531_v18  ;;  %v1611_v31 = vpop.f32.mrb[19].mxu1  ;;  %v1761_v37 = vadd.f32 1.0, %v2824_v22  ;;  %v3543_v38 = vadd.f32 %v1609_v21, %v3514_v47  ;;  %v1789_v16 = vmul.f32 %v1757_v19, %v1661_v23 }
 0x572   : > { %v1679_v63 = vmul.f32 0.70710677, %v3535_v12  ;;  %v1792_v56 = vmul.f32 %v1760_v36, %v1664_v24  ;;  %v3546_v57 = vadd.f32 %v1611_v31, %v3527_v0  ;;  %v1646_v36 = vmul.f32 0.5, %v3531_v18 }
 0x573   : > { %2833 = verf.f32 %v1678_v26  ;;  %v1793_v35 = vmul.f32 %v1761_v37, %v1665_v32  ;;  %v1682_v39 = vmul.f32 0.70710677, %v3543_v38 }
 0x574   : > { %2835 = verf.f32 %v1679_v63  ;;  %v1683_v29 = vmul.f32 0.70710677, %v3546_v57  ;;  %v1812_v43 = vpack.c.bf16 %v1792_v56, %v1788_v13  ;;  %v1647_v63 = vmul.f32 0.5, %v3535_v12 }
 0x575   : > { %v2826_v42 = vpop.eup %2825  ;;  %2837 = verf.f32 %v1682_v39  ;;  %v1813_v48 = vpack.c.bf16 %v1793_v35, %v1789_v16  ;;  %v1650_v13 = vmul.f32 0.5, %v3543_v38  ;;  %v1651_v39 = vmul.f32 0.5, %v3546_v57 }
 0x576   : > { %v2828_v20 = vpop.eup %2827  ;;  %v1615_v46 = vpop.f32.mrb[20].mxu1  ;;  %v1764_v41 = vadd.f32 1.0, %v2826_v42  ;;  %2839 = verf.f32 %v1683_v29 }
 0x577   : > { %v3551_v49 = vadd.f32 %v1615_v46, %v3514_v47  ;;  %v1617_v50 = vpop.f32.mrb[21].mxu1  ;;  %v2830_v53 = vpop.eup %2829  ;;  %v1765_v40 = vadd.f32 1.0, %v2828_v20  ;;  %2131 = vmatprep.mubr.bf16.mxu0 %v1813_v48 }
 0x578   : > { %v3555_v55 = vadd.f32 %v1617_v50, %v3527_v0  ;;  %v1619_v58 = vpop.f32.mrb[22].mxu1  ;;  %v2832_v59 = vpop.eup %2831  ;;  %v1768_v61 = vadd.f32 1.0, %v2830_v53  ;;  %2132 = vmatmul.mubr.bf16.gmra.mrb[36].mxu0 %v1812_v43  ;;  %v1796_v11 = vmul.f32 %v1764_v41, %v1668_v30 }
 0x579   : > { %v1686_v51 = vmul.f32 0.70710677, %v3551_v49  ;;  %v1621_v62 = vpop.f32.mrb[23].mxu1  ;;  %v1769_v54 = vadd.f32 1.0, %v2832_v59  ;;  %v3562_v9 = vadd.f32 %v1619_v58, %v3514_v47  ;;  %v1797_v52 = vmul.f32 %v1765_v40, %v1669_v25 }
 0x57a   : > { %v1687_v44 = vmul.f32 0.70710677, %v3555_v55  ;;  %v1800_v14 = vmul.f32 %v1768_v61, %v1672_v60  ;;  %v3565_v15 = vadd.f32 %v1621_v62, %v3527_v0  ;;  %v1654_v61 = vmul.f32 0.5, %v3551_v49 }
 0x57b   : > { %2841 = verf.f32 %v1686_v51  ;;  %v1801_v28 = vmul.f32 %v1769_v54, %v1673_v10  ;;  %v1690_v17 = vmul.f32 0.70710677, %v3562_v9 }
 0x57c   : > { %2843 = verf.f32 %v1687_v44  ;;  %v1691_v8 = vmul.f32 0.70710677, %v3565_v15  ;;  %v1816_v34 = vpack.c.bf16 %v1800_v14, %v1796_v11  ;;  %v1655_v44 = vmul.f32 0.5, %v3555_v55 }
 0x57d   : > { %v2834_v33 = vpop.eup %2833  ;;  %2845 = verf.f32 %v1690_v17  ;;  %v1817_v19 = vpack.c.bf16 %v1801_v28, %v1797_v52  ;;  %v1658_v11 = vmul.f32 0.5, %v3562_v9  ;;  %v1659_v17 = vmul.f32 0.5, %v3565_v15 }
 0x57e   : > { %v2836_v27 = vpop.eup %2835  ;;  %v1625_v45 = vpop.f32.mrb[24].mxu1  ;;  %v1742_v21 = vadd.f32 1.0, %v2834_v33  ;;  %2847 = verf.f32 %v1691_v8 }
 0x57f   : > { %v3570_v22 = vadd.f32 %v1625_v45, %v3514_v47  ;;  %v1627_v23 = vpop.f32.mrb[25].mxu1  ;;  %v2838_v24 = vpop.eup %2837  ;;  %v1743_v26 = vadd.f32 1.0, %v2836_v27  ;;  %2139 = vmatprep.mubr.bf16.mxu0 %v1817_v19 }
 0x580   : > { %v3574_v31 = vadd.f32 %v1627_v23, %v3527_v0  ;;  %v1629_v32 = vpop.f32.mrb[26].mxu1  ;;  %v2840_v37 = vpop.eup %2839  ;;  %v1746_v56 = vadd.f32 1.0, %v2838_v24  ;;  %2140 = vmatmul.mubr.bf16.gmra.mrb[40].mxu0 %v1816_v34  ;;  %v1774_v43 = vmul.f32 %v1742_v21, %v1646_v36 }
 0x581   : > { %v1694_v16 = vmul.f32 0.70710677, %v3570_v22  ;;  %v1631_v35 = vpop.f32.mrb[27].mxu1  ;;  %v1747_v42 = vadd.f32 1.0, %v2840_v37  ;;  %v1630_v29 = vadd.f32 %v1629_v32, %v3514_v47  ;;  %v1775_v12 = vmul.f32 %v1743_v26, %v1647_v63 }
 0x582   : > { %v1695_v18 = vmul.f32 0.70710677, %v3574_v31  ;;  %v1778_v20 = vmul.f32 %v1746_v56, %v1650_v13  ;;  %v1632_v46 = vadd.f32 %v1631_v35, %v3527_v0  ;;  %v1662_v63 = vmul.f32 0.5, %v3570_v22 }
 0x583   : > { %2849 = verf.f32 %v1694_v16  ;;  %v1779_v48 = vmul.f32 %v1747_v42, %v1651_v39  ;;  %v1698_v38 = vmul.f32 0.70710677, %v1630_v29  ;;  %v1666_v13 = vmul.f32 0.5, %v1630_v29 }
 0x584   : > { %2851 = verf.f32 %v1695_v18  ;;  %v1806_v50 = vpack.c.bf16 %v1778_v20, %v1774_v43  ;;  %v1699_v53 = vmul.f32 0.70710677, %v1632_v46  ;;  %v1663_v56 = vmul.f32 0.5, %v3574_v31 }
 0x585   : > { %v2842_v41 = vpop.eup %2841  ;;  %2853 = verf.f32 %v1698_v38  ;;  %v1807_v40 = vpack.c.bf16 %v1779_v48, %v1775_v12  ;;  %v1667_v16 = vmul.f32 0.5, %v1632_v46 }
 0x586   : > { %v2844_v30 = vpop.eup %2843  ;;  %v1635_v57 = vpop.f32.mrb[28].mxu1  ;;  %v1750_v58 = vadd.f32 1.0, %v2842_v41  ;;  %2855 = verf.f32 %v1699_v53 }
 0x587   : > { %v1636_v59 = vadd.f32 %v1635_v57, %v3514_v47  ;;  %v1637_v25 = vpop.f32.mrb[29].mxu1  ;;  %v2846_v60 = vpop.eup %2845  ;;  %v1751_v51 = vadd.f32 1.0, %v2844_v30  ;;  %2180 = vmatprep.mubr.bf16.mxu1 %v1807_v40 }
 0x588   : > { %v1638_v62 = vadd.f32 %v1637_v25, %v3527_v0  ;;  %v1639_v10 = vpop.f32.mrb[30].mxu1  ;;  %v2848_v54 = vpop.eup %2847  ;;  %v1754_v14 = vadd.f32 1.0, %v2846_v60  ;;  %2181 = vmatmul.mubr.bf16.vlgmr.msra.gmra.mrb[32].mxu1 %v1806_v50  ;;  %v1782_v34 = vmul.f32 %v1750_v58, %v1654_v61 }
 0x589   : > { %v1702_v52 = vmul.f32 0.70710677, %v1636_v59  ;;  %v1641_v28 = vpop.f32.mrb[31].mxu1  ;;  %v1755_v33 = vadd.f32 1.0, %v2848_v54  ;;  %v1640_v49 = vadd.f32 %v1639_v10, %v3514_v47  ;;  %v1783_v19 = vmul.f32 %v1751_v51, %v1655_v44 }
 0x58a   : > { %v1703_v8 = vmul.f32 0.70710677, %v1638_v62  ;;  %v1786_v27 = vmul.f32 %v1754_v14, %v1658_v11  ;;  %v1642_v45 = vadd.f32 %v1641_v28, %v3527_v0  ;;  %v1670_v29 = vmul.f32 0.5, %v1636_v59 }
 0x58b   : > { %2857 = verf.f32 %v1702_v52  ;;  %v1787_v21 = vmul.f32 %v1755_v33, %v1659_v17  ;;  %v1706_v55 = vmul.f32 0.70710677, %v1640_v49  ;;  %v1674_v30 = vmul.f32 0.5, %v1640_v49 }
 0x58c   : > { %2859 = verf.f32 %v1703_v8  ;;  %v1707_v23 = vmul.f32 0.70710677, %v1642_v45  ;;  %v1810_v24 = vpack.c.bf16 %v1786_v27, %v1782_v34  ;;  %v1671_v31 = vmul.f32 0.5, %v1638_v62 }
 0x58d   : > { %v2850_v9 = vpop.eup %2849  ;;  %2861 = verf.f32 %v1706_v55  ;;  %v1811_v26 = vpack.c.bf16 %v1787_v21, %v1783_v19  ;;  %v1675_v46 = vmul.f32 0.5, %v1642_v45 }
 0x58e   : > { %v2852_v36 = vpop.eup %2851  ;;  %v1758_v15 = vadd.f32 1.0, %v2850_v9  ;;  %2863 = verf.f32 %v1707_v23 }
 0x58f   : > { %v2854_v32 = vpop.eup %2853  ;;  %v1759_v37 = vadd.f32 1.0, %v2852_v36  ;;  %2188 = vmatprep.mubr.bf16.mxu1 %v1811_v26 }
 0x590   : > { %v2856_v47 = vpop.eup %2855  ;;  %v1762_v0 = vadd.f32 1.0, %v2854_v32  ;;  %2189 = vmatmul.mubr.bf16.gmra.mrb[36].mxu1 %v1810_v24  ;;  %v1790_v39 = vmul.f32 %v1758_v15, %v1662_v63  ;;  %v2356_v32 = vld [vmem:[%s3636_s14] ss:$0 sm:$0xff] }
 0x591   : > { %v1763_v35 = vadd.f32 1.0, %v2856_v47  ;;  %v1791_v18 = vmul.f32 %v1759_v37, %v1663_v56 }
 0x592   : > { %v1794_v42 = vmul.f32 %v1762_v0, %v1666_v13 }
 0x593   : > { %v1795_v43 = vmul.f32 %v1763_v35, %v1667_v16 }
 0x594   : > { %v1814_v12 = vpack.c.bf16 %v1794_v42, %v1790_v39  ;;  %v2865_v42 = vld [vmem:[%s2974_s24] sm:$0xff] }
 0x595   : > { %v2858_v20 = vpop.eup %2857  ;;  %v1815_v38 = vpack.c.bf16 %v1795_v43, %v1791_v18 }
 0x596   : > { %v2860_v48 = vpop.eup %2859  ;;  %v1766_v41 = vadd.f32 1.0, %v2858_v20 }
 0x597   : > { %v2862_v50 = vpop.eup %2861  ;;  %v1767_v53 = vadd.f32 1.0, %v2860_v48  ;;  %2196 = vmatprep.mubr.bf16.mxu1 %v1815_v38 }
 0x598   : > { %v2864_v22 = vpop.eup %2863  ;;  %v1770_v57 = vadd.f32 1.0, %v2862_v50  ;;  %2197 = vmatmul.mubr.bf16.gmra.mrb[40].mxu1 %v1814_v12  ;;  %v1798_v58 = vmul.f32 %v1766_v41, %v1670_v29 }
 0x599   : > { %v1771_v40 = vadd.f32 1.0, %v2864_v22  ;;  %v1799_v60 = vmul.f32 %v1767_v53, %v1671_v31 }
 0x59a   : > { %v1802_v25 = vmul.f32 %v1770_v57, %v1674_v30 }
 0x59b   : > { %v1803_v61 = vmul.f32 %v1771_v40, %v1675_v46 }
 0x59c   : > { %v1818_v51 = vpack.c.bf16 %v1802_v25, %v1798_v58 }
 0x59d   : > { %v1819_v10 = vpack.c.bf16 %v1803_v61, %v1799_v60 }
 0x59f   : > { %2204 = vmatprep.mubr.bf16.mxu1 %v1819_v10 }
 0x5a0   : > { %2205 = vmatmul.mubr.bf16.gmra.mrb[44].mxu1 %v1818_v51 }
 0x63b   : > { %v2459_v54 = vpop.f32.mrb[28].mxu0 }
 0x63c   : > { %v2460_v44 = vpop.f32.mrb[29].mxu0 }
 0x63d   : > { %v2461_v11 = vadd.f32 %v2460_v44, %v2459_v54  ;;  %v2462_v14 = vpop.f32.mrb[30].mxu0 }
 0x63e   : > { %v2463_v52 = vpop.f32.mrb[31].mxu0 }
 0x63f   : > { %v2464_v59 = vadd.f32 %v2463_v52, %v2462_v14  ;;  %v2118_v63 = vadd.f32 %v2461_v11, %v2356_v32 }
 0x641   : > { %v2121_v16 = vadd.f32 %v2464_v59, %v2356_v32 }
 0x643   : > { %v2465_v28 = vpop.f32.mrb[32].mxu0 }
 0x644   : > { %v2466_v17 = vpop.f32.mrb[33].mxu0 }
 0x645   : > { %v2467_v33 = vadd.f32 %v2466_v17, %v2465_v28  ;;  %v2468_v62 = vpop.f32.mrb[34].mxu0 }
 0x646   : > { %v2469_v8 = vpop.f32.mrb[35].mxu0 }
 0x647   : > { %v2470_v49 = vadd.f32 %v2469_v8, %v2468_v62  ;;  %v2126_v38 = vadd.f32 %v2467_v33, %v2356_v32 }
 0x649   : > { %v2129_v22 = vadd.f32 %v2470_v49, %v2356_v32 }
 0x64b   : > { %v2471_v34 = vpop.f32.mrb[36].mxu0 }
 0x64c   : > { %v2472_v27 = vpop.f32.mrb[37].mxu0 }
 0x64d   : > { %v2473_v45 = vadd.f32 %v2472_v27, %v2471_v34  ;;  %v2474_v19 = vpop.f32.mrb[38].mxu0 }
 0x64e   : > { %v2475_v21 = vpop.f32.mrb[39].mxu0 }
 0x64f   : > { %v2476_v55 = vadd.f32 %v2475_v21, %v2474_v19  ;;  %v2134_v58 = vadd.f32 %v2473_v45, %v2356_v32 }
 0x651   : > { %v2137_v51 = vadd.f32 %v2476_v55, %v2356_v32 }
 0x653   : > { %v2477_v9 = vpop.f32.mrb[40].mxu0 }
 0x654   : > { %v2478_v23 = vpop.f32.mrb[41].mxu0 }
 0x655   : > { %v2479_v24 = vadd.f32 %v2478_v23, %v2477_v9  ;;  %v2480_v36 = vpop.f32.mrb[42].mxu0 }
 0x656   : > { %v2481_v26 = vpop.f32.mrb[43].mxu0 }
 0x657   : > { %v2482_v15 = vadd.f32 %v2481_v26, %v2480_v36  ;;  %v2142_v52 = vadd.f32 %v2479_v24, %v2356_v32 }
 0x659   : > { %v2145_v33 = vadd.f32 %v2482_v15, %v2356_v32 }
 0x65b   : > { %v2499_v37 = vpop.f32.mrb[32].mxu1 }
 0x65c   : > { %v2500_v47 = vpop.f32.mrb[33].mxu1 }
 0x65d   : > { %v2501_v13 = vadd.f32 %v2500_v47, %v2499_v37  ;;  %v2502_v0 = vpop.f32.mrb[34].mxu1 }
 0x65e   : > { %v2503_v56 = vpop.f32.mrb[35].mxu1 }
 0x65f   : > { %v2183_v35 = vadd.f32 %v2501_v13, %v2118_v63  ;;  %v2504_v39 = vadd.f32 %v2503_v56, %v2502_v0 }
 0x661   : > { %v2213_v18 = vadd.f32 %v2865_v42, %v2183_v35  ;;  %v2186_v43 = vadd.f32 %v2504_v39, %v2121_v16 }
 0x663   : > { %2221 = vst [vmem:[%s3601_s30] sm:$0xff] %v2213_v18  ;;  %v2214_v20 = vadd.f32 %v2186_v43, %v2982_v2  ;;  %v2505_v12 = vpop.f32.mrb[36].mxu1 }
 0x664   : > { %v2506_v48 = vpop.f32.mrb[37].mxu1 }
 0x665   : > { %2222 = vst [vmem:[%s3601_s30 + $0x8] sm:$0xff] %v2214_v20  ;;  %v2507_v41 = vadd.f32 %v2506_v48, %v2505_v12  ;;  %v2508_v50 = vpop.f32.mrb[38].mxu1 }
 0x666   : > { %v2509_v53 = vpop.f32.mrb[39].mxu1 }
 0x667   : > { %v2191_v29 = vadd.f32 %v2507_v41, %v2126_v38  ;;  %v2510_v30 = vadd.f32 %v2509_v53, %v2508_v50 }
 0x669   : > { %v2215_v57 = vadd.f32 %v2191_v29, %v2978_v1  ;;  %v2194_v31 = vadd.f32 %v2510_v30, %v2129_v22 }
 0x66b   : > { %2223 = vst [vmem:[%s3601_s30 + $0x10] sm:$0xff] %v2215_v57  ;;  %v2216_v46 = vadd.f32 %v2194_v31, %v2985_v3  ;;  %v2511_v40 = vpop.f32.mrb[40].mxu1 }
 0x66c   : > { %v2512_v2 = vpop.f32.mrb[41].mxu1 }
 0x66d   : > { %2224 = vst [vmem:[%s3601_s30 + $0x18] sm:$0xff] %v2216_v46  ;;  %v2513_v25 = vadd.f32 %v2512_v2, %v2511_v40  ;;  %v2514_v60 = vpop.f32.mrb[42].mxu1 }
 0x66e   : > { %v2515_v61 = vpop.f32.mrb[43].mxu1 }
 0x66f   : > { %v2199_v10 = vadd.f32 %v2513_v25, %v2134_v58  ;;  %v2516_v54 = vadd.f32 %v2515_v61, %v2514_v60 }
 0x671   : > { %v2217_v44 = vadd.f32 %v2199_v10, %v2988_v4  ;;  %v2202_v1 = vadd.f32 %v2516_v54, %v2137_v51 }
 0x673   : > { %2225 = vst [vmem:[%s3601_s30 + $0x20] sm:$0xff] %v2217_v44  ;;  %v2218_v11 = vadd.f32 %v2202_v1, %v2991_v5  ;;  %v2517_v3 = vpop.f32.mrb[44].mxu1 }
 0x674   : > { %v2518_v14 = vpop.f32.mrb[45].mxu1 }
 0x675   : > { %2226 = vst [vmem:[%s3601_s30 + $0x28] sm:$0xff] %v2218_v11  ;;  %v2519_v59 = vadd.f32 %v2518_v14, %v2517_v3  ;;  %v2520_v28 = vpop.f32.mrb[46].mxu1 }
 0x676   : > { %v2521_v17 = vpop.f32.mrb[47].mxu1 }
 0x677   : > { %v2207_v62 = vadd.f32 %v2519_v59, %v2142_v52  ;;  %v2522_v8 = vadd.f32 %v2521_v17, %v2520_v28 }
 0x679   : > { %v2219_v49 = vadd.f32 %v2207_v62, %v2996_v6  ;;  %v2210_v34 = vadd.f32 %v2522_v8, %v2145_v33 }
 0x67b   : > { %2227 = vst [vmem:[%s3601_s30 + $0x30] sm:$0xff] %v2219_v49  ;;  %v2220_v4 = vadd.f32 %v2210_v34, %v2999_v7 }
 0x67d   : > { %2228 = vst [vmem:[%s3601_s30 + $0x38] sm:$0xff] %v2220_v4 }
 0x67e PF: > { %s25_s18 = sadd.s32 1, %s2872_s18  }
 0x67f   : > { %p22_p4 = scmp.ge.s32.totalorder %s25_s18, 4  }
 0x681   :  { %24 = sbr.rel (!%p22_p4) target bundleno = 1 (0x1), region = 110 }

</bundles_post_ra>
